<compile_context>
chip_gen: v7x
topology: tpu7x:2x2x1
jax: 0.10.0
libtpu: 0.0.40
codegen_flags: <defaults>
</compile_context>

<pallas_src>
import functools

import jax
import jax.numpy as jnp
from jax.experimental import pallas as pl
from jax.experimental.pallas import tpu as pltpu


# ---------------------------------------------------------------------------
# Kernel
# ---------------------------------------------------------------------------
def decoder_kernel(tgt_ref, mem_ref,
                   sa_wqkv_ref, sa_bqkv_ref, sa_wo_ref, sa_bo_ref, ln1_g_ref, ln1_b_ref,
                   ca_wq_ref, ca_bq_ref, ca_wkv_ref, ca_bkv_ref, ca_wo_ref, ca_bo_ref,
                   ln2_g_ref, ln2_b_ref,
                   ff_w1_ref, ff_b1_ref, ff_w2_ref, ff_b2_ref, ln3_g_ref, ln3_b_ref,
                   wf_ref, bf_ref,
                   o_ref,
                   *, num_layers, num_heads, batch, tgt_len, mem_len):
    B, S, T = batch, tgt_len, mem_len
    hdk = sa_wo_ref.shape[1]          # num_heads * dk
    dk = hdk // num_heads

    def layer_norm(v, g, b, eps=1e-5):
        m = jnp.mean(v, axis=-1, keepdims=True)
        c = v - m
        var = jnp.mean(c * c, axis=-1, keepdims=True)
        return c * jax.lax.rsqrt(var + eps) * g + b

    def mha(q2d, k2d, v2d, wo, bo, src_len):
        """q2d: (B*S, H*dk); k2d, v2d: (B*src_len, H*dk) -> (B*S, D)."""
        q3 = q2d.reshape(B, S, hdk)
        k3 = k2d.reshape(B, src_len, hdk)
        v3 = v2d.reshape(B, src_len, hdk)
        acc = None
        for h in range(num_heads):                     # static unroll (H is tiny)
            sl = slice(h * dk, (h + 1) * dk)
            qh, kh, vh = q3[:, :, sl], k3[:, :, sl], v3[:, :, sl]
            # NB: the reference computes softmax(temp/scale) and discards it;
            # the actual head output is temp @ v -- reproduced verbatim.
            temp = jnp.einsum('bsd,btd->bst', qh, kh,
                              preferred_element_type=jnp.float32)      # (B,S,T)
            ctx = jnp.einsum('bst,btd->bsd', temp, vh,
                             preferred_element_type=jnp.float32)       # (B,S,dk)
            part = jnp.dot(ctx.reshape(B * S, dk), wo[sl, :],
                           preferred_element_type=jnp.float32)         # (B*S,D)
            acc = part if acc is None else acc + part
        return acc + bo

    x = tgt_ref[...].astype(jnp.float32)        # (B*S, D)
    mem = mem_ref[...].astype(jnp.float32)      # (B*T, D)

    for l in range(num_layers):                 # static unroll over layers
        # --- Residual #1: self-attention ------------------------------------
        qkv = jnp.dot(x, sa_wqkv_ref[l],
                      preferred_element_type=jnp.float32) + sa_bqkv_ref[l]
        attn = mha(qkv[:, :hdk], qkv[:, hdk:2 * hdk], qkv[:, 2 * hdk:],
                   sa_wo_ref[l], sa_bo_ref[l], S)
        x = layer_norm(x + attn, ln1_g_ref[l], ln1_b_ref[l])

        # --- Residual #2: cross-attention over `memory` ----------------------
        q = jnp.dot(x, ca_wq_ref[l],
                    preferred_element_type=jnp.float32) + ca_bq_ref[l]
        kv = jnp.dot(mem, ca_wkv_ref[l],
                     preferred_element_type=jnp.float32) + ca_bkv_ref[l]
        attn = mha(q, kv[:, :hdk], kv[:, hdk:],
                   ca_wo_ref[l], ca_bo_ref[l], T)
        x = layer_norm(x + attn, ln2_g_ref[l], ln2_b_ref[l])

        # --- Residual #3: feed-forward ---------------------------------------
        hid = jnp.dot(x, ff_w1_ref[l],
                      preferred_element_type=jnp.float32) + ff_b1_ref[l]
        hid = jnp.maximum(hid, 0.0)
        ff = jnp.dot(hid, ff_w2_ref[l],
                     preferred_element_type=jnp.float32) + ff_b2_ref[l]
        x = layer_norm(x + ff, ln3_g_ref[l], ln3_b_ref[l])

    # --- final decoder Linear(D, D) ------------------------------------------
    out = jnp.dot(x, wf_ref[...], preferred_element_type=jnp.float32) + bf_ref[...]
    o_ref[...] = out.astype(o_ref.dtype)


# ---------------------------------------------------------------------------
# Wrapper-side weight fusion / stacking
# ---------------------------------------------------------------------------
def pack_params(params):
    """Fuse per-head Q/K/V weights into wide GEMM operands and stack layers."""

    def fuse_heads(w, b):
        # w: (H, D, dk) -> (D, H*dk); b: (H, 1, dk) -> (1, H*dk)  (head-major)
        H, Din, dkk = w.shape
        return (jnp.transpose(w, (1, 0, 2)).reshape(Din, H * dkk),
                jnp.transpose(b, (1, 0, 2)).reshape(1, H * dkk))

    per_layer = [[] for _ in range(20)]
    for lp in params["layers"]:
        swq, sbq = fuse_heads(lp["sa"]["wq"], lp["sa"]["bq"])
        swk, sbk = fuse_heads(lp["sa"]["wk"], lp["sa"]["bk"])
        swv, sbv = fuse_heads(lp["sa"]["wv"], lp["sa"]["bv"])
        cwq, cbq = fuse_heads(lp["ca"]["wq"], lp["ca"]["bq"])
        cwk, cbk = fuse_heads(lp["ca"]["wk"], lp["ca"]["bk"])
        cwv, cbv = fuse_heads(lp["ca"]["wv"], lp["ca"]["bv"])
        vals = (
            jnp.concatenate([swq, swk, swv], axis=1),   # sa_wqkv (D, 3*H*dk)
            jnp.concatenate([sbq, sbk, sbv], axis=1),   # sa_bqkv (1, 3*H*dk)
            lp["sa"]["wo"], lp["sa"]["bo"],
            lp["ln1"]["g"], lp["ln1"]["b"],
            cwq, cbq,
            jnp.concatenate([cwk, cwv], axis=1),        # ca_wkv (D, 2*H*dk)
            jnp.concatenate([cbk, cbv], axis=1),        # ca_bkv (1, 2*H*dk)
            lp["ca"]["wo"], lp["ca"]["bo"],
            lp["ln2"]["g"], lp["ln2"]["b"],
            lp["ff"]["w1"], lp["ff"]["b1"], lp["ff"]["w2"], lp["ff"]["b2"],
            lp["ln3"]["g"], lp["ln3"]["b"],
        )
        for buf, v in zip(per_layer, vals):
            buf.append(v)
    stacked = tuple(jnp.stack(buf) for buf in per_layer)
    return stacked + (params["final"]["w"], params["final"]["b"])


def transformer_decoder(tgt, memory, params, num_heads):
    B, S, D = tgt.shape
    Bm, T, Dm = memory.shape
    assert B == Bm and D == Dm
    num_layers = len(params["layers"])
    packed = pack_params(params)

    kernel = functools.partial(
        decoder_kernel,
        num_layers=num_layers, num_heads=num_heads,
        batch=B, tgt_len=S, mem_len=T)

    n_in = 2 + len(packed)
    out2d = pl.pallas_call(
        kernel,
        out_shape=jax.ShapeDtypeStruct((B * S, D), tgt.dtype),
        in_specs=[pl.BlockSpec(memory_space=pltpu.MemorySpace.VMEM)
                  for _ in range(n_in)],
        out_specs=pl.BlockSpec(memory_space=pltpu.MemorySpace.VMEM),
    )(tgt.reshape(B * S, D), memory.reshape(B * T, D), *packed)
    return out2d.reshape(B, S, D)


# ---------------------------------------------------------------------------
# Parameter init (mirrors the nn.Module structure; uniform +-1/sqrt(fan_in))
# ---------------------------------------------------------------------------
def init_params(key, num_layers, dim_model, num_heads, dim_feedforward):
    dk = max(dim_model // num_heads, 1)

    def linear(k, fan_in, fan_out):
        bound = 1.0 / (fan_in ** 0.5)
        kw, kb = jax.random.split(k)
        w = jax.random.uniform(kw, (fan_in, fan_out), jnp.float32, -bound, bound)
        b = jax.random.uniform(kb, (1, fan_out), jnp.float32, -bound, bound)
        return w, b

    def mha_params(k):
        ks = jax.random.split(k, 3 * num_heads + 1)
        wq, bq, wk, bk, wv, bv = [], [], [], [], [], []
        for h in range(num_heads):
            w, b = linear(ks[3 * h + 0], dim_model, dk); wq.append(w); bq.append(b)
            w, b = linear(ks[3 * h + 1], dim_model, dk); wk.append(w); bk.append(b)
            w, b = linear(ks[3 * h + 2], dim_model, dk); wv.append(w); bv.append(b)
        wo, bo = linear(ks[-1], num_heads * dk, dim_model)
        return dict(wq=jnp.stack(wq), bq=jnp.stack(bq),
                    wk=jnp.stack(wk), bk=jnp.stack(bk),
                    wv=jnp.stack(wv), bv=jnp.stack(bv), wo=wo, bo=bo)

    def ln_params():
        return dict(g=jnp.ones((1, dim_model), jnp.float32),
                    b=jnp.zeros((1, dim_model), jnp.float32))

    keys = jax.random.split(key, num_layers + 1)
    layers = []
    for l in range(num_layers):
        k_sa, k_ca, k_f1, k_f2 = jax.random.split(keys[l], 4)
        w1, b1 = linear(k_f1, dim_model, dim_feedforward)
        w2, b2 = linear(k_f2, dim_feedforward, dim_model)
        layers.append(dict(
            sa=mha_params(k_sa), ln1=ln_params(),
            ca=mha_params(k_ca), ln2=ln_params(),
            ff=dict(w1=w1, b1=b1, w2=w2, b2=b2), ln3=ln_params(),
        ))
    wf, bf = linear(keys[-1], dim_model, dim_model)
    return dict(layers=layers, final=dict(w=wf, b=bf))


# ---------------------------------------------------------------------------
# Pure-JAX reference (unfused, mirrors the PyTorch module in eval mode)
# ---------------------------------------------------------------------------
def reference(tgt, memory, params):
    with jax.default_matmul_precision("float32"):
        def ln(v, g, b, eps=1e-5):
            m = v.mean(-1, keepdims=True)
            var = ((v - m) ** 2).mean(-1, keepdims=True)
            return (v - m) / jnp.sqrt(var + eps) * g + b

        def mha(q_in, kv_in, p):
            H = p["wq"].shape[0]
            heads = []
            for h in range(H):
                q = q_in @ p["wq"][h] + p["bq"][h]
                k = kv_in @ p["wk"][h] + p["bk"][h]
                v = kv_in @ p["wv"][h] + p["bv"][h]
                temp = jnp.einsum("bsd,btd->bst", q, k)   # softmax computed & dropped in ref
                heads.append(jnp.einsum("bst,btd->bsd", temp, v))
            return jnp.concatenate(heads, -1) @ p["wo"] + p["bo"]

        x = tgt
        for lp in params["layers"]:
            x = ln(x + mha(x, x, lp["sa"]), lp["ln1"]["g"], lp["ln1"]["b"])
            x = ln(x + mha(x, memory, lp["ca"]), lp["ln2"]["g"], lp["ln2"]["b"])
            ff = jnp.maximum(x @ lp["ff"]["w1"] + lp["ff"]["b1"], 0.0) @ lp["ff"]["w2"] + lp["ff"]["b2"]
            x = ln(x + ff, lp["ln3"]["g"], lp["ln3"]["b"])
        return x @ params["final"]["w"] + params["final"]["b"]


if __name__ == "__main__":
    # Small, TPU-friendly instantiation of the module's hyperparameters.
    B, S, T = 2, 8, 16
    dim_model, num_heads, dim_feedforward, num_layers = 32, 4, 128, 2

    key = jax.random.PRNGKey(0)
    kt, km, kp = jax.random.split(key, 3)
    tgt = jax.random.normal(kt, (B, S, dim_model), jnp.float32)
    memory = jax.random.normal(km, (B, T, dim_model), jnp.float32)
    params = init_params(kp, num_layers, dim_model, num_heads, dim_feedforward)

    out = transformer_decoder(tgt, memory, params, num_heads)
    out = jax.block_until_ready(out)

    ref = reference(tgt, memory, params)
    assert out.shape == (B, S, dim_model)
    assert jnp.allclose(out, ref, rtol=1e-4, atol=1e-4), "mismatch vs pure-JAX reference"

    print("KERNEL_OK")
</pallas_src>

<mosaic_0001>
module attributes {stable_mosaic.version = 11 : i64} {
  func.func @decoder_kernel(%arg0: memref<16x32xf32, #tpu.memory_space<vmem>>, %arg1: memref<32x32xf32, #tpu.memory_space<vmem>>, %arg2: memref<2x32x96xf32, #tpu.memory_space<vmem>>, %arg3: memref<2x1x96xf32, #tpu.memory_space<vmem>>, %arg4: memref<2x32x32xf32, #tpu.memory_space<vmem>>, %arg5: memref<2x1x32xf32, #tpu.memory_space<vmem>>, %arg6: memref<2x1x32xf32, #tpu.memory_space<vmem>>, %arg7: memref<2x1x32xf32, #tpu.memory_space<vmem>>, %arg8: memref<2x32x32xf32, #tpu.memory_space<vmem>>, %arg9: memref<2x1x32xf32, #tpu.memory_space<vmem>>, %arg10: memref<2x32x64xf32, #tpu.memory_space<vmem>>, %arg11: memref<2x1x64xf32, #tpu.memory_space<vmem>>, %arg12: memref<2x32x32xf32, #tpu.memory_space<vmem>>, %arg13: memref<2x1x32xf32, #tpu.memory_space<vmem>>, %arg14: memref<2x1x32xf32, #tpu.memory_space<vmem>>, %arg15: memref<2x1x32xf32, #tpu.memory_space<vmem>>, %arg16: memref<2x32x128xf32, #tpu.memory_space<vmem>>, %arg17: memref<2x1x128xf32, #tpu.memory_space<vmem>>, %arg18: memref<2x128x32xf32, #tpu.memory_space<vmem>>, %arg19: memref<2x1x32xf32, #tpu.memory_space<vmem>>, %arg20: memref<2x1x32xf32, #tpu.memory_space<vmem>>, %arg21: memref<2x1x32xf32, #tpu.memory_space<vmem>>, %arg22: memref<32x32xf32, #tpu.memory_space<vmem>>, %arg23: memref<1x32xf32, #tpu.memory_space<vmem>>, %arg24: memref<16x32xf32, #tpu.memory_space<vmem>>) attributes {dimension_semantics = [], scalar_prefetch = 0 : i64, scratch_operands = 0 : i64, tpu.core_type = #tpu.core_type<tc>} {
    %c0 = arith.constant 0 : index
    %c0_0 = arith.constant 0 : index
    %0 = vector.load %arg0[%c0, %c0_0] : memref<16x32xf32, #tpu.memory_space<vmem>>, vector<16x32xf32>
    %c0_1 = arith.constant 0 : index
    %c0_2 = arith.constant 0 : index
    %1 = vector.load %arg1[%c0_1, %c0_2] : memref<32x32xf32, #tpu.memory_space<vmem>>, vector<32x32xf32>
    %c0_3 = arith.constant 0 : index
    %c0_4 = arith.constant 0 : index
    %c0_5 = arith.constant 0 : index
    %2 = vector.load %arg2[%c0_3, %c0_4, %c0_5] : memref<2x32x96xf32, #tpu.memory_space<vmem>>, vector<1x32x96xf32>
    %3 = vector.shape_cast %2 : vector<1x32x96xf32> to vector<32x96xf32>
    %cst = arith.constant dense<0.000000e+00> : vector<16x96xf32>
    %4 = tpu.matmul %0, %3, %cst {dimension_numbers = #tpu.dot_dimension_numbers<[1], [0], [0], [1], [0, 0, 1, 1], [], []>} : vector<16x32xf32>, vector<32x96xf32>, vector<16x96xf32> -> vector<16x96xf32>
    %c0_6 = arith.constant 0 : index
    %c0_7 = arith.constant 0 : index
    %c0_8 = arith.constant 0 : index
    %5 = vector.load %arg3[%c0_6, %c0_7, %c0_8] : memref<2x1x96xf32, #tpu.memory_space<vmem>>, vector<1x1x96xf32>
    %6 = vector.shape_cast %5 : vector<1x1x96xf32> to vector<1x96xf32>
    %7 = vector.broadcast %6 : vector<1x96xf32> to vector<16x96xf32>
    %8 = arith.addf %4, %7 : vector<16x96xf32>
    %9 = vector.extract_strided_slice %8 {offsets = [0, 0], sizes = [16, 32], strides = [1, 1]} : vector<16x96xf32> to vector<16x32xf32>
    %10 = vector.extract_strided_slice %8 {offsets = [0, 32], sizes = [16, 32], strides = [1, 1]} : vector<16x96xf32> to vector<16x32xf32>
    %11 = vector.extract_strided_slice %8 {offsets = [0, 64], sizes = [16, 32], strides = [1, 1]} : vector<16x96xf32> to vector<16x32xf32>
    %c0_9 = arith.constant 0 : index
    %c0_10 = arith.constant 0 : index
    %c0_11 = arith.constant 0 : index
    %12 = vector.load %arg4[%c0_9, %c0_10, %c0_11] : memref<2x32x32xf32, #tpu.memory_space<vmem>>, vector<1x32x32xf32>
    %13 = vector.shape_cast %12 : vector<1x32x32xf32> to vector<32x32xf32>
    %c0_12 = arith.constant 0 : index
    %c0_13 = arith.constant 0 : index
    %c0_14 = arith.constant 0 : index
    %14 = vector.load %arg5[%c0_12, %c0_13, %c0_14] : memref<2x1x32xf32, #tpu.memory_space<vmem>>, vector<1x1x32xf32>
    %15 = vector.shape_cast %14 : vector<1x1x32xf32> to vector<1x32xf32>
    %16 = vector.shape_cast %9 : vector<16x32xf32> to vector<2x8x32xf32>
    %17 = vector.shape_cast %10 : vector<16x32xf32> to vector<2x8x32xf32>
    %18 = vector.shape_cast %11 : vector<16x32xf32> to vector<2x8x32xf32>
    %19 = vector.extract_strided_slice %16 {offsets = [0, 0, 0], sizes = [2, 8, 8], strides = [1, 1, 1]} : vector<2x8x32xf32> to vector<2x8x8xf32>
    %20 = vector.extract_strided_slice %17 {offsets = [0, 0, 0], sizes = [2, 8, 8], strides = [1, 1, 1]} : vector<2x8x32xf32> to vector<2x8x8xf32>
    %21 = vector.extract_strided_slice %18 {offsets = [0, 0, 0], sizes = [2, 8, 8], strides = [1, 1, 1]} : vector<2x8x32xf32> to vector<2x8x8xf32>
    "tpu.trace_start"() <{level = 10 : i32, message = "bsd,btd->bst"}> : () -> ()
    %cst_15 = arith.constant dense<0.000000e+00> : vector<2x8x8xf32>
    %22 = tpu.matmul %19, %20, %cst_15 {dimension_numbers = #tpu.dot_dimension_numbers<[2], [2], [1], [1], [0, 0, 0, 1, 1, 1], [0], [0]>} : vector<2x8x8xf32>, vector<2x8x8xf32>, vector<2x8x8xf32> -> vector<2x8x8xf32>
    "tpu.trace_stop"() : () -> ()
    "tpu.trace_start"() <{level = 10 : i32, message = "bst,btd->bsd"}> : () -> ()
    %cst_16 = arith.constant dense<0.000000e+00> : vector<2x8x8xf32>
    %23 = tpu.matmul %22, %21, %cst_16 {dimension_numbers = #tpu.dot_dimension_numbers<[2], [1], [1], [2], [0, 0, 0, 1, 1, 2], [0], [0]>} : vector<2x8x8xf32>, vector<2x8x8xf32>, vector<2x8x8xf32> -> vector<2x8x8xf32>
    "tpu.trace_stop"() : () -> ()
    %24 = vector.shape_cast %23 : vector<2x8x8xf32> to vector<16x8xf32>
    %25 = vector.extract_strided_slice %13 {offsets = [0, 0], sizes = [8, 32], strides = [1, 1]} : vector<32x32xf32> to vector<8x32xf32>
    %cst_17 = arith.constant dense<0.000000e+00> : vector<16x32xf32>
    %26 = tpu.matmul %24, %25, %cst_17 {dimension_numbers = #tpu.dot_dimension_numbers<[1], [0], [0], [1], [0, 0, 1, 1], [], []>} : vector<16x8xf32>, vector<8x32xf32>, vector<16x32xf32> -> vector<16x32xf32>
    %27 = vector.extract_strided_slice %16 {offsets = [0, 0, 8], sizes = [2, 8, 8], strides = [1, 1, 1]} : vector<2x8x32xf32> to vector<2x8x8xf32>
    %28 = vector.extract_strided_slice %17 {offsets = [0, 0, 8], sizes = [2, 8, 8], strides = [1, 1, 1]} : vector<2x8x32xf32> to vector<2x8x8xf32>
    %29 = vector.extract_strided_slice %18 {offsets = [0, 0, 8], sizes = [2, 8, 8], strides = [1, 1, 1]} : vector<2x8x32xf32> to vector<2x8x8xf32>
    "tpu.trace_start"() <{level = 10 : i32, message = "bsd,btd->bst"}> : () -> ()
    %cst_18 = arith.constant dense<0.000000e+00> : vector<2x8x8xf32>
    %30 = tpu.matmul %27, %28, %cst_18 {dimension_numbers = #tpu.dot_dimension_numbers<[2], [2], [1], [1], [0, 0, 0, 1, 1, 1], [0], [0]>} : vector<2x8x8xf32>, vector<2x8x8xf32>, vector<2x8x8xf32> -> vector<2x8x8xf32>
    "tpu.trace_stop"() : () -> ()
    "tpu.trace_start"() <{level = 10 : i32, message = "bst,btd->bsd"}> : () -> ()
    %cst_19 = arith.constant dense<0.000000e+00> : vector<2x8x8xf32>
    %31 = tpu.matmul %30, %29, %cst_19 {dimension_numbers = #tpu.dot_dimension_numbers<[2], [1], [1], [2], [0, 0, 0, 1, 1, 2], [0], [0]>} : vector<2x8x8xf32>, vector<2x8x8xf32>, vector<2x8x8xf32> -> vector<2x8x8xf32>
    "tpu.trace_stop"() : () -> ()
    %32 = vector.shape_cast %31 : vector<2x8x8xf32> to vector<16x8xf32>
    %33 = vector.extract_strided_slice %13 {offsets = [8, 0], sizes = [8, 32], strides = [1, 1]} : vector<32x32xf32> to vector<8x32xf32>
    %cst_20 = arith.constant dense<0.000000e+00> : vector<16x32xf32>
    %34 = tpu.matmul %32, %33, %cst_20 {dimension_numbers = #tpu.dot_dimension_numbers<[1], [0], [0], [1], [0, 0, 1, 1], [], []>} : vector<16x8xf32>, vector<8x32xf32>, vector<16x32xf32> -> vector<16x32xf32>
    %35 = arith.addf %26, %34 : vector<16x32xf32>
    %36 = vector.extract_strided_slice %16 {offsets = [0, 0, 16], sizes = [2, 8, 8], strides = [1, 1, 1]} : vector<2x8x32xf32> to vector<2x8x8xf32>
    %37 = vector.extract_strided_slice %17 {offsets = [0, 0, 16], sizes = [2, 8, 8], strides = [1, 1, 1]} : vector<2x8x32xf32> to vector<2x8x8xf32>
    %38 = vector.extract_strided_slice %18 {offsets = [0, 0, 16], sizes = [2, 8, 8], strides = [1, 1, 1]} : vector<2x8x32xf32> to vector<2x8x8xf32>
    "tpu.trace_start"() <{level = 10 : i32, message = "bsd,btd->bst"}> : () -> ()
    %cst_21 = arith.constant dense<0.000000e+00> : vector<2x8x8xf32>
    %39 = tpu.matmul %36, %37, %cst_21 {dimension_numbers = #tpu.dot_dimension_numbers<[2], [2], [1], [1], [0, 0, 0, 1, 1, 1], [0], [0]>} : vector<2x8x8xf32>, vector<2x8x8xf32>, vector<2x8x8xf32> -> vector<2x8x8xf32>
    "tpu.trace_stop"() : () -> ()
    "tpu.trace_start"() <{level = 10 : i32, message = "bst,btd->bsd"}> : () -> ()
    %cst_22 = arith.constant dense<0.000000e+00> : vector<2x8x8xf32>
    %40 = tpu.matmul %39, %38, %cst_22 {dimension_numbers = #tpu.dot_dimension_numbers<[2], [1], [1], [2], [0, 0, 0, 1, 1, 2], [0], [0]>} : vector<2x8x8xf32>, vector<2x8x8xf32>, vector<2x8x8xf32> -> vector<2x8x8xf32>
    "tpu.trace_stop"() : () -> ()
    %41 = vector.shape_cast %40 : vector<2x8x8xf32> to vector<16x8xf32>
    %42 = vector.extract_strided_slice %13 {offsets = [16, 0], sizes = [8, 32], strides = [1, 1]} : vector<32x32xf32> to vector<8x32xf32>
    %cst_23 = arith.constant dense<0.000000e+00> : vector<16x32xf32>
    %43 = tpu.matmul %41, %42, %cst_23 {dimension_numbers = #tpu.dot_dimension_numbers<[1], [0], [0], [1], [0, 0, 1, 1], [], []>} : vector<16x8xf32>, vector<8x32xf32>, vector<16x32xf32> -> vector<16x32xf32>
    %44 = arith.addf %35, %43 : vector<16x32xf32>
    %45 = vector.extract_strided_slice %16 {offsets = [0, 0, 24], sizes = [2, 8, 8], strides = [1, 1, 1]} : vector<2x8x32xf32> to vector<2x8x8xf32>
    %46 = vector.extract_strided_slice %17 {offsets = [0, 0, 24], sizes = [2, 8, 8], strides = [1, 1, 1]} : vector<2x8x32xf32> to vector<2x8x8xf32>
    %47 = vector.extract_strided_slice %18 {offsets = [0, 0, 24], sizes = [2, 8, 8], strides = [1, 1, 1]} : vector<2x8x32xf32> to vector<2x8x8xf32>
    "tpu.trace_start"() <{level = 10 : i32, message = "bsd,btd->bst"}> : () -> ()
    %cst_24 = arith.constant dense<0.000000e+00> : vector<2x8x8xf32>
    %48 = tpu.matmul %45, %46, %cst_24 {dimension_numbers = #tpu.dot_dimension_numbers<[2], [2], [1], [1], [0, 0, 0, 1, 1, 1], [0], [0]>} : vector<2x8x8xf32>, vector<2x8x8xf32>, vector<2x8x8xf32> -> vector<2x8x8xf32>
    "tpu.trace_stop"() : () -> ()
    "tpu.trace_start"() <{level = 10 : i32, message = "bst,btd->bsd"}> : () -> ()
    %cst_25 = arith.constant dense<0.000000e+00> : vector<2x8x8xf32>
    %49 = tpu.matmul %48, %47, %cst_25 {dimension_numbers = #tpu.dot_dimension_numbers<[2], [1], [1], [2], [0, 0, 0, 1, 1, 2], [0], [0]>} : vector<2x8x8xf32>, vector<2x8x8xf32>, vector<2x8x8xf32> -> vector<2x8x8xf32>
    "tpu.trace_stop"() : () -> ()
    %50 = vector.shape_cast %49 : vector<2x8x8xf32> to vector<16x8xf32>
    %51 = vector.extract_strided_slice %13 {offsets = [24, 0], sizes = [8, 32], strides = [1, 1]} : vector<32x32xf32> to vector<8x32xf32>
    %cst_26 = arith.constant dense<0.000000e+00> : vector<16x32xf32>
    %52 = tpu.matmul %50, %51, %cst_26 {dimension_numbers = #tpu.dot_dimension_numbers<[1], [0], [0], [1], [0, 0, 1, 1], [], []>} : vector<16x8xf32>, vector<8x32xf32>, vector<16x32xf32> -> vector<16x32xf32>
    %53 = arith.addf %44, %52 : vector<16x32xf32>
    %54 = vector.broadcast %15 : vector<1x32xf32> to vector<16x32xf32>
    %55 = arith.addf %53, %54 : vector<16x32xf32>
    %56 = arith.addf %0, %55 : vector<16x32xf32>
    %c0_27 = arith.constant 0 : index
    %c0_28 = arith.constant 0 : index
    %c0_29 = arith.constant 0 : index
    %57 = vector.load %arg6[%c0_27, %c0_28, %c0_29] : memref<2x1x32xf32, #tpu.memory_space<vmem>>, vector<1x1x32xf32>
    %58 = vector.shape_cast %57 : vector<1x1x32xf32> to vector<1x32xf32>
    %c0_30 = arith.constant 0 : index
    %c0_31 = arith.constant 0 : index
    %c0_32 = arith.constant 0 : index
    %59 = vector.load %arg7[%c0_30, %c0_31, %c0_32] : memref<2x1x32xf32, #tpu.memory_space<vmem>>, vector<1x1x32xf32>
    %60 = vector.shape_cast %59 : vector<1x1x32xf32> to vector<1x32xf32>
    %cst_33 = arith.constant dense<0.000000e+00> : vector<16xf32>
    %61 = vector.multi_reduction <add>, %56, %cst_33 [1] : vector<16x32xf32> to vector<16xf32>
    %62 = vector.shape_cast %61 : vector<16xf32> to vector<16x1xf32>
    %cst_34 = arith.constant 3.200000e+01 : f32
    %63 = vector.broadcast %cst_34 : f32 to vector<16x1xf32>
    %64 = arith.divf %62, %63 : vector<16x1xf32>
    %65 = vector.broadcast %64 : vector<16x1xf32> to vector<16x32xf32>
    %66 = arith.subf %56, %65 : vector<16x32xf32>
    %67 = arith.mulf %66, %66 : vector<16x32xf32>
    %cst_35 = arith.constant dense<0.000000e+00> : vector<16xf32>
    %68 = vector.multi_reduction <add>, %67, %cst_35 [1] : vector<16x32xf32> to vector<16xf32>
    %69 = vector.shape_cast %68 : vector<16xf32> to vector<16x1xf32>
    %cst_36 = arith.constant 3.200000e+01 : f32
    %70 = vector.broadcast %cst_36 : f32 to vector<16x1xf32>
    %71 = arith.divf %69, %70 : vector<16x1xf32>
    %cst_37 = arith.constant 9.99999974E-6 : f32
    %72 = vector.broadcast %cst_37 : f32 to vector<16x1xf32>
    %73 = arith.addf %71, %72 : vector<16x1xf32>
    %74 = math.rsqrt %73 : vector<16x1xf32>
    %75 = vector.broadcast %74 : vector<16x1xf32> to vector<16x32xf32>
    %76 = arith.mulf %66, %75 : vector<16x32xf32>
    %77 = vector.broadcast %58 : vector<1x32xf32> to vector<16x32xf32>
    %78 = arith.mulf %76, %77 : vector<16x32xf32>
    %79 = vector.broadcast %60 : vector<1x32xf32> to vector<16x32xf32>
    %80 = arith.addf %78, %79 : vector<16x32xf32>
    %c0_38 = arith.constant 0 : index
    %c0_39 = arith.constant 0 : index
    %c0_40 = arith.constant 0 : index
    %81 = vector.load %arg8[%c0_38, %c0_39, %c0_40] : memref<2x32x32xf32, #tpu.memory_space<vmem>>, vector<1x32x32xf32>
    %82 = vector.shape_cast %81 : vector<1x32x32xf32> to vector<32x32xf32>
    %cst_41 = arith.constant dense<0.000000e+00> : vector<16x32xf32>
    %83 = tpu.matmul %80, %82, %cst_41 {dimension_numbers = #tpu.dot_dimension_numbers<[1], [0], [0], [1], [0, 0, 1, 1], [], []>} : vector<16x32xf32>, vector<32x32xf32>, vector<16x32xf32> -> vector<16x32xf32>
    %c0_42 = arith.constant 0 : index
    %c0_43 = arith.constant 0 : index
    %c0_44 = arith.constant 0 : index
    %84 = vector.load %arg9[%c0_42, %c0_43, %c0_44] : memref<2x1x32xf32, #tpu.memory_space<vmem>>, vector<1x1x32xf32>
    %85 = vector.shape_cast %84 : vector<1x1x32xf32> to vector<1x32xf32>
    %86 = vector.broadcast %85 : vector<1x32xf32> to vector<16x32xf32>
    %87 = arith.addf %83, %86 : vector<16x32xf32>
    %c0_45 = arith.constant 0 : index
    %c0_46 = arith.constant 0 : index
    %c0_47 = arith.constant 0 : index
    %88 = vector.load %arg10[%c0_45, %c0_46, %c0_47] : memref<2x32x64xf32, #tpu.memory_space<vmem>>, vector<1x32x64xf32>
    %89 = vector.shape_cast %88 : vector<1x32x64xf32> to vector<32x64xf32>
    %cst_48 = arith.constant dense<0.000000e+00> : vector<32x64xf32>
    %90 = tpu.matmul %1, %89, %cst_48 {dimension_numbers = #tpu.dot_dimension_numbers<[1], [0], [0], [1], [0, 0, 1, 1], [], []>} : vector<32x32xf32>, vector<32x64xf32>, vector<32x64xf32> -> vector<32x64xf32>
    %c0_49 = arith.constant 0 : index
    %c0_50 = arith.constant 0 : index
    %c0_51 = arith.constant 0 : index
    %91 = vector.load %arg11[%c0_49, %c0_50, %c0_51] : memref<2x1x64xf32, #tpu.memory_space<vmem>>, vector<1x1x64xf32>
    %92 = vector.shape_cast %91 : vector<1x1x64xf32> to vector<1x64xf32>
    %93 = vector.broadcast %92 : vector<1x64xf32> to vector<32x64xf32>
    %94 = arith.addf %90, %93 : vector<32x64xf32>
    %95 = vector.extract_strided_slice %94 {offsets = [0, 0], sizes = [32, 32], strides = [1, 1]} : vector<32x64xf32> to vector<32x32xf32>
    %96 = vector.extract_strided_slice %94 {offsets = [0, 32], sizes = [32, 32], strides = [1, 1]} : vector<32x64xf32> to vector<32x32xf32>
    %c0_52 = arith.constant 0 : index
    %c0_53 = arith.constant 0 : index
    %c0_54 = arith.constant 0 : index
    %97 = vector.load %arg12[%c0_52, %c0_53, %c0_54] : memref<2x32x32xf32, #tpu.memory_space<vmem>>, vector<1x32x32xf32>
    %98 = vector.shape_cast %97 : vector<1x32x32xf32> to vector<32x32xf32>
    %c0_55 = arith.constant 0 : index
    %c0_56 = arith.constant 0 : index
    %c0_57 = arith.constant 0 : index
    %99 = vector.load %arg13[%c0_55, %c0_56, %c0_57] : memref<2x1x32xf32, #tpu.memory_space<vmem>>, vector<1x1x32xf32>
    %100 = vector.shape_cast %99 : vector<1x1x32xf32> to vector<1x32xf32>
    %101 = vector.shape_cast %87 : vector<16x32xf32> to vector<2x8x32xf32>
    %102 = vector.shape_cast %95 : vector<32x32xf32> to vector<2x16x32xf32>
    %103 = vector.shape_cast %96 : vector<32x32xf32> to vector<2x16x32xf32>
    %104 = vector.extract_strided_slice %101 {offsets = [0, 0, 0], sizes = [2, 8, 8], strides = [1, 1, 1]} : vector<2x8x32xf32> to vector<2x8x8xf32>
    %105 = vector.extract_strided_slice %102 {offsets = [0, 0, 0], sizes = [2, 16, 8], strides = [1, 1, 1]} : vector<2x16x32xf32> to vector<2x16x8xf32>
    %106 = vector.extract_strided_slice %103 {offsets = [0, 0, 0], sizes = [2, 16, 8], strides = [1, 1, 1]} : vector<2x16x32xf32> to vector<2x16x8xf32>
    "tpu.trace_start"() <{level = 10 : i32, message = "bsd,btd->bst"}> : () -> ()
    %cst_58 = arith.constant dense<0.000000e+00> : vector<2x8x16xf32>
    %107 = tpu.matmul %104, %105, %cst_58 {dimension_numbers = #tpu.dot_dimension_numbers<[2], [2], [1], [1], [0, 0, 0, 1, 1, 1], [0], [0]>} : vector<2x8x8xf32>, vector<2x16x8xf32>, vector<2x8x16xf32> -> vector<2x8x16xf32>
    "tpu.trace_stop"() : () -> ()
    "tpu.trace_start"() <{level = 10 : i32, message = "bst,btd->bsd"}> : () -> ()
    %cst_59 = arith.constant dense<0.000000e+00> : vector<2x8x8xf32>
    %108 = tpu.matmul %107, %106, %cst_59 {dimension_numbers = #tpu.dot_dimension_numbers<[2], [1], [1], [2], [0, 0, 0, 1, 1, 2], [0], [0]>} : vector<2x8x16xf32>, vector<2x16x8xf32>, vector<2x8x8xf32> -> vector<2x8x8xf32>
    "tpu.trace_stop"() : () -> ()
    %109 = vector.shape_cast %108 : vector<2x8x8xf32> to vector<16x8xf32>
    %110 = vector.extract_strided_slice %98 {offsets = [0, 0], sizes = [8, 32], strides = [1, 1]} : vector<32x32xf32> to vector<8x32xf32>
    %cst_60 = arith.constant dense<0.000000e+00> : vector<16x32xf32>
    %111 = tpu.matmul %109, %110, %cst_60 {dimension_numbers = #tpu.dot_dimension_numbers<[1], [0], [0], [1], [0, 0, 1, 1], [], []>} : vector<16x8xf32>, vector<8x32xf32>, vector<16x32xf32> -> vector<16x32xf32>
    %112 = vector.extract_strided_slice %101 {offsets = [0, 0, 8], sizes = [2, 8, 8], strides = [1, 1, 1]} : vector<2x8x32xf32> to vector<2x8x8xf32>
    %113 = vector.extract_strided_slice %102 {offsets = [0, 0, 8], sizes = [2, 16, 8], strides = [1, 1, 1]} : vector<2x16x32xf32> to vector<2x16x8xf32>
    %114 = vector.extract_strided_slice %103 {offsets = [0, 0, 8], sizes = [2, 16, 8], strides = [1, 1, 1]} : vector<2x16x32xf32> to vector<2x16x8xf32>
    "tpu.trace_start"() <{level = 10 : i32, message = "bsd,btd->bst"}> : () -> ()
    %cst_61 = arith.constant dense<0.000000e+00> : vector<2x8x16xf32>
    %115 = tpu.matmul %112, %113, %cst_61 {dimension_numbers = #tpu.dot_dimension_numbers<[2], [2], [1], [1], [0, 0, 0, 1, 1, 1], [0], [0]>} : vector<2x8x8xf32>, vector<2x16x8xf32>, vector<2x8x16xf32> -> vector<2x8x16xf32>
    "tpu.trace_stop"() : () -> ()
    "tpu.trace_start"() <{level = 10 : i32, message = "bst,btd->bsd"}> : () -> ()
    %cst_62 = arith.constant dense<0.000000e+00> : vector<2x8x8xf32>
    %116 = tpu.matmul %115, %114, %cst_62 {dimension_numbers = #tpu.dot_dimension_numbers<[2], [1], [1], [2], [0, 0, 0, 1, 1, 2], [0], [0]>} : vector<2x8x16xf32>, vector<2x16x8xf32>, vector<2x8x8xf32> -> vector<2x8x8xf32>
    "tpu.trace_stop"() : () -> ()
    %117 = vector.shape_cast %116 : vector<2x8x8xf32> to vector<16x8xf32>
    %118 = vector.extract_strided_slice %98 {offsets = [8, 0], sizes = [8, 32], strides = [1, 1]} : vector<32x32xf32> to vector<8x32xf32>
    %cst_63 = arith.constant dense<0.000000e+00> : vector<16x32xf32>
    %119 = tpu.matmul %117, %118, %cst_63 {dimension_numbers = #tpu.dot_dimension_numbers<[1], [0], [0], [1], [0, 0, 1, 1], [], []>} : vector<16x8xf32>, vector<8x32xf32>, vector<16x32xf32> -> vector<16x32xf32>
    %120 = arith.addf %111, %119 : vector<16x32xf32>
    %121 = vector.extract_strided_slice %101 {offsets = [0, 0, 16], sizes = [2, 8, 8], strides = [1, 1, 1]} : vector<2x8x32xf32> to vector<2x8x8xf32>
    %122 = vector.extract_strided_slice %102 {offsets = [0, 0, 16], sizes = [2, 16, 8], strides = [1, 1, 1]} : vector<2x16x32xf32> to vector<2x16x8xf32>
    %123 = vector.extract_strided_slice %103 {offsets = [0, 0, 16], sizes = [2, 16, 8], strides = [1, 1, 1]} : vector<2x16x32xf32> to vector<2x16x8xf32>
    "tpu.trace_start"() <{level = 10 : i32, message = "bsd,btd->bst"}> : () -> ()
    %cst_64 = arith.constant dense<0.000000e+00> : vector<2x8x16xf32>
    %124 = tpu.matmul %121, %122, %cst_64 {dimension_numbers = #tpu.dot_dimension_numbers<[2], [2], [1], [1], [0, 0, 0, 1, 1, 1], [0], [0]>} : vector<2x8x8xf32>, vector<2x16x8xf32>, vector<2x8x16xf32> -> vector<2x8x16xf32>
    "tpu.trace_stop"() : () -> ()
    "tpu.trace_start"() <{level = 10 : i32, message = "bst,btd->bsd"}> : () -> ()
    %cst_65 = arith.constant dense<0.000000e+00> : vector<2x8x8xf32>
    %125 = tpu.matmul %124, %123, %cst_65 {dimension_numbers = #tpu.dot_dimension_numbers<[2], [1], [1], [2], [0, 0, 0, 1, 1, 2], [0], [0]>} : vector<2x8x16xf32>, vector<2x16x8xf32>, vector<2x8x8xf32> -> vector<2x8x8xf32>
    "tpu.trace_stop"() : () -> ()
    %126 = vector.shape_cast %125 : vector<2x8x8xf32> to vector<16x8xf32>
    %127 = vector.extract_strided_slice %98 {offsets = [16, 0], sizes = [8, 32], strides = [1, 1]} : vector<32x32xf32> to vector<8x32xf32>
    %cst_66 = arith.constant dense<0.000000e+00> : vector<16x32xf32>
    %128 = tpu.matmul %126, %127, %cst_66 {dimension_numbers = #tpu.dot_dimension_numbers<[1], [0], [0], [1], [0, 0, 1, 1], [], []>} : vector<16x8xf32>, vector<8x32xf32>, vector<16x32xf32> -> vector<16x32xf32>
    %129 = arith.addf %120, %128 : vector<16x32xf32>
    %130 = vector.extract_strided_slice %101 {offsets = [0, 0, 24], sizes = [2, 8, 8], strides = [1, 1, 1]} : vector<2x8x32xf32> to vector<2x8x8xf32>
    %131 = vector.extract_strided_slice %102 {offsets = [0, 0, 24], sizes = [2, 16, 8], strides = [1, 1, 1]} : vector<2x16x32xf32> to vector<2x16x8xf32>
    %132 = vector.extract_strided_slice %103 {offsets = [0, 0, 24], sizes = [2, 16, 8], strides = [1, 1, 1]} : vector<2x16x32xf32> to vector<2x16x8xf32>
    "tpu.trace_start"() <{level = 10 : i32, message = "bsd,btd->bst"}> : () -> ()
    %cst_67 = arith.constant dense<0.000000e+00> : vector<2x8x16xf32>
    %133 = tpu.matmul %130, %131, %cst_67 {dimension_numbers = #tpu.dot_dimension_numbers<[2], [2], [1], [1], [0, 0, 0, 1, 1, 1], [0], [0]>} : vector<2x8x8xf32>, vector<2x16x8xf32>, vector<2x8x16xf32> -> vector<2x8x16xf32>
    "tpu.trace_stop"() : () -> ()
    "tpu.trace_start"() <{level = 10 : i32, message = "bst,btd->bsd"}> : () -> ()
    %cst_68 = arith.constant dense<0.000000e+00> : vector<2x8x8xf32>
    %134 = tpu.matmul %133, %132, %cst_68 {dimension_numbers = #tpu.dot_dimension_numbers<[2], [1], [1], [2], [0, 0, 0, 1, 1, 2], [0], [0]>} : vector<2x8x16xf32>, vector<2x16x8xf32>, vector<2x8x8xf32> -> vector<2x8x8xf32>
    "tpu.trace_stop"() : () -> ()
    %135 = vector.shape_cast %134 : vector<2x8x8xf32> to vector<16x8xf32>
    %136 = vector.extract_strided_slice %98 {offsets = [24, 0], sizes = [8, 32], strides = [1, 1]} : vector<32x32xf32> to vector<8x32xf32>
    %cst_69 = arith.constant dense<0.000000e+00> : vector<16x32xf32>
    %137 = tpu.matmul %135, %136, %cst_69 {dimension_numbers = #tpu.dot_dimension_numbers<[1], [0], [0], [1], [0, 0, 1, 1], [], []>} : vector<16x8xf32>, vector<8x32xf32>, vector<16x32xf32> -> vector<16x32xf32>
    %138 = arith.addf %129, %137 : vector<16x32xf32>
    %139 = vector.broadcast %100 : vector<1x32xf32> to vector<16x32xf32>
    %140 = arith.addf %138, %139 : vector<16x32xf32>
    %141 = arith.addf %80, %140 : vector<16x32xf32>
    %c0_70 = arith.constant 0 : index
    %c0_71 = arith.constant 0 : index
    %c0_72 = arith.constant 0 : index
    %142 = vector.load %arg14[%c0_70, %c0_71, %c0_72] : memref<2x1x32xf32, #tpu.memory_space<vmem>>, vector<1x1x32xf32>
    %143 = vector.shape_cast %142 : vector<1x1x32xf32> to vector<1x32xf32>
    %c0_73 = arith.constant 0 : index
    %c0_74 = arith.constant 0 : index
    %c0_75 = arith.constant 0 : index
    %144 = vector.load %arg15[%c0_73, %c0_74, %c0_75] : memref<2x1x32xf32, #tpu.memory_space<vmem>>, vector<1x1x32xf32>
    %145 = vector.shape_cast %144 : vector<1x1x32xf32> to vector<1x32xf32>
    %cst_76 = arith.constant dense<0.000000e+00> : vector<16xf32>
    %146 = vector.multi_reduction <add>, %141, %cst_76 [1] : vector<16x32xf32> to vector<16xf32>
    %147 = vector.shape_cast %146 : vector<16xf32> to vector<16x1xf32>
    %cst_77 = arith.constant 3.200000e+01 : f32
    %148 = vector.broadcast %cst_77 : f32 to vector<16x1xf32>
    %149 = arith.divf %147, %148 : vector<16x1xf32>
    %150 = vector.broadcast %149 : vector<16x1xf32> to vector<16x32xf32>
    %151 = arith.subf %141, %150 : vector<16x32xf32>
    %152 = arith.mulf %151, %151 : vector<16x32xf32>
    %cst_78 = arith.constant dense<0.000000e+00> : vector<16xf32>
    %153 = vector.multi_reduction <add>, %152, %cst_78 [1] : vector<16x32xf32> to vector<16xf32>
    %154 = vector.shape_cast %153 : vector<16xf32> to vector<16x1xf32>
    %cst_79 = arith.constant 3.200000e+01 : f32
    %155 = vector.broadcast %cst_79 : f32 to vector<16x1xf32>
    %156 = arith.divf %154, %155 : vector<16x1xf32>
    %cst_80 = arith.constant 9.99999974E-6 : f32
    %157 = vector.broadcast %cst_80 : f32 to vector<16x1xf32>
    %158 = arith.addf %156, %157 : vector<16x1xf32>
    %159 = math.rsqrt %158 : vector<16x1xf32>
    %160 = vector.broadcast %159 : vector<16x1xf32> to vector<16x32xf32>
    %161 = arith.mulf %151, %160 : vector<16x32xf32>
    %162 = vector.broadcast %143 : vector<1x32xf32> to vector<16x32xf32>
    %163 = arith.mulf %161, %162 : vector<16x32xf32>
    %164 = vector.broadcast %145 : vector<1x32xf32> to vector<16x32xf32>
    %165 = arith.addf %163, %164 : vector<16x32xf32>
    %c0_81 = arith.constant 0 : index
    %c0_82 = arith.constant 0 : index
    %c0_83 = arith.constant 0 : index
    %166 = vector.load %arg16[%c0_81, %c0_82, %c0_83] : memref<2x32x128xf32, #tpu.memory_space<vmem>>, vector<1x32x128xf32>
    %167 = vector.shape_cast %166 : vector<1x32x128xf32> to vector<32x128xf32>
    %cst_84 = arith.constant dense<0.000000e+00> : vector<16x128xf32>
    %168 = tpu.matmul %165, %167, %cst_84 {dimension_numbers = #tpu.dot_dimension_numbers<[1], [0], [0], [1], [0, 0, 1, 1], [], []>} : vector<16x32xf32>, vector<32x128xf32>, vector<16x128xf32> -> vector<16x128xf32>
    %c0_85 = arith.constant 0 : index
    %c0_86 = arith.constant 0 : index
    %c0_87 = arith.constant 0 : index
    %169 = vector.load %arg17[%c0_85, %c0_86, %c0_87] : memref<2x1x128xf32, #tpu.memory_space<vmem>>, vector<1x1x128xf32>
    %170 = vector.shape_cast %169 : vector<1x1x128xf32> to vector<1x128xf32>
    %171 = vector.broadcast %170 : vector<1x128xf32> to vector<16x128xf32>
    %172 = arith.addf %168, %171 : vector<16x128xf32>
    %cst_88 = arith.constant 0.000000e+00 : f32
    %173 = vector.broadcast %cst_88 : f32 to vector<16x128xf32>
    %174 = arith.maximumf %172, %173 : vector<16x128xf32>
    %c0_89 = arith.constant 0 : index
    %c0_90 = arith.constant 0 : index
    %c0_91 = arith.constant 0 : index
    %175 = vector.load %arg18[%c0_89, %c0_90, %c0_91] : memref<2x128x32xf32, #tpu.memory_space<vmem>>, vector<1x128x32xf32>
    %176 = vector.shape_cast %175 : vector<1x128x32xf32> to vector<128x32xf32>
    %cst_92 = arith.constant dense<0.000000e+00> : vector<16x32xf32>
    %177 = tpu.matmul %174, %176, %cst_92 {dimension_numbers = #tpu.dot_dimension_numbers<[1], [0], [0], [1], [0, 0, 1, 1], [], []>} : vector<16x128xf32>, vector<128x32xf32>, vector<16x32xf32> -> vector<16x32xf32>
    %c0_93 = arith.constant 0 : index
    %c0_94 = arith.constant 0 : index
    %c0_95 = arith.constant 0 : index
    %178 = vector.load %arg19[%c0_93, %c0_94, %c0_95] : memref<2x1x32xf32, #tpu.memory_space<vmem>>, vector<1x1x32xf32>
    %179 = vector.shape_cast %178 : vector<1x1x32xf32> to vector<1x32xf32>
    %180 = vector.broadcast %179 : vector<1x32xf32> to vector<16x32xf32>
    %181 = arith.addf %177, %180 : vector<16x32xf32>
    %182 = arith.addf %165, %181 : vector<16x32xf32>
    %c0_96 = arith.constant 0 : index
    %c0_97 = arith.constant 0 : index
    %c0_98 = arith.constant 0 : index
    %183 = vector.load %arg20[%c0_96, %c0_97, %c0_98] : memref<2x1x32xf32, #tpu.memory_space<vmem>>, vector<1x1x32xf32>
    %184 = vector.shape_cast %183 : vector<1x1x32xf32> to vector<1x32xf32>
    %c0_99 = arith.constant 0 : index
    %c0_100 = arith.constant 0 : index
    %c0_101 = arith.constant 0 : index
    %185 = vector.load %arg21[%c0_99, %c0_100, %c0_101] : memref<2x1x32xf32, #tpu.memory_space<vmem>>, vector<1x1x32xf32>
    %186 = vector.shape_cast %185 : vector<1x1x32xf32> to vector<1x32xf32>
    %cst_102 = arith.constant dense<0.000000e+00> : vector<16xf32>
    %187 = vector.multi_reduction <add>, %182, %cst_102 [1] : vector<16x32xf32> to vector<16xf32>
    %188 = vector.shape_cast %187 : vector<16xf32> to vector<16x1xf32>
    %cst_103 = arith.constant 3.200000e+01 : f32
    %189 = vector.broadcast %cst_103 : f32 to vector<16x1xf32>
    %190 = arith.divf %188, %189 : vector<16x1xf32>
    %191 = vector.broadcast %190 : vector<16x1xf32> to vector<16x32xf32>
    %192 = arith.subf %182, %191 : vector<16x32xf32>
    %193 = arith.mulf %192, %192 : vector<16x32xf32>
    %cst_104 = arith.constant dense<0.000000e+00> : vector<16xf32>
    %194 = vector.multi_reduction <add>, %193, %cst_104 [1] : vector<16x32xf32> to vector<16xf32>
    %195 = vector.shape_cast %194 : vector<16xf32> to vector<16x1xf32>
    %cst_105 = arith.constant 3.200000e+01 : f32
    %196 = vector.broadcast %cst_105 : f32 to vector<16x1xf32>
    %197 = arith.divf %195, %196 : vector<16x1xf32>
    %cst_106 = arith.constant 9.99999974E-6 : f32
    %198 = vector.broadcast %cst_106 : f32 to vector<16x1xf32>
    %199 = arith.addf %197, %198 : vector<16x1xf32>
    %200 = math.rsqrt %199 : vector<16x1xf32>
    %201 = vector.broadcast %200 : vector<16x1xf32> to vector<16x32xf32>
    %202 = arith.mulf %192, %201 : vector<16x32xf32>
    %203 = vector.broadcast %184 : vector<1x32xf32> to vector<16x32xf32>
    %204 = arith.mulf %202, %203 : vector<16x32xf32>
    %205 = vector.broadcast %186 : vector<1x32xf32> to vector<16x32xf32>
    %206 = arith.addf %204, %205 : vector<16x32xf32>
    %c1 = arith.constant 1 : index
    %c0_107 = arith.constant 0 : index
    %c0_108 = arith.constant 0 : index
    %207 = vector.load %arg2[%c1, %c0_107, %c0_108] : memref<2x32x96xf32, #tpu.memory_space<vmem>>, vector<1x32x96xf32>
    %208 = vector.shape_cast %207 : vector<1x32x96xf32> to vector<32x96xf32>
    %cst_109 = arith.constant dense<0.000000e+00> : vector<16x96xf32>
    %209 = tpu.matmul %206, %208, %cst_109 {dimension_numbers = #tpu.dot_dimension_numbers<[1], [0], [0], [1], [0, 0, 1, 1], [], []>} : vector<16x32xf32>, vector<32x96xf32>, vector<16x96xf32> -> vector<16x96xf32>
    %c1_110 = arith.constant 1 : index
    %c0_111 = arith.constant 0 : index
    %c0_112 = arith.constant 0 : index
    %210 = vector.load %arg3[%c1_110, %c0_111, %c0_112] : memref<2x1x96xf32, #tpu.memory_space<vmem>>, vector<1x1x96xf32>
    %211 = vector.shape_cast %210 : vector<1x1x96xf32> to vector<1x96xf32>
    %212 = vector.broadcast %211 : vector<1x96xf32> to vector<16x96xf32>
    %213 = arith.addf %209, %212 : vector<16x96xf32>
    %214 = vector.extract_strided_slice %213 {offsets = [0, 0], sizes = [16, 32], strides = [1, 1]} : vector<16x96xf32> to vector<16x32xf32>
    %215 = vector.extract_strided_slice %213 {offsets = [0, 32], sizes = [16, 32], strides = [1, 1]} : vector<16x96xf32> to vector<16x32xf32>
    %216 = vector.extract_strided_slice %213 {offsets = [0, 64], sizes = [16, 32], strides = [1, 1]} : vector<16x96xf32> to vector<16x32xf32>
    %c1_113 = arith.constant 1 : index
    %c0_114 = arith.constant 0 : index
    %c0_115 = arith.constant 0 : index
    %217 = vector.load %arg4[%c1_113, %c0_114, %c0_115] : memref<2x32x32xf32, #tpu.memory_space<vmem>>, vector<1x32x32xf32>
    %218 = vector.shape_cast %217 : vector<1x32x32xf32> to vector<32x32xf32>
    %c1_116 = arith.constant 1 : index
    %c0_117 = arith.constant 0 : index
    %c0_118 = arith.constant 0 : index
    %219 = vector.load %arg5[%c1_116, %c0_117, %c0_118] : memref<2x1x32xf32, #tpu.memory_space<vmem>>, vector<1x1x32xf32>
    %220 = vector.shape_cast %219 : vector<1x1x32xf32> to vector<1x32xf32>
    %221 = vector.shape_cast %214 : vector<16x32xf32> to vector<2x8x32xf32>
    %222 = vector.shape_cast %215 : vector<16x32xf32> to vector<2x8x32xf32>
    %223 = vector.shape_cast %216 : vector<16x32xf32> to vector<2x8x32xf32>
    %224 = vector.extract_strided_slice %221 {offsets = [0, 0, 0], sizes = [2, 8, 8], strides = [1, 1, 1]} : vector<2x8x32xf32> to vector<2x8x8xf32>
    %225 = vector.extract_strided_slice %222 {offsets = [0, 0, 0], sizes = [2, 8, 8], strides = [1, 1, 1]} : vector<2x8x32xf32> to vector<2x8x8xf32>
    %226 = vector.extract_strided_slice %223 {offsets = [0, 0, 0], sizes = [2, 8, 8], strides = [1, 1, 1]} : vector<2x8x32xf32> to vector<2x8x8xf32>
    "tpu.trace_start"() <{level = 10 : i32, message = "bsd,btd->bst"}> : () -> ()
    %cst_119 = arith.constant dense<0.000000e+00> : vector<2x8x8xf32>
    %227 = tpu.matmul %224, %225, %cst_119 {dimension_numbers = #tpu.dot_dimension_numbers<[2], [2], [1], [1], [0, 0, 0, 1, 1, 1], [0], [0]>} : vector<2x8x8xf32>, vector<2x8x8xf32>, vector<2x8x8xf32> -> vector<2x8x8xf32>
    "tpu.trace_stop"() : () -> ()
    "tpu.trace_start"() <{level = 10 : i32, message = "bst,btd->bsd"}> : () -> ()
    %cst_120 = arith.constant dense<0.000000e+00> : vector<2x8x8xf32>
    %228 = tpu.matmul %227, %226, %cst_120 {dimension_numbers = #tpu.dot_dimension_numbers<[2], [1], [1], [2], [0, 0, 0, 1, 1, 2], [0], [0]>} : vector<2x8x8xf32>, vector<2x8x8xf32>, vector<2x8x8xf32> -> vector<2x8x8xf32>
    "tpu.trace_stop"() : () -> ()
    %229 = vector.shape_cast %228 : vector<2x8x8xf32> to vector<16x8xf32>
    %230 = vector.extract_strided_slice %218 {offsets = [0, 0], sizes = [8, 32], strides = [1, 1]} : vector<32x32xf32> to vector<8x32xf32>
    %cst_121 = arith.constant dense<0.000000e+00> : vector<16x32xf32>
    %231 = tpu.matmul %229, %230, %cst_121 {dimension_numbers = #tpu.dot_dimension_numbers<[1], [0], [0], [1], [0, 0, 1, 1], [], []>} : vector<16x8xf32>, vector<8x32xf32>, vector<16x32xf32> -> vector<16x32xf32>
    %232 = vector.extract_strided_slice %221 {offsets = [0, 0, 8], sizes = [2, 8, 8], strides = [1, 1, 1]} : vector<2x8x32xf32> to vector<2x8x8xf32>
    %233 = vector.extract_strided_slice %222 {offsets = [0, 0, 8], sizes = [2, 8, 8], strides = [1, 1, 1]} : vector<2x8x32xf32> to vector<2x8x8xf32>
    %234 = vector.extract_strided_slice %223 {offsets = [0, 0, 8], sizes = [2, 8, 8], strides = [1, 1, 1]} : vector<2x8x32xf32> to vector<2x8x8xf32>
    "tpu.trace_start"() <{level = 10 : i32, message = "bsd,btd->bst"}> : () -> ()
    %cst_122 = arith.constant dense<0.000000e+00> : vector<2x8x8xf32>
    %235 = tpu.matmul %232, %233, %cst_122 {dimension_numbers = #tpu.dot_dimension_numbers<[2], [2], [1], [1], [0, 0, 0, 1, 1, 1], [0], [0]>} : vector<2x8x8xf32>, vector<2x8x8xf32>, vector<2x8x8xf32> -> vector<2x8x8xf32>
    "tpu.trace_stop"() : () -> ()
    "tpu.trace_start"() <{level = 10 : i32, message = "bst,btd->bsd"}> : () -> ()
    %cst_123 = arith.constant dense<0.000000e+00> : vector<2x8x8xf32>
    %236 = tpu.matmul %235, %234, %cst_123 {dimension_numbers = #tpu.dot_dimension_numbers<[2], [1], [1], [2], [0, 0, 0, 1, 1, 2], [0], [0]>} : vector<2x8x8xf32>, vector<2x8x8xf32>, vector<2x8x8xf32> -> vector<2x8x8xf32>
    "tpu.trace_stop"() : () -> ()
    %237 = vector.shape_cast %236 : vector<2x8x8xf32> to vector<16x8xf32>
    %238 = vector.extract_strided_slice %218 {offsets = [8, 0], sizes = [8, 32], strides = [1, 1]} : vector<32x32xf32> to vector<8x32xf32>
    %cst_124 = arith.constant dense<0.000000e+00> : vector<16x32xf32>
    %239 = tpu.matmul %237, %238, %cst_124 {dimension_numbers = #tpu.dot_dimension_numbers<[1], [0], [0], [1], [0, 0, 1, 1], [], []>} : vector<16x8xf32>, vector<8x32xf32>, vector<16x32xf32> -> vector<16x32xf32>
    %240 = arith.addf %231, %239 : vector<16x32xf32>
    %241 = vector.extract_strided_slice %221 {offsets = [0, 0, 16], sizes = [2, 8, 8], strides = [1, 1, 1]} : vector<2x8x32xf32> to vector<2x8x8xf32>
    %242 = vector.extract_strided_slice %222 {offsets = [0, 0, 16], sizes = [2, 8, 8], strides = [1, 1, 1]} : vector<2x8x32xf32> to vector<2x8x8xf32>
    %243 = vector.extract_strided_slice %223 {offsets = [0, 0, 16], sizes = [2, 8, 8], strides = [1, 1, 1]} : vector<2x8x32xf32> to vector<2x8x8xf32>
    "tpu.trace_start"() <{level = 10 : i32, message = "bsd,btd->bst"}> : () -> ()
    %cst_125 = arith.constant dense<0.000000e+00> : vector<2x8x8xf32>
    %244 = tpu.matmul %241, %242, %cst_125 {dimension_numbers = #tpu.dot_dimension_numbers<[2], [2], [1], [1], [0, 0, 0, 1, 1, 1], [0], [0]>} : vector<2x8x8xf32>, vector<2x8x8xf32>, vector<2x8x8xf32> -> vector<2x8x8xf32>
    "tpu.trace_stop"() : () -> ()
    "tpu.trace_start"() <{level = 10 : i32, message = "bst,btd->bsd"}> : () -> ()
    %cst_126 = arith.constant dense<0.000000e+00> : vector<2x8x8xf32>
    %245 = tpu.matmul %244, %243, %cst_126 {dimension_numbers = #tpu.dot_dimension_numbers<[2], [1], [1], [2], [0, 0, 0, 1, 1, 2], [0], [0]>} : vector<2x8x8xf32>, vector<2x8x8xf32>, vector<2x8x8xf32> -> vector<2x8x8xf32>
    "tpu.trace_stop"() : () -> ()
    %246 = vector.shape_cast %245 : vector<2x8x8xf32> to vector<16x8xf32>
    %247 = vector.extract_strided_slice %218 {offsets = [16, 0], sizes = [8, 32], strides = [1, 1]} : vector<32x32xf32> to vector<8x32xf32>
    %cst_127 = arith.constant dense<0.000000e+00> : vector<16x32xf32>
    %248 = tpu.matmul %246, %247, %cst_127 {dimension_numbers = #tpu.dot_dimension_numbers<[1], [0], [0], [1], [0, 0, 1, 1], [], []>} : vector<16x8xf32>, vector<8x32xf32>, vector<16x32xf32> -> vector<16x32xf32>
    %249 = arith.addf %240, %248 : vector<16x32xf32>
    %250 = vector.extract_strided_slice %221 {offsets = [0, 0, 24], sizes = [2, 8, 8], strides = [1, 1, 1]} : vector<2x8x32xf32> to vector<2x8x8xf32>
    %251 = vector.extract_strided_slice %222 {offsets = [0, 0, 24], sizes = [2, 8, 8], strides = [1, 1, 1]} : vector<2x8x32xf32> to vector<2x8x8xf32>
    %252 = vector.extract_strided_slice %223 {offsets = [0, 0, 24], sizes = [2, 8, 8], strides = [1, 1, 1]} : vector<2x8x32xf32> to vector<2x8x8xf32>
    "tpu.trace_start"() <{level = 10 : i32, message = "bsd,btd->bst"}> : () -> ()
    %cst_128 = arith.constant dense<0.000000e+00> : vector<2x8x8xf32>
    %253 = tpu.matmul %250, %251, %cst_128 {dimension_numbers = #tpu.dot_dimension_numbers<[2], [2], [1], [1], [0, 0, 0, 1, 1, 1], [0], [0]>} : vector<2x8x8xf32>, vector<2x8x8xf32>, vector<2x8x8xf32> -> vector<2x8x8xf32>
    "tpu.trace_stop"() : () -> ()
    "tpu.trace_start"() <{level = 10 : i32, message = "bst,btd->bsd"}> : () -> ()
    %cst_129 = arith.constant dense<0.000000e+00> : vector<2x8x8xf32>
    %254 = tpu.matmul %253, %252, %cst_129 {dimension_numbers = #tpu.dot_dimension_numbers<[2], [1], [1], [2], [0, 0, 0, 1, 1, 2], [0], [0]>} : vector<2x8x8xf32>, vector<2x8x8xf32>, vector<2x8x8xf32> -> vector<2x8x8xf32>
    "tpu.trace_stop"() : () -> ()
    %255 = vector.shape_cast %254 : vector<2x8x8xf32> to vector<16x8xf32>
    %256 = vector.extract_strided_slice %218 {offsets = [24, 0], sizes = [8, 32], strides = [1, 1]} : vector<32x32xf32> to vector<8x32xf32>
    %cst_130 = arith.constant dense<0.000000e+00> : vector<16x32xf32>
    %257 = tpu.matmul %255, %256, %cst_130 {dimension_numbers = #tpu.dot_dimension_numbers<[1], [0], [0], [1], [0, 0, 1, 1], [], []>} : vector<16x8xf32>, vector<8x32xf32>, vector<16x32xf32> -> vector<16x32xf32>
    %258 = arith.addf %249, %257 : vector<16x32xf32>
    %259 = vector.broadcast %220 : vector<1x32xf32> to vector<16x32xf32>
    %260 = arith.addf %258, %259 : vector<16x32xf32>
    %261 = arith.addf %206, %260 : vector<16x32xf32>
    %c1_131 = arith.constant 1 : index
    %c0_132 = arith.constant 0 : index
    %c0_133 = arith.constant 0 : index
    %262 = vector.load %arg6[%c1_131, %c0_132, %c0_133] : memref<2x1x32xf32, #tpu.memory_space<vmem>>, vector<1x1x32xf32>
    %263 = vector.shape_cast %262 : vector<1x1x32xf32> to vector<1x32xf32>
    %c1_134 = arith.constant 1 : index
    %c0_135 = arith.constant 0 : index
    %c0_136 = arith.constant 0 : index
    %264 = vector.load %arg7[%c1_134, %c0_135, %c0_136] : memref<2x1x32xf32, #tpu.memory_space<vmem>>, vector<1x1x32xf32>
    %265 = vector.shape_cast %264 : vector<1x1x32xf32> to vector<1x32xf32>
    %cst_137 = arith.constant dense<0.000000e+00> : vector<16xf32>
    %266 = vector.multi_reduction <add>, %261, %cst_137 [1] : vector<16x32xf32> to vector<16xf32>
    %267 = vector.shape_cast %266 : vector<16xf32> to vector<16x1xf32>
    %cst_138 = arith.constant 3.200000e+01 : f32
    %268 = vector.broadcast %cst_138 : f32 to vector<16x1xf32>
    %269 = arith.divf %267, %268 : vector<16x1xf32>
    %270 = vector.broadcast %269 : vector<16x1xf32> to vector<16x32xf32>
    %271 = arith.subf %261, %270 : vector<16x32xf32>
    %272 = arith.mulf %271, %271 : vector<16x32xf32>
    %cst_139 = arith.constant dense<0.000000e+00> : vector<16xf32>
    %273 = vector.multi_reduction <add>, %272, %cst_139 [1] : vector<16x32xf32> to vector<16xf32>
    %274 = vector.shape_cast %273 : vector<16xf32> to vector<16x1xf32>
    %cst_140 = arith.constant 3.200000e+01 : f32
    %275 = vector.broadcast %cst_140 : f32 to vector<16x1xf32>
    %276 = arith.divf %274, %275 : vector<16x1xf32>
    %cst_141 = arith.constant 9.99999974E-6 : f32
    %277 = vector.broadcast %cst_141 : f32 to vector<16x1xf32>
    %278 = arith.addf %276, %277 : vector<16x1xf32>
    %279 = math.rsqrt %278 : vector<16x1xf32>
    %280 = vector.broadcast %279 : vector<16x1xf32> to vector<16x32xf32>
    %281 = arith.mulf %271, %280 : vector<16x32xf32>
    %282 = vector.broadcast %263 : vector<1x32xf32> to vector<16x32xf32>
    %283 = arith.mulf %281, %282 : vector<16x32xf32>
    %284 = vector.broadcast %265 : vector<1x32xf32> to vector<16x32xf32>
    %285 = arith.addf %283, %284 : vector<16x32xf32>
    %c1_142 = arith.constant 1 : index
    %c0_143 = arith.constant 0 : index
    %c0_144 = arith.constant 0 : index
    %286 = vector.load %arg8[%c1_142, %c0_143, %c0_144] : memref<2x32x32xf32, #tpu.memory_space<vmem>>, vector<1x32x32xf32>
    %287 = vector.shape_cast %286 : vector<1x32x32xf32> to vector<32x32xf32>
    %cst_145 = arith.constant dense<0.000000e+00> : vector<16x32xf32>
    %288 = tpu.matmul %285, %287, %cst_145 {dimension_numbers = #tpu.dot_dimension_numbers<[1], [0], [0], [1], [0, 0, 1, 1], [], []>} : vector<16x32xf32>, vector<32x32xf32>, vector<16x32xf32> -> vector<16x32xf32>
    %c1_146 = arith.constant 1 : index
    %c0_147 = arith.constant 0 : index
    %c0_148 = arith.constant 0 : index
    %289 = vector.load %arg9[%c1_146, %c0_147, %c0_148] : memref<2x1x32xf32, #tpu.memory_space<vmem>>, vector<1x1x32xf32>
    %290 = vector.shape_cast %289 : vector<1x1x32xf32> to vector<1x32xf32>
    %291 = vector.broadcast %290 : vector<1x32xf32> to vector<16x32xf32>
    %292 = arith.addf %288, %291 : vector<16x32xf32>
    %c1_149 = arith.constant 1 : index
    %c0_150 = arith.constant 0 : index
    %c0_151 = arith.constant 0 : index
    %293 = vector.load %arg10[%c1_149, %c0_150, %c0_151] : memref<2x32x64xf32, #tpu.memory_space<vmem>>, vector<1x32x64xf32>
    %294 = vector.shape_cast %293 : vector<1x32x64xf32> to vector<32x64xf32>
    %cst_152 = arith.constant dense<0.000000e+00> : vector<32x64xf32>
    %295 = tpu.matmul %1, %294, %cst_152 {dimension_numbers = #tpu.dot_dimension_numbers<[1], [0], [0], [1], [0, 0, 1, 1], [], []>} : vector<32x32xf32>, vector<32x64xf32>, vector<32x64xf32> -> vector<32x64xf32>
    %c1_153 = arith.constant 1 : index
    %c0_154 = arith.constant 0 : index
    %c0_155 = arith.constant 0 : index
    %296 = vector.load %arg11[%c1_153, %c0_154, %c0_155] : memref<2x1x64xf32, #tpu.memory_space<vmem>>, vector<1x1x64xf32>
    %297 = vector.shape_cast %296 : vector<1x1x64xf32> to vector<1x64xf32>
    %298 = vector.broadcast %297 : vector<1x64xf32> to vector<32x64xf32>
    %299 = arith.addf %295, %298 : vector<32x64xf32>
    %300 = vector.extract_strided_slice %299 {offsets = [0, 0], sizes = [32, 32], strides = [1, 1]} : vector<32x64xf32> to vector<32x32xf32>
    %301 = vector.extract_strided_slice %299 {offsets = [0, 32], sizes = [32, 32], strides = [1, 1]} : vector<32x64xf32> to vector<32x32xf32>
    %c1_156 = arith.constant 1 : index
    %c0_157 = arith.constant 0 : index
    %c0_158 = arith.constant 0 : index
    %302 = vector.load %arg12[%c1_156, %c0_157, %c0_158] : memref<2x32x32xf32, #tpu.memory_space<vmem>>, vector<1x32x32xf32>
    %303 = vector.shape_cast %302 : vector<1x32x32xf32> to vector<32x32xf32>
    %c1_159 = arith.constant 1 : index
    %c0_160 = arith.constant 0 : index
    %c0_161 = arith.constant 0 : index
    %304 = vector.load %arg13[%c1_159, %c0_160, %c0_161] : memref<2x1x32xf32, #tpu.memory_space<vmem>>, vector<1x1x32xf32>
    %305 = vector.shape_cast %304 : vector<1x1x32xf32> to vector<1x32xf32>
    %306 = vector.shape_cast %292 : vector<16x32xf32> to vector<2x8x32xf32>
    %307 = vector.shape_cast %300 : vector<32x32xf32> to vector<2x16x32xf32>
    %308 = vector.shape_cast %301 : vector<32x32xf32> to vector<2x16x32xf32>
    %309 = vector.extract_strided_slice %306 {offsets = [0, 0, 0], sizes = [2, 8, 8], strides = [1, 1, 1]} : vector<2x8x32xf32> to vector<2x8x8xf32>
    %310 = vector.extract_strided_slice %307 {offsets = [0, 0, 0], sizes = [2, 16, 8], strides = [1, 1, 1]} : vector<2x16x32xf32> to vector<2x16x8xf32>
    %311 = vector.extract_strided_slice %308 {offsets = [0, 0, 0], sizes = [2, 16, 8], strides = [1, 1, 1]} : vector<2x16x32xf32> to vector<2x16x8xf32>
    "tpu.trace_start"() <{level = 10 : i32, message = "bsd,btd->bst"}> : () -> ()
    %cst_162 = arith.constant dense<0.000000e+00> : vector<2x8x16xf32>
    %312 = tpu.matmul %309, %310, %cst_162 {dimension_numbers = #tpu.dot_dimension_numbers<[2], [2], [1], [1], [0, 0, 0, 1, 1, 1], [0], [0]>} : vector<2x8x8xf32>, vector<2x16x8xf32>, vector<2x8x16xf32> -> vector<2x8x16xf32>
    "tpu.trace_stop"() : () -> ()
    "tpu.trace_start"() <{level = 10 : i32, message = "bst,btd->bsd"}> : () -> ()
    %cst_163 = arith.constant dense<0.000000e+00> : vector<2x8x8xf32>
    %313 = tpu.matmul %312, %311, %cst_163 {dimension_numbers = #tpu.dot_dimension_numbers<[2], [1], [1], [2], [0, 0, 0, 1, 1, 2], [0], [0]>} : vector<2x8x16xf32>, vector<2x16x8xf32>, vector<2x8x8xf32> -> vector<2x8x8xf32>
    "tpu.trace_stop"() : () -> ()
    %314 = vector.shape_cast %313 : vector<2x8x8xf32> to vector<16x8xf32>
    %315 = vector.extract_strided_slice %303 {offsets = [0, 0], sizes = [8, 32], strides = [1, 1]} : vector<32x32xf32> to vector<8x32xf32>
    %cst_164 = arith.constant dense<0.000000e+00> : vector<16x32xf32>
    %316 = tpu.matmul %314, %315, %cst_164 {dimension_numbers = #tpu.dot_dimension_numbers<[1], [0], [0], [1], [0, 0, 1, 1], [], []>} : vector<16x8xf32>, vector<8x32xf32>, vector<16x32xf32> -> vector<16x32xf32>
    %317 = vector.extract_strided_slice %306 {offsets = [0, 0, 8], sizes = [2, 8, 8], strides = [1, 1, 1]} : vector<2x8x32xf32> to vector<2x8x8xf32>
    %318 = vector.extract_strided_slice %307 {offsets = [0, 0, 8], sizes = [2, 16, 8], strides = [1, 1, 1]} : vector<2x16x32xf32> to vector<2x16x8xf32>
    %319 = vector.extract_strided_slice %308 {offsets = [0, 0, 8], sizes = [2, 16, 8], strides = [1, 1, 1]} : vector<2x16x32xf32> to vector<2x16x8xf32>
    "tpu.trace_start"() <{level = 10 : i32, message = "bsd,btd->bst"}> : () -> ()
    %cst_165 = arith.constant dense<0.000000e+00> : vector<2x8x16xf32>
    %320 = tpu.matmul %317, %318, %cst_165 {dimension_numbers = #tpu.dot_dimension_numbers<[2], [2], [1], [1], [0, 0, 0, 1, 1, 1], [0], [0]>} : vector<2x8x8xf32>, vector<2x16x8xf32>, vector<2x8x16xf32> -> vector<2x8x16xf32>
    "tpu.trace_stop"() : () -> ()
    "tpu.trace_start"() <{level = 10 : i32, message = "bst,btd->bsd"}> : () -> ()
    %cst_166 = arith.constant dense<0.000000e+00> : vector<2x8x8xf32>
    %321 = tpu.matmul %320, %319, %cst_166 {dimension_numbers = #tpu.dot_dimension_numbers<[2], [1], [1], [2], [0, 0, 0, 1, 1, 2], [0], [0]>} : vector<2x8x16xf32>, vector<2x16x8xf32>, vector<2x8x8xf32> -> vector<2x8x8xf32>
    "tpu.trace_stop"() : () -> ()
    %322 = vector.shape_cast %321 : vector<2x8x8xf32> to vector<16x8xf32>
    %323 = vector.extract_strided_slice %303 {offsets = [8, 0], sizes = [8, 32], strides = [1, 1]} : vector<32x32xf32> to vector<8x32xf32>
    %cst_167 = arith.constant dense<0.000000e+00> : vector<16x32xf32>
    %324 = tpu.matmul %322, %323, %cst_167 {dimension_numbers = #tpu.dot_dimension_numbers<[1], [0], [0], [1], [0, 0, 1, 1], [], []>} : vector<16x8xf32>, vector<8x32xf32>, vector<16x32xf32> -> vector<16x32xf32>
    %325 = arith.addf %316, %324 : vector<16x32xf32>
    %326 = vector.extract_strided_slice %306 {offsets = [0, 0, 16], sizes = [2, 8, 8], strides = [1, 1, 1]} : vector<2x8x32xf32> to vector<2x8x8xf32>
    %327 = vector.extract_strided_slice %307 {offsets = [0, 0, 16], sizes = [2, 16, 8], strides = [1, 1, 1]} : vector<2x16x32xf32> to vector<2x16x8xf32>
    %328 = vector.extract_strided_slice %308 {offsets = [0, 0, 16], sizes = [2, 16, 8], strides = [1, 1, 1]} : vector<2x16x32xf32> to vector<2x16x8xf32>
    "tpu.trace_start"() <{level = 10 : i32, message = "bsd,btd->bst"}> : () -> ()
    %cst_168 = arith.constant dense<0.000000e+00> : vector<2x8x16xf32>
    %329 = tpu.matmul %326, %327, %cst_168 {dimension_numbers = #tpu.dot_dimension_numbers<[2], [2], [1], [1], [0, 0, 0, 1, 1, 1], [0], [0]>} : vector<2x8x8xf32>, vector<2x16x8xf32>, vector<2x8x16xf32> -> vector<2x8x16xf32>
    "tpu.trace_stop"() : () -> ()
    "tpu.trace_start"() <{level = 10 : i32, message = "bst,btd->bsd"}> : () -> ()
    %cst_169 = arith.constant dense<0.000000e+00> : vector<2x8x8xf32>
    %330 = tpu.matmul %329, %328, %cst_169 {dimension_numbers = #tpu.dot_dimension_numbers<[2], [1], [1], [2], [0, 0, 0, 1, 1, 2], [0], [0]>} : vector<2x8x16xf32>, vector<2x16x8xf32>, vector<2x8x8xf32> -> vector<2x8x8xf32>
    "tpu.trace_stop"() : () -> ()
    %331 = vector.shape_cast %330 : vector<2x8x8xf32> to vector<16x8xf32>
    %332 = vector.extract_strided_slice %303 {offsets = [16, 0], sizes = [8, 32], strides = [1, 1]} : vector<32x32xf32> to vector<8x32xf32>
    %cst_170 = arith.constant dense<0.000000e+00> : vector<16x32xf32>
    %333 = tpu.matmul %331, %332, %cst_170 {dimension_numbers = #tpu.dot_dimension_numbers<[1], [0], [0], [1], [0, 0, 1, 1], [], []>} : vector<16x8xf32>, vector<8x32xf32>, vector<16x32xf32> -> vector<16x32xf32>
    %334 = arith.addf %325, %333 : vector<16x32xf32>
    %335 = vector.extract_strided_slice %306 {offsets = [0, 0, 24], sizes = [2, 8, 8], strides = [1, 1, 1]} : vector<2x8x32xf32> to vector<2x8x8xf32>
    %336 = vector.extract_strided_slice %307 {offsets = [0, 0, 24], sizes = [2, 16, 8], strides = [1, 1, 1]} : vector<2x16x32xf32> to vector<2x16x8xf32>
    %337 = vector.extract_strided_slice %308 {offsets = [0, 0, 24], sizes = [2, 16, 8], strides = [1, 1, 1]} : vector<2x16x32xf32> to vector<2x16x8xf32>
    "tpu.trace_start"() <{level = 10 : i32, message = "bsd,btd->bst"}> : () -> ()
    %cst_171 = arith.constant dense<0.000000e+00> : vector<2x8x16xf32>
    %338 = tpu.matmul %335, %336, %cst_171 {dimension_numbers = #tpu.dot_dimension_numbers<[2], [2], [1], [1], [0, 0, 0, 1, 1, 1], [0], [0]>} : vector<2x8x8xf32>, vector<2x16x8xf32>, vector<2x8x16xf32> -> vector<2x8x16xf32>
    "tpu.trace_stop"() : () -> ()
    "tpu.trace_start"() <{level = 10 : i32, message = "bst,btd->bsd"}> : () -> ()
    %cst_172 = arith.constant dense<0.000000e+00> : vector<2x8x8xf32>
    %339 = tpu.matmul %338, %337, %cst_172 {dimension_numbers = #tpu.dot_dimension_numbers<[2], [1], [1], [2], [0, 0, 0, 1, 1, 2], [0], [0]>} : vector<2x8x16xf32>, vector<2x16x8xf32>, vector<2x8x8xf32> -> vector<2x8x8xf32>
    "tpu.trace_stop"() : () -> ()
    %340 = vector.shape_cast %339 : vector<2x8x8xf32> to vector<16x8xf32>
    %341 = vector.extract_strided_slice %303 {offsets = [24, 0], sizes = [8, 32], strides = [1, 1]} : vector<32x32xf32> to vector<8x32xf32>
    %cst_173 = arith.constant dense<0.000000e+00> : vector<16x32xf32>
    %342 = tpu.matmul %340, %341, %cst_173 {dimension_numbers = #tpu.dot_dimension_numbers<[1], [0], [0], [1], [0, 0, 1, 1], [], []>} : vector<16x8xf32>, vector<8x32xf32>, vector<16x32xf32> -> vector<16x32xf32>
    %343 = arith.addf %334, %342 : vector<16x32xf32>
    %344 = vector.broadcast %305 : vector<1x32xf32> to vector<16x32xf32>
    %345 = arith.addf %343, %344 : vector<16x32xf32>
    %346 = arith.addf %285, %345 : vector<16x32xf32>
    %c1_174 = arith.constant 1 : index
    %c0_175 = arith.constant 0 : index
    %c0_176 = arith.constant 0 : index
    %347 = vector.load %arg14[%c1_174, %c0_175, %c0_176] : memref<2x1x32xf32, #tpu.memory_space<vmem>>, vector<1x1x32xf32>
    %348 = vector.shape_cast %347 : vector<1x1x32xf32> to vector<1x32xf32>
    %c1_177 = arith.constant 1 : index
    %c0_178 = arith.constant 0 : index
    %c0_179 = arith.constant 0 : index
    %349 = vector.load %arg15[%c1_177, %c0_178, %c0_179] : memref<2x1x32xf32, #tpu.memory_space<vmem>>, vector<1x1x32xf32>
    %350 = vector.shape_cast %349 : vector<1x1x32xf32> to vector<1x32xf32>
    %cst_180 = arith.constant dense<0.000000e+00> : vector<16xf32>
    %351 = vector.multi_reduction <add>, %346, %cst_180 [1] : vector<16x32xf32> to vector<16xf32>
    %352 = vector.shape_cast %351 : vector<16xf32> to vector<16x1xf32>
    %cst_181 = arith.constant 3.200000e+01 : f32
    %353 = vector.broadcast %cst_181 : f32 to vector<16x1xf32>
    %354 = arith.divf %352, %353 : vector<16x1xf32>
    %355 = vector.broadcast %354 : vector<16x1xf32> to vector<16x32xf32>
    %356 = arith.subf %346, %355 : vector<16x32xf32>
    %357 = arith.mulf %356, %356 : vector<16x32xf32>
    %cst_182 = arith.constant dense<0.000000e+00> : vector<16xf32>
    %358 = vector.multi_reduction <add>, %357, %cst_182 [1] : vector<16x32xf32> to vector<16xf32>
    %359 = vector.shape_cast %358 : vector<16xf32> to vector<16x1xf32>
    %cst_183 = arith.constant 3.200000e+01 : f32
    %360 = vector.broadcast %cst_183 : f32 to vector<16x1xf32>
    %361 = arith.divf %359, %360 : vector<16x1xf32>
    %cst_184 = arith.constant 9.99999974E-6 : f32
    %362 = vector.broadcast %cst_184 : f32 to vector<16x1xf32>
    %363 = arith.addf %361, %362 : vector<16x1xf32>
    %364 = math.rsqrt %363 : vector<16x1xf32>
    %365 = vector.broadcast %364 : vector<16x1xf32> to vector<16x32xf32>
    %366 = arith.mulf %356, %365 : vector<16x32xf32>
    %367 = vector.broadcast %348 : vector<1x32xf32> to vector<16x32xf32>
    %368 = arith.mulf %366, %367 : vector<16x32xf32>
    %369 = vector.broadcast %350 : vector<1x32xf32> to vector<16x32xf32>
    %370 = arith.addf %368, %369 : vector<16x32xf32>
    %c1_185 = arith.constant 1 : index
    %c0_186 = arith.constant 0 : index
    %c0_187 = arith.constant 0 : index
    %371 = vector.load %arg16[%c1_185, %c0_186, %c0_187] : memref<2x32x128xf32, #tpu.memory_space<vmem>>, vector<1x32x128xf32>
    %372 = vector.shape_cast %371 : vector<1x32x128xf32> to vector<32x128xf32>
    %cst_188 = arith.constant dense<0.000000e+00> : vector<16x128xf32>
    %373 = tpu.matmul %370, %372, %cst_188 {dimension_numbers = #tpu.dot_dimension_numbers<[1], [0], [0], [1], [0, 0, 1, 1], [], []>} : vector<16x32xf32>, vector<32x128xf32>, vector<16x128xf32> -> vector<16x128xf32>
    %c1_189 = arith.constant 1 : index
    %c0_190 = arith.constant 0 : index
    %c0_191 = arith.constant 0 : index
    %374 = vector.load %arg17[%c1_189, %c0_190, %c0_191] : memref<2x1x128xf32, #tpu.memory_space<vmem>>, vector<1x1x128xf32>
    %375 = vector.shape_cast %374 : vector<1x1x128xf32> to vector<1x128xf32>
    %376 = vector.broadcast %375 : vector<1x128xf32> to vector<16x128xf32>
    %377 = arith.addf %373, %376 : vector<16x128xf32>
    %cst_192 = arith.constant 0.000000e+00 : f32
    %378 = vector.broadcast %cst_192 : f32 to vector<16x128xf32>
    %379 = arith.maximumf %377, %378 : vector<16x128xf32>
    %c1_193 = arith.constant 1 : index
    %c0_194 = arith.constant 0 : index
    %c0_195 = arith.constant 0 : index
    %380 = vector.load %arg18[%c1_193, %c0_194, %c0_195] : memref<2x128x32xf32, #tpu.memory_space<vmem>>, vector<1x128x32xf32>
    %381 = vector.shape_cast %380 : vector<1x128x32xf32> to vector<128x32xf32>
    %cst_196 = arith.constant dense<0.000000e+00> : vector<16x32xf32>
    %382 = tpu.matmul %379, %381, %cst_196 {dimension_numbers = #tpu.dot_dimension_numbers<[1], [0], [0], [1], [0, 0, 1, 1], [], []>} : vector<16x128xf32>, vector<128x32xf32>, vector<16x32xf32> -> vector<16x32xf32>
    %c1_197 = arith.constant 1 : index
    %c0_198 = arith.constant 0 : index
    %c0_199 = arith.constant 0 : index
    %383 = vector.load %arg19[%c1_197, %c0_198, %c0_199] : memref<2x1x32xf32, #tpu.memory_space<vmem>>, vector<1x1x32xf32>
    %384 = vector.shape_cast %383 : vector<1x1x32xf32> to vector<1x32xf32>
    %385 = vector.broadcast %384 : vector<1x32xf32> to vector<16x32xf32>
    %386 = arith.addf %382, %385 : vector<16x32xf32>
    %387 = arith.addf %370, %386 : vector<16x32xf32>
    %c1_200 = arith.constant 1 : index
    %c0_201 = arith.constant 0 : index
    %c0_202 = arith.constant 0 : index
    %388 = vector.load %arg20[%c1_200, %c0_201, %c0_202] : memref<2x1x32xf32, #tpu.memory_space<vmem>>, vector<1x1x32xf32>
    %389 = vector.shape_cast %388 : vector<1x1x32xf32> to vector<1x32xf32>
    %c1_203 = arith.constant 1 : index
    %c0_204 = arith.constant 0 : index
    %c0_205 = arith.constant 0 : index
    %390 = vector.load %arg21[%c1_203, %c0_204, %c0_205] : memref<2x1x32xf32, #tpu.memory_space<vmem>>, vector<1x1x32xf32>
    %391 = vector.shape_cast %390 : vector<1x1x32xf32> to vector<1x32xf32>
    %cst_206 = arith.constant dense<0.000000e+00> : vector<16xf32>
    %392 = vector.multi_reduction <add>, %387, %cst_206 [1] : vector<16x32xf32> to vector<16xf32>
    %393 = vector.shape_cast %392 : vector<16xf32> to vector<16x1xf32>
    %cst_207 = arith.constant 3.200000e+01 : f32
    %394 = vector.broadcast %cst_207 : f32 to vector<16x1xf32>
    %395 = arith.divf %393, %394 : vector<16x1xf32>
    %396 = vector.broadcast %395 : vector<16x1xf32> to vector<16x32xf32>
    %397 = arith.subf %387, %396 : vector<16x32xf32>
    %398 = arith.mulf %397, %397 : vector<16x32xf32>
    %cst_208 = arith.constant dense<0.000000e+00> : vector<16xf32>
    %399 = vector.multi_reduction <add>, %398, %cst_208 [1] : vector<16x32xf32> to vector<16xf32>
    %400 = vector.shape_cast %399 : vector<16xf32> to vector<16x1xf32>
    %cst_209 = arith.constant 3.200000e+01 : f32
    %401 = vector.broadcast %cst_209 : f32 to vector<16x1xf32>
    %402 = arith.divf %400, %401 : vector<16x1xf32>
    %cst_210 = arith.constant 9.99999974E-6 : f32
    %403 = vector.broadcast %cst_210 : f32 to vector<16x1xf32>
    %404 = arith.addf %402, %403 : vector<16x1xf32>
    %405 = math.rsqrt %404 : vector<16x1xf32>
    %406 = vector.broadcast %405 : vector<16x1xf32> to vector<16x32xf32>
    %407 = arith.mulf %397, %406 : vector<16x32xf32>
    %408 = vector.broadcast %389 : vector<1x32xf32> to vector<16x32xf32>
    %409 = arith.mulf %407, %408 : vector<16x32xf32>
    %410 = vector.broadcast %391 : vector<1x32xf32> to vector<16x32xf32>
    %411 = arith.addf %409, %410 : vector<16x32xf32>
    %c0_211 = arith.constant 0 : index
    %c0_212 = arith.constant 0 : index
    %412 = vector.load %arg22[%c0_211, %c0_212] : memref<32x32xf32, #tpu.memory_space<vmem>>, vector<32x32xf32>
    %cst_213 = arith.constant dense<0.000000e+00> : vector<16x32xf32>
    %413 = tpu.matmul %411, %412, %cst_213 {dimension_numbers = #tpu.dot_dimension_numbers<[1], [0], [0], [1], [0, 0, 1, 1], [], []>} : vector<16x32xf32>, vector<32x32xf32>, vector<16x32xf32> -> vector<16x32xf32>
    %c0_214 = arith.constant 0 : index
    %c0_215 = arith.constant 0 : index
    %414 = vector.load %arg23[%c0_214, %c0_215] : memref<1x32xf32, #tpu.memory_space<vmem>>, vector<1x32xf32>
    %415 = vector.broadcast %414 : vector<1x32xf32> to vector<16x32xf32>
    %416 = arith.addf %413, %415 : vector<16x32xf32>
    %c0_216 = arith.constant 0 : index
    %c0_217 = arith.constant 0 : index
    %417 = vector.load %arg24[%c0_216, %c0_217] : memref<16x32xf32, #tpu.memory_space<vmem>>, vector<16x32xf32>
    tpu.vector_store %arg24[%c0_216, %c0_217], %416 {strides = array<i32>} : memref<16x32xf32, #tpu.memory_space<vmem>>, vector<16x32xf32>,
    return
  }
}

</mosaic_0001>

<bundles_post_ra>
// kernel: tpu_custom_call.1
= control target key start
LH: loop header
LB: loop body
LE: loop exit
PB: predicated region body
PF: predicated region fallthrough
CT: control target
= control target key end

     0   :  { %s11117_s0 = inlined_call_operand.hbm [shape: f32[16,32], index: 0, kind: input, shape index: {}]   ;;  %s11118_s1 = inlined_call_operand.hbm [shape: f32[32,32], index: 1, kind: input, shape index: {}]   ;;  %s11119_s2 = inlined_call_operand.vmem [shape: f32[2,32,96], index: 2, kind: input, shape index: {}]   ;;  %s11120_s3 = inlined_call_operand.vmem [shape: f32[2,1,96], index: 3, kind: input, shape index: {}]   ;;  %s11121_s4 = inlined_call_operand.vmem [shape: f32[2,32,32], index: 4, kind: input, shape index: {}]   ;;  %s11122_s5 = inlined_call_operand.vmem [shape: f32[2,1,32], index: 5, kind: input, shape index: {}]   ;;  %s11123_s6 = inlined_call_operand.hbm [shape: f32[2,1,32], index: 6, kind: input, shape index: {}]   ;;  %s11124_s7 = inlined_call_operand.hbm [shape: f32[2,1,32], index: 7, kind: input, shape index: {}]   ;;  %s11125_s8 = inlined_call_operand.vmem [shape: f32[2,32,32], index: 8, kind: input, shape index: {}]   ;;  %s11126_s9 = inlined_call_operand.hbm [shape: f32[2,1,32], index: 9, kind: input, shape index: {}]   ;;  %s11127_s10 = inlined_call_operand.vmem [shape: f32[2,32,64], index: 10, kind: input, shape index: {}]   ;;  %s11128_s11 = inlined_call_operand.hbm [shape: f32[2,1,64], index: 11, kind: input, shape index: {}]   ;;  %s11129_s12 = inlined_call_operand.vmem [shape: f32[2,32,32], index: 12, kind: input, shape index: {}]   ;;  %s11130_s13 = inlined_call_operand.hbm [shape: f32[2,1,32], index: 13, kind: input, shape index: {}]   ;;  %s11131_s14 = inlined_call_operand.hbm [shape: f32[2,1,32], index: 14, kind: input, shape index: {}]   ;;  %s11132_s15 = inlined_call_operand.hbm [shape: f32[2,1,32], index: 15, kind: input, shape index: {}]   ;;  %s11133_s16 = inlined_call_operand.hbm [shape: f32[2,32,128], index: 16, kind: input, shape index: {}]   ;;  %s11134_s17 = inlined_call_operand.hbm [shape: f32[2,1,128], index: 17, kind: input, shape index: {}]   ;;  %s11135_s18 = inlined_call_operand.vmem [shape: f32[2,128,32], index: 18, kind: input, shape index: {}]   ;;  %s11136_s19 = inlined_call_operand.hbm [shape: f32[2,1,32], index: 19, kind: input, shape index: {}]   ;;  %s11137_s20 = inlined_call_operand.vmem [shape: f32[2,1,32], index: 20, kind: input, shape index: {}]   ;;  %s11138_s21 = inlined_call_operand.vmem [shape: f32[2,1,32], index: 21, kind: input, shape index: {}]   ;;  %s11139_s22 = inlined_call_operand.hbm [shape: f32[32,32], index: 22, kind: input, shape index: {}]   ;;  %s11140_s23 = inlined_call_operand.vmem [shape: f32[1,32], index: 23, kind: input, shape index: {}]   ;;  %s11141_s24 = inlined_call_operand.hbm [shape: f32[16,32], index: 24, kind: output, shape index: {}]  }
   0x1   :  { %11154 = sst [smem:[#allocation32_spill]] %s11117_s0 }
   0x2   :  { %11155 = sst [smem:[#allocation33_spill]] %s11118_s1 }
   0x3   :  { %11156 = sst [smem:[#allocation34_spill]] %s11119_s2 }
   0x4   :  { %11157 = sst [smem:[#allocation35_spill]] %s11120_s3 }
   0x5   :  { %11158 = sst [smem:[#allocation36_spill]] %s11121_s4 }
   0x6   :  { %11159 = sst [smem:[#allocation37_spill]] %s11122_s5 }
   0x7   :  { %11160 = sst [smem:[#allocation38_spill]] %s11123_s6 }
   0x8   :  { %11161 = sst [smem:[#allocation39_spill]] %s11124_s7 }
   0x9   :  { %11162 = sst [smem:[#allocation40_spill]] %s11125_s8 }
   0xa   :  { %11163 = sst [smem:[#allocation41_spill]] %s11138_s21 }
   0xb   :  { %11164 = sst [smem:[#allocation42_spill]] %s11140_s23 }
   0xc   :  { %11165 = sst [smem:[#allocation43_spill]] %s11141_s24 }
   0xd   :  { %29 = vsyncpa [#allocation3], 0 }
   0xe   :  { %30 = vsyncpa [#allocation6], 0 }
   0xf   :  { %31 = vsyncpa [#allocation9], 0 }
  0x10   :  { %32 = vsyncpa [#allocation12], 0 }
  0x11   :  { %33 = vsyncpa [#allocation15], 0 }
  0x12   :  { %34 = vsyncpa [#allocation18], 0 }
  0x13   :  { %35 = vsyncpa [#allocation21], 0 }
  0x14   :  { %36 = vsyncpa [#allocation4], 0  ;;  %s9991_s5 = smov [#allocation5]   ;;  %s11166_s6 = sld [smem:[#allocation33_spill]] }
  0x15   :  { %s54_s26 = sshll.u32 %s9991_s5, 4  ;;  %s55_s26 = int_to_ptr.vmem [resolvable:$true] %s54_s26 }
  0x1a   :  { %s9667_s2 = scalar_lea.hbm %s11166_s6, 512 }
  0x1b   :  { %p9668_p0 = scmp.ne.s32.totalorder %s11166_s6, %s9667_s2  ;;  %p9671_p1 = scmp.lt.u32.totalorder %s9667_s2, %s11166_s6 }
  0x1d   :  { %p9673_p2 = pnand %p9671_p1, %p9668_p0 }
  0x1f   :  { %9676 = shalt.err (!%p9673_p2)
}
  0x20   :  { %s9677_s3 = scalar_lea.vmem %s55_s26, 512  ;;  %p9682_p4 = scmp.lt.s32.totalorder %s55_s26, %s55_s26 }
  0x21   :  { %p9678_p3 = scmp.ne.s32.totalorder %s55_s26, %s9677_s3  ;;  %p9683_p5 = scmp.lt.s32.totalorder %s9677_s3, %s9677_s3 }
  0x23   :  { %p9684_p6 = por %p9683_p5, %p9682_p4 }
  0x25   :  { %p9685_p7 = pnand %p9684_p6, %p9678_p3 }
  0x27   :  { %9688 = shalt.err (!%p9685_p7)
}
  0x28   :  { %s11153_s25 = smov 128   ;;  %s9993_s8 = smov 8  }
  0x29   :  { %60 = dma.hbm_to_vmem [thread:$0]  %s11166_s6, 512, %s55_s26, [#allocation6], %s11153_s25, %s11153_s25, %s9993_s8  }
  0x2a   :  { %s9994_s5 = smov [#allocation8]   ;;  %s9995_s28 = smov [#allocation11]  }
  0x2b   :  { %s86_s27 = sshll.u32 %s9994_s5, 4  ;;  %s114_s2 = sshll.u32 %s9995_s28, 4  ;;  %s87_s27 = int_to_ptr.vmem [resolvable:$true] %s86_s27  ;;  %s115_s2 = int_to_ptr.vmem [resolvable:$true] %s114_s2 }
  0x2c   :  { %s11167_s7 = sld [smem:[#allocation39_spill]] }
  0x32   :  { %s9689_s30 = scalar_lea.hbm %s11167_s7, 32 }
  0x33   :  { %p9690_p8 = scmp.ne.s32.totalorder %s11167_s7, %s9689_s30  ;;  %p9693_p9 = scmp.lt.u32.totalorder %s9689_s30, %s11167_s7 }
  0x35   :  { %p9695_p10 = pnand %p9693_p9, %p9690_p8 }
  0x37   :  { %9698 = shalt.err (!%p9695_p10)
}
  0x38   :  { %s9699_s26 = scalar_lea.vmem %s87_s27, 32  ;;  %p9704_p12 = scmp.lt.s32.totalorder %s87_s27, %s87_s27 }
  0x39   :  { %p9700_p11 = scmp.ne.s32.totalorder %s87_s27, %s9699_s26  ;;  %p9705_p13 = scmp.lt.s32.totalorder %s9699_s26, %s9699_s26 }
  0x3b   :  { %p9706_p0 = por %p9705_p13, %p9704_p12 }
  0x3d   :  { %p9707_p1 = pnand %p9706_p0, %p9700_p11 }
  0x3f   :  { %9710 = shalt.err (!%p9707_p1)
}
  0x40   :  { %s9996_s6 = smov 16   ;;  %s9997_s4 = smov 1  }
  0x41   :  { %92 = dma.hbm_to_vmem [thread:$0]  %s11167_s7, 32, %s87_s27, [#allocation9], %s9996_s6, %s9996_s6, %s9997_s4  }
  0x42   :  { %s9711_s5 = scalar_lea.hbm %s11128_s11, 32 }
  0x43   :  { %p9712_p2 = scmp.ne.s32.totalorder %s11128_s11, %s9711_s5  ;;  %p9715_p3 = scmp.lt.u32.totalorder %s9711_s5, %s11128_s11 }
  0x45   :  { %p9717_p4 = pnand %p9715_p3, %p9712_p2 }
  0x47   :  { %9720 = shalt.err (!%p9717_p4)
}
  0x48   :  { %s9721_s3 = scalar_lea.vmem %s115_s2, 32  ;;  %p9726_p6 = scmp.lt.s32.totalorder %s115_s2, %s115_s2 }
  0x49   :  { %p9722_p5 = scmp.ne.s32.totalorder %s115_s2, %s9721_s3  ;;  %p9727_p7 = scmp.lt.s32.totalorder %s9721_s3, %s9721_s3 }
  0x4b   :  { %p9728_p8 = por %p9727_p7, %p9726_p6 }
  0x4d   :  { %p9729_p9 = pnand %p9728_p8, %p9722_p5 }
  0x4f   :  { %9732 = shalt.err (!%p9729_p9)
}
  0x50   :  { %120 = dma.hbm_to_vmem [thread:$0]  %s11128_s11, 32, %s115_s2, [#allocation12], %s9996_s6, %s9996_s6, %s9997_s4  }
  0x51   :  { %s9998_s26 = smov [#allocation14]   ;;  %s9999_s1 = smov [#allocation17]  }
  0x52   :  { %s140_s24 = sshll.u32 %s9998_s26, 4  ;;  %s164_s21 = sshll.u32 %s9999_s1, 4  ;;  %s141_s24 = int_to_ptr.vmem [resolvable:$true] %s140_s24  ;;  %s165_s21 = int_to_ptr.vmem [resolvable:$true] %s164_s21 }
  0x53   :  { %s9733_s28 = scalar_lea.hbm %s11131_s14, 32 }
  0x54   :  { %p9734_p10 = scmp.ne.s32.totalorder %s11131_s14, %s9733_s28  ;;  %p9737_p11 = scmp.lt.u32.totalorder %s9733_s28, %s11131_s14 }
  0x56   :  { %p9739_p12 = pnand %p9737_p11, %p9734_p10 }
  0x58   :  { %9742 = shalt.err (!%p9739_p12)
}
  0x59   :  { %s9743_s11 = scalar_lea.vmem %s141_s24, 32  ;;  %p9748_p0 = scmp.lt.s32.totalorder %s141_s24, %s141_s24 }
  0x5a   :  { %p9744_p13 = scmp.ne.s32.totalorder %s141_s24, %s9743_s11  ;;  %p9749_p1 = scmp.lt.s32.totalorder %s9743_s11, %s9743_s11 }
  0x5c   :  { %p9750_p2 = por %p9749_p1, %p9748_p0 }
  0x5e   :  { %p9751_p3 = pnand %p9750_p2, %p9744_p13 }
  0x60   :  { %9754 = shalt.err (!%p9751_p3)
}
  0x61   :  { %146 = dma.hbm_to_vmem [thread:$0]  %s11131_s14, 32, %s141_s24, [#allocation15], %s9996_s6, %s9996_s6, %s9997_s4  }
  0x62   :  { %s9755_s1 = scalar_lea.hbm %s11133_s16, 1024 }
  0x63   :  { %p9756_p4 = scmp.ne.s32.totalorder %s11133_s16, %s9755_s1  ;;  %p9759_p5 = scmp.lt.u32.totalorder %s9755_s1, %s11133_s16 }
  0x65   :  { %p9761_p6 = pnand %p9759_p5, %p9756_p4 }
  0x67   :  { %9764 = shalt.err (!%p9761_p6)
}
  0x68   :  { %s9765_s0 = scalar_lea.vmem %s165_s21, 1024  ;;  %p9770_p8 = scmp.lt.s32.totalorder %s165_s21, %s165_s21 }
  0x69   :  { %p9766_p7 = scmp.ne.s32.totalorder %s165_s21, %s9765_s0  ;;  %p9771_p9 = scmp.lt.s32.totalorder %s9765_s0, %s9765_s0 }
  0x6b   :  { %p9772_p10 = por %p9771_p9, %p9770_p8 }
  0x6d   :  { %p9773_p11 = pnand %p9772_p10, %p9766_p7 }
  0x6f   :  { %9776 = shalt.err (!%p9773_p11)
}
  0x70   :  { %170 = dma.hbm_to_vmem [thread:$0]  %s11133_s16, 1024, %s165_s21, [#allocation18], %s11153_s25, %s11153_s25, %s9993_s8  }
  0x71   :  { %s10000_s30 = smov [#allocation20]   ;;  %s10001_s11 = smov [#allocation2]  }
  0x72   :  { %s190_s3 = sshll.u32 %s10000_s30, 4  ;;  %s42_s2 = sshll.u32 %s10001_s11, 4  ;;  %s191_s3 = int_to_ptr.vmem [resolvable:$true] %s190_s3  ;;  %s43_s2 = int_to_ptr.vmem [resolvable:$true] %s42_s2 }
  0x73   :  { %s9777_s26 = scalar_lea.hbm %s11136_s19, 32 }
  0x74   :  { %p9778_p12 = scmp.ne.s32.totalorder %s11136_s19, %s9777_s26  ;;  %p9781_p13 = scmp.lt.u32.totalorder %s9777_s26, %s11136_s19 }
  0x76   :  { %p9783_p0 = pnand %p9781_p13, %p9778_p12 }
  0x78   :  { %9786 = shalt.err (!%p9783_p0)
}
  0x79   :  { %s9787_s16 = scalar_lea.vmem %s191_s3, 32  ;;  %p9792_p2 = scmp.lt.s32.totalorder %s191_s3, %s191_s3 }
  0x7a   :  { %p9788_p1 = scmp.ne.s32.totalorder %s191_s3, %s9787_s16  ;;  %p9793_p3 = scmp.lt.s32.totalorder %s9787_s16, %s9787_s16 }
  0x7c   :  { %p9794_p4 = por %p9793_p3, %p9792_p2 }
  0x7e   :  { %p9795_p5 = pnand %p9794_p4, %p9788_p1 }
  0x80   :  { %9798 = shalt.err (!%p9795_p5)
}
  0x81   :  { %196 = dma.hbm_to_vmem [thread:$0]  %s11136_s19, 32, %s191_s3, [#allocation21], %s9996_s6, %s9996_s6, %s9997_s4  }
  0x82   :  { %s11168_s24 = sld [smem:[#allocation32_spill]] }
  0x88   :  { %s9799_s30 = scalar_lea.hbm %s11168_s24, 256 }
  0x89   :  { %p9800_p6 = scmp.ne.s32.totalorder %s11168_s24, %s9799_s30  ;;  %p9803_p7 = scmp.lt.u32.totalorder %s9799_s30, %s11168_s24 }
  0x8b   :  { %p9805_p8 = pnand %p9803_p7, %p9800_p6 }
  0x8d   :  { %9808 = shalt.err (!%p9805_p8)
}
  0x8e   :  { %s9809_s1 = scalar_lea.vmem %s43_s2, 256  ;;  %p9814_p10 = scmp.lt.s32.totalorder %s43_s2, %s43_s2 }
  0x8f   :  { %p9810_p9 = scmp.ne.s32.totalorder %s43_s2, %s9809_s1  ;;  %p9815_p11 = scmp.lt.s32.totalorder %s9809_s1, %s9809_s1 }
  0x91   :  { %p9816_p12 = por %p9815_p11, %p9814_p10 }
  0x93   :  { %p9817_p13 = pnand %p9816_p12, %p9810_p9 }
  0x95   :  { %9820 = shalt.err (!%p9817_p13)
}
  0x96   :  { %48 = dma.hbm_to_vmem [thread:$0]  %s11168_s24, 256, %s43_s2, [#allocation3], %s11153_s25, %s11153_s25, %s9993_s8  }
  0x97   :  { %s10002_s23 = smov [#allocation7]   ;;  %s10003_s28 = smov [#allocation10]  }
  0x98   :  { %s74_s5 = sshll.u32 %s10002_s23, 4  ;;  %s100_s16 = sshll.u32 %s10003_s28, 4  ;;  %s75_s5 = int_to_ptr.vmem [resolvable:$true] %s74_s5  ;;  %s101_s16 = int_to_ptr.vmem [resolvable:$true] %s100_s16 }
  0x99   :  { %s11169_s0 = sld [smem:[#allocation38_spill]] }
  0x9f   :  { %s9821_s14 = scalar_lea.hbm %s11169_s0, 32 }
  0xa0   :  { %p9822_p0 = scmp.ne.s32.totalorder %s11169_s0, %s9821_s14  ;;  %p9825_p1 = scmp.lt.u32.totalorder %s9821_s14, %s11169_s0 }
  0xa2   :  { %p9827_p2 = pnand %p9825_p1, %p9822_p0 }
  0xa4   :  { %9830 = shalt.err (!%p9827_p2)
}
  0xa5   :  { %s9831_s2 = scalar_lea.vmem %s75_s5, 32  ;;  %p9836_p4 = scmp.lt.s32.totalorder %s75_s5, %s75_s5 }
  0xa6   :  { %p9832_p3 = scmp.ne.s32.totalorder %s75_s5, %s9831_s2  ;;  %p9837_p5 = scmp.lt.s32.totalorder %s9831_s2, %s9831_s2 }
  0xa8   :  { %p9838_p6 = por %p9837_p5, %p9836_p4 }
  0xaa   :  { %p9839_p7 = pnand %p9838_p6, %p9832_p3 }
  0xac   :  { %9842 = shalt.err (!%p9839_p7)
}
  0xad   :  { %80 = dma.hbm_to_vmem [thread:$0]  %s11169_s0, 32, %s75_s5, [#allocation6], %s9996_s6, %s9996_s6, %s9997_s4  }
  0xae   :  { %s9843_s3 = scalar_lea.hbm %s11126_s9, 32 }
  0xaf   :  { %p9844_p8 = scmp.ne.s32.totalorder %s11126_s9, %s9843_s3  ;;  %p9847_p9 = scmp.lt.u32.totalorder %s9843_s3, %s11126_s9 }
  0xb1   :  { %p9849_p10 = pnand %p9847_p9, %p9844_p8 }
  0xb3   :  { %9852 = shalt.err (!%p9849_p10)
}
  0xb4   :  { %s9853_s14 = scalar_lea.vmem %s101_s16, 32  ;;  %p9858_p12 = scmp.lt.s32.totalorder %s101_s16, %s101_s16 }
  0xb5   :  { %p9854_p11 = scmp.ne.s32.totalorder %s101_s16, %s9853_s14  ;;  %p9859_p13 = scmp.lt.s32.totalorder %s9853_s14, %s9853_s14 }
  0xb7   :  { %p9860_p0 = por %p9859_p13, %p9858_p12 }
  0xb9   :  { %p9861_p1 = pnand %p9860_p0, %p9854_p11 }
  0xbb   :  { %9864 = shalt.err (!%p9861_p1)
}
  0xbc   :  { %106 = dma.hbm_to_vmem [thread:$0]  %s11126_s9, 32, %s101_s16, [#allocation9], %s9996_s6, %s9996_s6, %s9997_s4  }
  0xbd   :  { %s10004_s30 = smov [#allocation13]   ;;  %s10005_s27 = smov [#allocation16]  }
  0xbe   :  { %s128_s11 = sshll.u32 %s10004_s30, 4  ;;  %s152_s7 = sshll.u32 %s10005_s27, 4  ;;  %s129_s11 = int_to_ptr.vmem [resolvable:$true] %s128_s11  ;;  %s153_s7 = int_to_ptr.vmem [resolvable:$true] %s152_s7 }
  0xbf   :  { %s9865_s26 = scalar_lea.hbm %s11130_s13, 32 }
  0xc0   :  { %p9866_p2 = scmp.ne.s32.totalorder %s11130_s13, %s9865_s26  ;;  %p9869_p3 = scmp.lt.u32.totalorder %s9865_s26, %s11130_s13 }
  0xc2   :  { %p9871_p4 = pnand %p9869_p3, %p9866_p2 }
  0xc4   :  { %9874 = shalt.err (!%p9871_p4)
}
  0xc5   :  { %s9875_s9 = scalar_lea.vmem %s129_s11, 32  ;;  %p9880_p6 = scmp.lt.s32.totalorder %s129_s11, %s129_s11 }
  0xc6   :  { %p9876_p5 = scmp.ne.s32.totalorder %s129_s11, %s9875_s9  ;;  %p9881_p7 = scmp.lt.s32.totalorder %s9875_s9, %s9875_s9 }
  0xc8   :  { %p9882_p8 = por %p9881_p7, %p9880_p6 }
  0xca   :  { %p9883_p9 = pnand %p9882_p8, %p9876_p5 }
  0xcc   :  { %9886 = shalt.err (!%p9883_p9)
}
  0xcd   :  { %134 = dma.hbm_to_vmem [thread:$0]  %s11130_s13, 32, %s129_s11, [#allocation12], %s9996_s6, %s9996_s6, %s9997_s4  }
  0xce   :  { %s9887_s14 = scalar_lea.hbm %s11132_s15, 32 }
  0xcf   :  { %p9888_p10 = scmp.ne.s32.totalorder %s11132_s15, %s9887_s14  ;;  %p9891_p11 = scmp.lt.u32.totalorder %s9887_s14, %s11132_s15 }
  0xd1   :  { %p9893_p12 = pnand %p9891_p11, %p9888_p10 }
  0xd3   :  { %9896 = shalt.err (!%p9893_p12)
}
  0xd4   :  { %s9897_s2 = scalar_lea.vmem %s153_s7, 32  ;;  %p9902_p0 = scmp.lt.s32.totalorder %s153_s7, %s153_s7 }
  0xd5   :  { %p9898_p13 = scmp.ne.s32.totalorder %s153_s7, %s9897_s2  ;;  %p9903_p1 = scmp.lt.s32.totalorder %s9897_s2, %s9897_s2 }
  0xd7   :  { %p9904_p2 = por %p9903_p1, %p9902_p0 }
  0xd9   :  { %p9905_p3 = pnand %p9904_p2, %p9898_p13 }
  0xdb   :  { %9908 = shalt.err (!%p9905_p3)
}
  0xdc   :  { %158 = dma.hbm_to_vmem [thread:$0]  %s11132_s15, 32, %s153_s7, [#allocation15], %s9996_s6, %s9996_s6, %s9997_s4  }
  0xdd   :  { %s10006_s24 = smov [#allocation19]   ;;  %s10007_s1 = smov [#allocation22]  }
  0xde   :  { %s176_s26 = sshll.u32 %s10006_s24, 4  ;;  %s206_s19 = sshll.u32 %s10007_s1, 4  ;;  %s177_s26 = int_to_ptr.vmem [resolvable:$true] %s176_s26  ;;  %s207_s19 = int_to_ptr.vmem [resolvable:$true] %s206_s19 }
  0xdf   :  { %s9909_s9 = scalar_lea.hbm %s11134_s17, 32 }
  0xe0   :  { %p9910_p4 = scmp.ne.s32.totalorder %s11134_s17, %s9909_s9  ;;  %p9913_p5 = scmp.lt.u32.totalorder %s9909_s9, %s11134_s17 }
  0xe2   :  { %p9915_p6 = pnand %p9913_p5, %p9910_p4 }
  0xe4   :  { %9918 = shalt.err (!%p9915_p6)
}
  0xe5   :  { %s9919_s15 = scalar_lea.vmem %s177_s26, 32  ;;  %p9924_p8 = scmp.lt.s32.totalorder %s177_s26, %s177_s26 }
  0xe6   :  { %p9920_p7 = scmp.ne.s32.totalorder %s177_s26, %s9919_s15  ;;  %p9925_p9 = scmp.lt.s32.totalorder %s9919_s15, %s9919_s15 }
  0xe8   :  { %p9926_p10 = por %p9925_p9, %p9924_p8 }
  0xea   :  { %p9927_p11 = pnand %p9926_p10, %p9920_p7 }
  0xec   :  { %9930 = shalt.err (!%p9927_p11)
}
  0xed   :  { %182 = dma.hbm_to_vmem [thread:$0]  %s11134_s17, 32, %s177_s26, [#allocation18], %s9996_s6, %s9996_s6, %s9997_s4  }
  0xee   :  { %s9931_s30 = scalar_lea.hbm %s11139_s22, 512 }
  0xef   :  { %p9932_p12 = scmp.ne.s32.totalorder %s11139_s22, %s9931_s30  ;;  %p9935_p13 = scmp.lt.u32.totalorder %s9931_s30, %s11139_s22 }
  0xf1   :  { %p9937_p0 = pnand %p9935_p13, %p9932_p12 }
  0xf3   :  { %9940 = shalt.err (!%p9937_p0)
}
  0xf4   :  { %s9941_s24 = scalar_lea.vmem %s207_s19, 512  ;;  %p9946_p2 = scmp.lt.s32.totalorder %s207_s19, %s207_s19 }
  0xf5   :  { %p9942_p1 = scmp.ne.s32.totalorder %s207_s19, %s9941_s24  ;;  %p9947_p3 = scmp.lt.s32.totalorder %s9941_s24, %s9941_s24 }
  0xf7   :  { %p9948_p4 = por %p9947_p3, %p9946_p2 }
  0xf9   :  { %p9949_p5 = pnand %p9948_p4, %p9942_p1 }
  0xfb   :  { %9952 = shalt.err (!%p9949_p5)
}
  0xfc   :  { %212 = dma.hbm_to_vmem [thread:$0]  %s11139_s22, 512, %s207_s19, [#allocation21], %s11153_s25, %s11153_s25, %s9993_s8  }
  0xfd   :  { %9975 = dma.done.wait [#allocation3], 256  }
  0xfe   :  { %9976 = vsyncadd [#allocation3], 4294967040 }
  0xff   :  { %9977 = dma.done.wait [#allocation6], 544  }
 0x100   :  { %9978 = vsyncadd [#allocation6], 4294966752 }
 0x101   :  { %9979 = dma.done.wait [#allocation9], 64  }
 0x102   :  { %9980 = vsyncadd [#allocation9], 4294967232 }
 0x103   :  { %9981 = dma.done.wait [#allocation12], 64  }
 0x104   :  { %9982 = vsyncadd [#allocation12], 4294967232 }
 0x105   :  { %9983 = dma.done.wait [#allocation15], 64  }
 0x106   :  { %9984 = vsyncadd [#allocation15], 4294967232 }
 0x107   :  { %9985 = dma.done.wait [#allocation18], 1056  }
 0x108   :  { %9986 = vsyncadd [#allocation18], 4294966240 }
 0x109   :  { %9987 = dma.done.wait [#allocation21], 544  }
 0x10a   :  { %9988 = vsyncadd [#allocation21], 4294966752  ;;  %vm271_vm0 = vcmask 261120   ;;  %s11170_s1 = sld [smem:[#allocation34_spill]]  ;;  %v10355_v5 = vld [vmem:[#allocation2] sm:$0xff]  ;;  %v10359_v7 = vld [vmem:[#allocation2 + $0x8] sm:$0xff] }
 0x10b   :  { %8564 = vmatprep.mubr.msk.f32.mxu1 %vm271_vm0, %v10355_v5  ;;  %v10008_v8 = vmov 0.0   ;;  %vm10009_vm1 = vmmov 0   ;;  %s11171_s29 = sld [smem:[#allocation35_spill]]  ;;  %s10010_s15 = smov 64   ;;  %vm361_vm2 = vcmask 64512   ;;  %vm2341_vm4 = vcmask 130048  }
 0x10c   :  { %8587 = vmatprep.subr.mxu0 %v10008_v8  ;;  %8589 = vmatprep.mubr.msk.f32.mxu0 %vm10009_vm1, %v10008_v8  ;;  %s10011_s7 = smov 96   ;;  %s10012_s14 = smov 88   ;;  %vm10533_vm3 = vmpackc.low %vm361_vm2, %vm361_vm2 }
 0x10d   :  { %s10013_s5 = smov 120   ;;  %s10014_s0 = smov 56  }
 0x10e   :  { %s10015_s30 = smov 112   ;;  %s10016_s27 = smov 80  }
 0x10f   :  { %s10017_s2 = smov 48   ;;  %s10018_s13 = smov 72  }
 0x110   :  { %v260_v0 = vld [vmem:[%s11170_s1] sm:$0xff]  ;;  %v261_v1 = vld [vmem:[%s11170_s1 + $0x8] sm:$0xff]  ;;  %v262_v2 = vld [vmem:[%s11170_s1 + $0x10] sm:$0xff]  ;;  %s10019_s11 = smov 104   ;;  %s10020_s24 = smov 40  }
 0x111   :  { %v9195_v3 = vpack.c.bf16 %v261_v1, %v260_v0  ;;  %v263_v4 = vld [vmem:[%s11170_s1 + $0x18] sm:$0xff]  ;;  %v8021_v9 = vld [vmem:[%s11171_s29] ss:$0 sm:$0xff]  ;;  %s11172_s4 = sld [smem:[#allocation36_spill]]  ;;  %s11173_s21 = sld [smem:[#allocation37_spill]] }
 0x112   :  { %v9199_v6 = vpack.c.bf16 %v263_v4, %v262_v2  ;;  %s11174_s17 = sld [smem:[#allocation40_spill]]  ;;  %s11177_s28 = sld [smem:[#allocation41_spill]] }
 0x113   :  { %9196 = vmatprep.subr.bf16.mxu1 %v9195_v3 }
 0x114   :  { %9198 = vmatpush3.bf16.msra.mxu1 %v9195_v3 }
 0x115   :  { %9200 = vmatprep.subr.bf16.mxu1 %v9199_v6 }
 0x117   :  { %v354_v30 = vld [vmem:[%s11172_s4 + $0x8] sm:$0xff]  ;;  %v353_v44 = vld [vmem:[%s11172_s4] sm:$0xff]  ;;  %v355_v54 = vld [vmem:[%s11172_s4 + $0x10] sm:$0xff] }
 0x118   :  { %9202 = vmatpush3.bf16.msra.mxu1 %v9199_v6  ;;  %v356_v1 = vld [vmem:[%s11172_s4 + $0x18] sm:$0xff] }
 0x119   :  { %8567 = vmatprep.subr.mxu1 %v10008_v8 }
 0x11b   :  { %8565 = vmatmul.mubr.msk.f32.vlgmr.msra.gmra.mrb[0].mxu1 %vm271_vm0, %v10359_v7 }
 0x11c   :  { %8569 = vmatprep.mubr.msk.f32.mxu1 %vm10009_vm1, %v10008_v8 }
 0x1ee   :  { %v8566_v10 = vpop.f32.mrb[0].mxu1 }
 0x1ef   :  { %v344_v11 = vpop.f32.mrb[1].mxu1  ;;  %v350_v13 = vadd.f32 %v8566_v10, %v8021_v9 }
 0x1f0   :  { %v345_v12 = vadd.f32 %v8021_v9, %v344_v11  ;;  %v8056_v11 = vld [vmem:[%s11173_s21] ss:$0 sm:$0xff] }
 0x1f2   :  { %513 = vrot.lane.b32.xlu1 %v345_v12, %s10010_s15  ;;  %359 = vrot.lane.b32.xlu0 %v345_v12, %s10011_s7 }
 0x1f6   :  { %589 = vrot.lane.b32.xlu1 %v350_v13, %s10010_s15  ;;  %437 = vrot.lane.b32.xlu0 %v350_v13, %s10011_s7 }
 0x1fa   :  { %745 = vrot.lane.b32.xlu1 %v350_v13, %s10012_s14  ;;  %667 = vrot.lane.b32.xlu0 %v345_v12, %s10012_s14 }
 0x1fe   :  { %743 = vrot.lane.b32.xlu1 %v350_v13, %s10013_s5  ;;  %665 = vrot.lane.b32.xlu0 %v345_v12, %s10013_s5 }
 0x202   :  { %897 = vrot.lane.b32.xlu1 %v350_v13, %s10014_s0  ;;  %821 = vrot.lane.b32.xlu0 %v345_v12, %s10014_s0 }
 0x206   :  { %1135 = vrot.lane.b32.xlu1 %v345_v12, %s10015_s30  ;;  %1137 = vrot.lane.b32.xlu0 %v345_v12, %s10016_s27 }
 0x20a   :  { %1213 = vrot.lane.b32.xlu1 %v350_v13, %s10015_s30  ;;  %1215 = vrot.lane.b32.xlu0 %v350_v13, %s10016_s27 }
 0x20e   :  { %1367 = vrot.lane.b32.xlu1 %v350_v13, %s10017_s2  ;;  %1291 = vrot.lane.b32.xlu0 %v345_v12, %s10017_s2 }
 0x212   :  { %1606 = vrot.lane.b32.xlu1 %v350_v13, %s10018_s13  ;;  %1528 = vrot.lane.b32.xlu0 %v345_v12, %s10018_s13 }
 0x216   :  { %1604 = vrot.lane.b32.xlu1 %v350_v13, %s10019_s11  ;;  %1526 = vrot.lane.b32.xlu0 %v345_v12, %s10019_s11 }
 0x21a   :  { %1758 = vrot.lane.b32.xlu1 %v350_v13, %s10020_s24  ;;  %1682 = vrot.lane.b32.xlu0 %v345_v12, %s10020_s24 }
 0x264   :  { %v360_v14 = vpop.permute.xlu0 %359  ;;  %v514_v16 = vpop.permute.xlu1 %513 }
 0x265   :  { %8568 = vmatpush3.xpose.msk.msra.mxu1 %vm361_vm2, %v360_v14 }
 0x266   :  { %8572 = vmatprep.subr.mxu1 %v10008_v8 }
 0x268   :  { %8570 = vmatmul.mubr.msk.f32.vlgmr.msra.gmra.mrb[2].mxu1 %vm361_vm2, %v345_v12  ;;  %v438_v15 = vpop.permute.xlu0 %437  ;;  %v590_v20 = vpop.permute.xlu1 %589 }
 0x269   :  { %8573 = vmatpush3.xpose.msk.msra.mxu1 %vm361_vm2, %v438_v15  ;;  %8574 = vmatprep.mubr.msk.f32.mxu1 %vm10009_vm1, %v10008_v8 }
 0x26a   :  { %8577 = vmatprep.subr.mxu1 %v10008_v8 }
 0x26c   :  { %8575 = vmatmul.mubr.msk.f32.vlgmr.msra.gmra.mrb[4].mxu1 %vm361_vm2, %v350_v13  ;;  %v668_v17 = vpop.permute.xlu0 %667  ;;  %v746_v21 = vpop.permute.xlu1 %745 }
 0x26d   :  { %8578 = vmatpush3.msra.mxu1 %v514_v16  ;;  %8588 = vmatpush3.xpose.msk.msra.mxu0 %vm361_vm2, %v668_v17 }
 0x26e   :  { %8597 = vmatprep.subr.mxu0 %v10008_v8  ;;  %8579 = vmatprep.mubr.msk.f32.mxu1 %vm10009_vm1, %v10008_v8 }
 0x26f   :  { %8582 = vmatprep.subr.mxu1 %v10008_v8 }
 0x270   :  { %v666_v18 = vpop.permute.xlu0 %665  ;;  %v744_v26 = vpop.permute.xlu1 %743 }
 0x271   :  { %8590 = vmatmul.mubr.msk.f32.vlgmr.msra.gmra.mrb[0].mxu0 %vm361_vm2, %v666_v18 }
 0x272   :  { %8599 = vmatprep.mubr.msk.f32.mxu0 %vm10009_vm1, %v10008_v8 }
 0x274   :  { %v822_v19 = vpop.permute.xlu0 %821  ;;  %v898_v29 = vpop.permute.xlu1 %897 }
 0x275   :  { %8598 = vmatpush3.msra.mxu0 %v822_v19 }
 0x276   :  { %8607 = vmatprep.subr.mxu0 %v354_v30 }
 0x278   :  { %v1136_v35 = vpop.permute.xlu1 %1135  ;;  %v1138_v37 = vpop.permute.xlu0 %1137 }
 0x27c   :  { %v1214_v41 = vpop.permute.xlu1 %1213  ;;  %v1216_v42 = vpop.permute.xlu0 %1215 }
 0x280   :  { %v1368_v43 = vpop.permute.xlu1 %1367  ;;  %v1292_v45 = vpop.permute.xlu0 %1291 }
 0x284   :  { %v1529_v47 = vpop.permute.xlu0 %1528  ;;  %v1607_v56 = vpop.permute.xlu1 %1606 }
 0x288   :  { %v1527_v51 = vpop.permute.xlu0 %1526  ;;  %v1605_v59 = vpop.permute.xlu1 %1604 }
 0x28c   :  { %v1683_v55 = vpop.permute.xlu0 %1682  ;;  %v1759_v0 = vpop.permute.xlu1 %1758 }
 0x33b   :  { %v432_v22 = vpop.f32.mrb[2].mxu1 }
 0x33c   :  { %v8571_v23 = vpop.f32.mrb[3].mxu1  ;;  %8580 = vmatmul.mubr.msk.f32.vlgmr.msra.gmra.mrb[6].mxu1 %vm361_vm2, %v432_v22 }
 0x33d   :  { %8583 = vmatpush3.msra.mxu1 %v590_v20  ;;  %8584 = vmatprep.mubr.msk.f32.mxu1 %vm10009_vm1, %v10008_v8 }
 0x33e   :  { %8592 = vmatprep.subr.mxu1 %v10008_v8 }
 0x33f   :  { %v509_v24 = vpop.f32.mrb[4].mxu1 }
 0x340   :  { %v8576_v25 = vpop.f32.mrb[5].mxu1  ;;  %8585 = vmatmul.mubr.msk.f32.vlgmr.msra.gmra.mrb[8].mxu1 %vm361_vm2, %v509_v24 }
 0x341   :  { %8594 = vmatprep.mubr.msk.f32.mxu1 %vm10009_vm1, %v10008_v8 }
 0x344   :  { %8593 = vmatpush3.xpose.msk.msra.mxu1 %vm361_vm2, %v746_v21  ;;  %v739_v27 = vpop.f32.mrb[0].mxu0 }
 0x345   :  { %v8591_v28 = vpop.f32.mrb[1].mxu0  ;;  %8600 = vmatmul.mubr.msk.f32.vlgmr.msra.gmra.mrb[2].mxu0 %vm361_vm2, %v739_v27  ;;  %8602 = vmatprep.subr.mxu1 %v10008_v8 }
 0x346   :  { %8608 = vmatpush3.msra.mxu0 %v354_v30 }
 0x347   :  { %8595 = vmatmul.mubr.msk.f32.vlgmr.msra.gmra.mrb[10].mxu1 %vm361_vm2, %v744_v26  ;;  %8612 = vmatprep.subr.mxu0 %v353_v44 }
 0x348   :  { %8603 = vmatpush3.msra.mxu1 %v898_v29  ;;  %8604 = vmatprep.mubr.msk.f32.mxu1 %vm10009_vm1, %v10008_v8  ;;  %v2065_v29 = vld [vmem:[%s11127_s10 + $0x8] sm:$0xff] }
 0x349   :  { %8617 = vmatprep.subr.mxu1 %v10008_v8 }
 0x40f   :  { %v585_v31 = vpop.f32.mrb[6].mxu1 }
 0x410   :  { %v8581_v32 = vpop.f32.mrb[7].mxu1 }
 0x411   :  { %v2067_v32 = vld [vmem:[%s11127_s10 + $0x18] sm:$0xff] }
 0x413   :  { %v661_v33 = vpop.f32.mrb[8].mxu1 }
 0x414   :  { %v8586_v34 = vpop.f32.mrb[9].mxu1 }
 0x415   :  { %v256_v34 = vld [vmem:[#allocation5] sm:$0xff] }
 0x418   :  { %v893_v36 = vpop.f32.mrb[2].mxu0 }
 0x419   :  { %v8601_v38 = vpop.f32.mrb[3].mxu0  ;;  %8609 = vmatprep.mubr.msk.f32.mxu0 %vm361_vm2, %v893_v36  ;;  %v258_v36 = vld [vmem:[#allocation5 + $0x10] sm:$0xff] }
 0x41a   :  { %v817_v39 = vpop.f32.mrb[10].mxu1  ;;  %v1972_v38 = vld [vmem:[%s11174_s17] sm:$0xff] }
 0x41b   :  { %v8596_v40 = vpop.f32.mrb[11].mxu1  ;;  %8605 = vmatmul.mubr.msk.f32.vlgmr.msra.gmra.mrb[12].mxu1 %vm361_vm2, %v817_v39  ;;  %v1973_v39 = vld [vmem:[%s11174_s17 + $0x8] sm:$0xff] }
 0x41c   :  { %8618 = vmatpush3.xpose.msk.msra.mxu1 %vm361_vm2, %v1138_v37  ;;  %8619 = vmatprep.mubr.msk.f32.mxu1 %vm10009_vm1, %v10008_v8  ;;  %v259_v37 = vld [vmem:[#allocation5 + $0x18] sm:$0xff]  ;;  %v9203_v40 = vpack.c.bf16 %v1973_v39, %v1972_v38 }
 0x41d   :  { %8622 = vmatprep.subr.mxu1 %v10008_v8 }
 0x41f   :  { %8620 = vmatmul.mubr.msk.f32.vlgmr.msra.gmra.mrb[14].mxu1 %vm361_vm2, %v1136_v35  ;;  %v257_v35 = vld [vmem:[#allocation5 + $0x8] sm:$0xff] }
 0x420   :  { %8623 = vmatpush3.xpose.msk.msra.mxu1 %vm361_vm2, %v1216_v42  ;;  %8624 = vmatprep.mubr.msk.f32.mxu1 %vm10009_vm1, %v10008_v8  ;;  %v1975_v42 = vld [vmem:[%s11174_s17 + $0x18] sm:$0xff] }
 0x421   :  { %8632 = vmatprep.subr.mxu1 %v10008_v8 }
 0x423   :  { %8625 = vmatmul.mubr.msk.f32.vlgmr.msra.gmra.mrb[16].mxu1 %vm361_vm2, %v1214_v41  ;;  %v1974_v41 = vld [vmem:[%s11174_s17 + $0x10] sm:$0xff] }
 0x424   :  { %8633 = vmatpush3.msra.mxu1 %v1368_v43  ;;  %8634 = vmatprep.mubr.msk.f32.mxu1 %vm10009_vm1, %v10008_v8  ;;  %v9207_v43 = vpack.c.bf16 %v1975_v42, %v1974_v41 }
 0x425   :  { %8642 = vmatprep.subr.mxu1 %v10008_v8 }
 0x4ee   :  { %v969_v46 = vpop.f32.mrb[12].mxu1 }
 0x4ef   :  { %v8606_v48 = vpop.f32.mrb[13].mxu1  ;;  %8610 = vmatmul.mubr.msk.f32.vlgmr.msra.gmra.mrb[4].mxu0 %vm361_vm2, %v969_v46 }
 0x4f0   :  { %8613 = vmatpush3.msra.mxu0 %v353_v44  ;;  %8614 = vmatprep.mubr.msk.f32.mxu0 %vm361_vm2, %v585_v31  ;;  %v2066_v31 = vld [vmem:[%s11127_s10 + $0x10] sm:$0xff]  ;;  %v10021_v44 = vmov 0.0|0.0  }
 0x4f1   :  { %8627 = vmatprep.subr.mxu0 %v10008_v8 }
 0x4f2   :  { %v1209_v49 = vpop.f32.mrb[14].mxu1 }
 0x4f3   :  { %v8621_v50 = vpop.f32.mrb[15].mxu1 }
 0x4f6   :  { %v1287_v52 = vpop.f32.mrb[16].mxu1 }
 0x4f7   :  { %8615 = vmatmul.mubr.msk.f32.vlgmr.msra.gmra.mrb[4].mxu0 %vm361_vm2, %v661_v33  ;;  %v8626_v53 = vpop.f32.mrb[17].mxu1  ;;  %8635 = vmatmul.mubr.msk.f32.vlgmr.msra.gmra.mrb[18].mxu1 %vm361_vm2, %v1287_v52  ;;  %v9215_v33 = vpack.c.bf16 %v2067_v32, %v2066_v31  ;;  %v8057_v52 = vld [vmem:[#allocation7] ss:$0 sm:$0xff] }
 0x4f8   :  { %8628 = vmatpush3.msra.mxu0 %v1292_v45  ;;  %8643 = vmatpush3.xpose.msk.msra.mxu1 %vm361_vm2, %v1529_v47 }
 0x4f9   :  { %8629 = vmatprep.mubr.msk.f32.mxu0 %vm10009_vm1, %v10008_v8  ;;  %8644 = vmatprep.mubr.msk.f32.mxu1 %vm10009_vm1, %v10008_v8 }
 0x4fa   :  { %8652 = vmatprep.subr.mxu1 %v10008_v8  ;;  %8637 = vmatprep.subr.mxu0 %v355_v54 }
 0x4fb   :  { %8630 = vmatmul.mubr.msk.f32.vlgmr.msra.gmra.mrb[6].mxu0 %vm361_vm2, %v1209_v49  ;;  %8645 = vmatmul.mubr.msk.f32.vlgmr.msra.gmra.mrb[20].mxu1 %vm361_vm2, %v1527_v51 }
 0x4fc   :  { %8653 = vmatpush3.msra.mxu1 %v1683_v55  ;;  %8638 = vmatpush3.msra.mxu0 %v355_v54  ;;  %v8058_v54 = vld [vmem:[#allocation8] ss:$0 sm:$0xff] }
 0x4fd   :  { %8654 = vmatprep.mubr.msk.f32.mxu1 %vm10009_vm1, %v10008_v8  ;;  %8647 = vmatprep.subr.mxu0 %v10008_v8 }
 0x4fe   :  { %9204 = vmatprep.subr.bf16.mxu1 %v9203_v40 }
 0x5ca   :  { %v1439_v57 = vpop.f32.mrb[18].mxu1 }
 0x5cb   :  { %v8636_v58 = vpop.f32.mrb[19].mxu1 }
 0x5ce   :  { %v1363_v60 = vpop.f32.mrb[6].mxu0  ;;  %v1600_v61 = vpop.f32.mrb[20].mxu1 }
 0x5cf   :  { %v8631_v62 = vpop.f32.mrb[7].mxu0  ;;  %8639 = vmatprep.mubr.msk.f32.mxu0 %vm361_vm2, %v1363_v60  ;;  %v8646_v63 = vpop.f32.mrb[21].mxu1  ;;  %8655 = vmatmul.mubr.msk.f32.vlgmr.msra.gmra.mrb[22].mxu1 %vm361_vm2, %v1600_v61  ;;  %v8062_v61 = vld [vmem:[#allocation11] ss:$0 sm:$0xff] }
 0x5d0   :  { %8640 = vmatmul.mubr.msk.f32.vlgmr.msra.gmra.mrb[4].mxu0 %vm361_vm2, %v1439_v57  ;;  %9206 = vmatpush3.bf16.msra.mxu1 %v9203_v40 }
 0x5d1   :  { %8648 = vmatpush3.xpose.msk.msra.mxu0 %vm361_vm2, %v1607_v56  ;;  %8649 = vmatprep.mubr.msk.f32.mxu0 %vm10009_vm1, %v10008_v8 }
 0x5d2   :  { %8657 = vmatprep.subr.mxu0 %v10008_v8  ;;  %9208 = vmatprep.subr.bf16.mxu1 %v9207_v43 }
 0x5d4   :  { %8650 = vmatmul.mubr.msk.f32.vlgmr.msra.gmra.mrb[8].mxu0 %vm361_vm2, %v1605_v59  ;;  %9210 = vmatpush3.bf16.msra.mxu1 %v9207_v43 }
 0x5d5   :  { %8658 = vmatpush3.msra.mxu0 %v1759_v0  ;;  %8659 = vmatprep.mubr.msk.f32.mxu0 %vm10009_vm1, %v10008_v8 }
 0x5d6   :  { %8662 = vmatprep.subr.mxu0 %v356_v1  ;;  %9219 = vmatprep.subr.bf16.mxu1 %v10021_v44 }
 0x6a2   :  { %v1754_v2 = vpop.f32.mrb[22].mxu1 }
 0x6a3   :  { %v8656_v3 = vpop.f32.mrb[23].mxu1 }
 0x6a7   :  { %v1678_v4 = vpop.f32.mrb[8].mxu0 }
 0x6a8   :  { %v8651_v6 = vpop.f32.mrb[9].mxu0  ;;  %8660 = vmatmul.mubr.msk.f32.vlgmr.msra.gmra.mrb[10].mxu0 %vm361_vm2, %v1678_v4 }
 0x6a9   :  { %8664 = vmatprep.mubr.msk.f32.mxu0 %vm361_vm2, %v1754_v2  ;;  %8663 = vmatpush3.msra.mxu0 %v356_v1  ;;  %v8183_v2 = vld [vmem:[%s11129_s12 + $0x38] sm:$0xff] }
 0x77b   :  { %v1830_v9 = vpop.f32.mrb[10].mxu0 }
 0x77c   :  { %v8661_v10 = vpop.f32.mrb[11].mxu0  ;;  %8665 = vmatmul.mubr.msk.f32.vlgmr.msra.gmra.mrb[4].mxu0 %vm361_vm2, %v1830_v9 }
 0x77d   :  { %8686 = vmatprep.mubr.msk.f32.mxu0 %vm271_vm0, %v256_v34 }
 0x84f   :  { %v8666_v12 = vpop.f32.mrb[4].mxu0 }
 0x850   :  { %v1924_v13 = vadd.f32 %v8666_v12, %v8056_v11  ;;  %v1906_v14 = vpop.f32.mrb[5].mxu0 }
 0x851   :  { %v1923_v15 = vadd.f32 %v8056_v11, %v1906_v14 }
 0x852   :  { %v1926_v16 = vadd.f32 %v1924_v13, %v10359_v7 }
 0x853   :  { %v1925_v17 = vadd.f32 %v1923_v15, %v10355_v5  ;;  %v2064_v5 = vld [vmem:[%s11127_s10] sm:$0xff] }
 0x854   :  { %v1932_v18 = vsel %vm271_vm0, %v1926_v16, 0.0  ;;  %v9211_v30 = vpack.c.bf16 %v2065_v29, %v2064_v5 }
 0x855   :  { %1933 = vadd.xlane.f32.xlu1 %v1932_v18  ;;  %v1929_v19 = vsel %vm271_vm0, %v1925_v17, 0.0 }
 0x856   :  { %1930 = vadd.xlane.f32.xlu0 %v1929_v19  ;;  %9212 = vmatprep.subr.bf16.mxu0 %v9211_v30 }
 0x857   :  { %9214 = vmatpush3.bf16.msra.mxu0 %v9211_v30 }
 0x858   :  { %9216 = vmatprep.subr.bf16.mxu0 %v9215_v33 }
 0x85b   :  { %9218 = vmatpush3.bf16.msra.mxu0 %v9215_v33 }
 0x85c   :  { %9223 = vmatprep.subr.bf16.mxu0 %v10021_v44 }
 0x85e   :  { %8687 = vmatmul.mubr.msk.f32.vlgmr.msra.gmra.mrb[12].mxu0 %vm271_vm0, %v257_v35 }
 0x85f   :  { %8689 = vmatprep.mubr.msk.f32.mxu0 %vm271_vm0, %v258_v36 }
 0x862   :  { %8690 = vmatmul.mubr.msk.f32.gmra.mrb[14].mxu0 %vm271_vm0, %v259_v37 }
 0x863   :  { %8703 = vmatprep.mubr.msk.f32.mxu0 %vm10009_vm1, %v10008_v8 }
 0x8e2   :  { %v1934_v20 = vpop.xlane.xlu1 %1933 }
 0x8e3   :  { %v1937_v21 = vmul.f32 0.03125, %v1934_v20  ;;  %v1931_v22 = vpop.xlane.xlu0 %1930  ;;  %v8059_v20 = vld [vmem:[#allocation10] ss:$0 sm:$0xff] }
 0x8e4   :  { %v1936_v23 = vmul.f32 0.03125, %v1931_v22 }
 0x8e5   :  { %v1939_v24 = vsub.f32 %v1926_v16, %v1937_v21 }
 0x8e6   :  { %v1938_v25 = vsub.f32 %v1925_v17, %v1936_v23 }
 0x8e7   :  { %v1941_v28 = vmul.f32 %v1939_v24, %v1939_v24 }
 0x8e8   :  { %v1940_v26 = vmul.f32 %v1938_v25, %v1938_v25 }
 0x8e9   :  { %v1945_v7 = vsel %vm271_vm0, %v1941_v28, 0.0 }
 0x8ea   :  { %v1942_v27 = vsel %vm271_vm0, %v1940_v26, 0.0 }
 0x8eb   :  { %1943 = vadd.xlane.f32.xlu0 %v1942_v27 }
 0x8ef   :  { %1946 = vadd.xlane.f32.xlu0 %v1945_v7 }
 0x931   :  { %v8688_v62 = vpop.f32.mrb[12].mxu0 }
 0x932   :  { %v2159_v63 = vadd.f32 %v8688_v62, %v8062_v61  ;;  %v2153_v0 = vpop.f32.mrb[13].mxu0 }
 0x933   :  { %v2154_v1 = vadd.f32 %v8062_v61, %v2153_v0 }
 0x935   :  { %v9499_v3 = vpack.i.bf16 %v2159_v63, %v2154_v1  ;;  %v9220_v4 = vpack.c.bf16 %v2159_v63, %v2154_v1  ;;  %v8691_v6 = vpop.f32.mrb[14].mxu0 }
 0x936   :  { %v2169_v9 = vadd.f32 %v8691_v6, %v8062_v61  ;;  %v2163_v10 = vpop.f32.mrb[15].mxu0  ;;  %v2172_v6 = vld [vmem:[%s11129_s12] sm:$0xff] }
 0x937   :  { %9500 = vrot.lane.b32.xlu1 %v9499_v3, %s10011_s7  ;;  %v2164_v11 = vadd.f32 %v8062_v61, %v2163_v10 }
 0x939   :  { %v9224_v12 = vpack.c.bf16 %v2169_v9, %v2164_v11  ;;  %v9514_v13 = vpack.i.bf16 %v2169_v9, %v2164_v11 }
 0x93b   :  { %9510 = vrot.lane.b32.xlu1 %v9499_v3, %s10013_s5  ;;  %9226 = vmatpush3.bf16.xpose.msk.msra.mxu0 %vm10533_vm3, %v9224_v12 }
 0x93c   :  { %9505 = vrot.lane.b32.xlu0 %v9514_v13, %s10011_s7  ;;  %9233 = vmatprep.subr.bf16.mxu0 %v10021_v44 }
 0x93f   :  { %9515 = vrot.lane.b32.xlu1 %v9514_v13, %s10013_s5 }
 0x978   :  { %v1944_v45 = vpop.xlane.xlu0 %1943 }
 0x979   :  { %v1948_v46 = vmul.f32 0.03125, %v1944_v45 }
 0x97b   :  { %v1950_v47 = vadd.f32 1e-05, %v1948_v46 }
 0x97c   :  { %v1947_v48 = vpop.xlane.xlu0 %1946 }
 0x97d   :  { %9639 = vrsqrt.f32 %v1950_v47  ;;  %v1949_v49 = vmul.f32 0.03125, %v1947_v48 }
 0x97f   :  { %v1951_v50 = vadd.f32 1e-05, %v1949_v49 }
 0x981   :  { %9641 = vrsqrt.f32 %v1951_v50  ;;  %v2173_v50 = vld [vmem:[%s11129_s12 + $0x8] sm:$0xff] }
 0x987   :  { %v9640_v51 = vpop.eup %9639 }
 0x988   :  { %v1954_v53 = vmul.f32 %v9640_v51, %v1938_v25 }
 0x98a   :  { %v1962_v55 = vmul.f32 %v8057_v52, %v1954_v53 }
 0x98b   :  { %v9642_v56 = vpop.eup %9641 }
 0x98c   :  { %v1955_v57 = vmul.f32 %v9642_v56, %v1939_v24  ;;  %v10521_v58 = vadd.f32 %v8058_v54, %v1962_v55 }
 0x98e   :  { %v1963_v59 = vmul.f32 %v8057_v52, %v1955_v57  ;;  %8675 = vmatprep.mubr.msk.f32.mxu1 %vm271_vm0, %v10521_v58 }
 0x990   :  { %v10525_v60 = vadd.f32 %v8058_v54, %v1963_v59 }
 0x992   :  { %8676 = vmatmul.mubr.msk.f32.vlgmr.msra.gmra.mrb[24].mxu1 %vm271_vm0, %v10525_v60 }
 0x993   :  { %8696 = vmatprep.mubr.msk.f32.mxu1 %vm10009_vm1, %v10008_v8  ;;  %9222 = vmatpush3.bf16.xpose.msk.msra.mxu1 %vm10533_vm3, %v9220_v4 }
 0x994   :  { %9227 = vmatprep.subr.bf16.mxu1 %v10021_v44 }
 0x9a9   :  { %v9501_v14 = vpop.permute.xlu1 %9500 }
 0x9aa   :  { %v9503_v16 = vunpack.i.h.bf16 %v9501_v14  ;;  %v9502_v17 = vunpack.i.l.bf16 %v9501_v14 }
 0x9ac   :  { %v9228_v24 = vpack.c.bf16 %v9503_v16, %v9502_v17 }
 0x9ad   :  { %v9511_v15 = vpop.permute.xlu1 %9510 }
 0x9ae   :  { %v9513_v18 = vunpack.i.h.bf16 %v9511_v15  ;;  %v9512_v19 = vunpack.i.l.bf16 %v9511_v15  ;;  %v9506_v27 = vpop.permute.xlu0 %9505 }
 0x9af   :  { %v9508_v31 = vunpack.i.h.bf16 %v9506_v27  ;;  %v9507_v32 = vunpack.i.l.bf16 %v9506_v27 }
 0x9b0   :  { %v9234_v25 = vpack.c.bf16 %v9513_v18, %v9512_v19 }
 0x9b1   :  { %v9516_v33 = vpop.permute.xlu1 %9515  ;;  %v9231_v35 = vpack.c.bf16 %v9508_v31, %v9507_v32 }
 0x9b2   :  { %v9518_v40 = vunpack.i.h.bf16 %v9516_v33  ;;  %v9517_v41 = vunpack.i.l.bf16 %v9516_v33 }
 0x9b4   :  { %v9238_v42 = vpack.c.bf16 %v9518_v40, %v9517_v41 }
 0xa65   :  { %v8677_v21 = vpop.f32.mrb[24].mxu1 }
 0xa66   :  { %v2061_v22 = vadd.f32 %v8677_v21, %v8059_v20  ;;  %v2055_v23 = vpop.f32.mrb[25].mxu1 }
 0xa67   :  { %v2056_v26 = vadd.f32 %v8059_v20, %v2055_v23 }
 0xa68   :  { %2576 = vrot.lane.b32.xlu1 %v2061_v22, %s10013_s5  ;;  %8704 = vmatmul.mubr.msk.f32.vlgmr.msra.gmra.mrb[16].mxu0 %vm361_vm2, %v2061_v22 }
 0xa69   :  { %2494 = vrot.lane.b32.xlu0 %v2056_v26, %s10013_s5  ;;  %8697 = vmatmul.mubr.msk.f32.vlgmr.msra.gmra.mrb[26].mxu1 %vm361_vm2, %v2056_v26 }
 0xa6a   :  { %9236 = vmatpush3.bf16.xpose.msk.msra.mxu0 %vm10533_vm3, %v9234_v25  ;;  %9229 = vmatpush3.bf16.msra.mxu1 %v9228_v24  ;;  %v2174_v24 = vld [vmem:[%s11129_s12 + $0x10] sm:$0xff] }
 0xa6b   :  { %8724 = vmatprep.mubr.msk.f32.mxu0 %vm10009_vm1, %v10008_v8  ;;  %9241 = vmatprep.subr.bf16.mxu0 %v10021_v44 }
 0xa6c   :  { %9525 = vrot.lane.b32.xlu1 %v9514_v13, %s10012_s14  ;;  %8710 = vmatprep.mubr.msk.f32.mxu1 %vm10009_vm1, %v10008_v8 }
 0xa6d   :  { %9520 = vrot.lane.b32.xlu0 %v9499_v3, %s10012_s14  ;;  %9230 = vmatprep.subr.bf16.mxu1 %v10021_v44 }
 0xa70   :  { %9535 = vrot.lane.b32.xlu1 %v9514_v13, %s10015_s30 }
 0xa71   :  { %9530 = vrot.lane.b32.xlu0 %v9499_v3, %s10015_s30 }
 0xa74   :  { %3060 = vrot.lane.b32.xlu1 %v2061_v22, %s10015_s30 }
 0xa75   :  { %2978 = vrot.lane.b32.xlu0 %v2056_v26, %s10015_s30 }
 0xa78   :  { %9545 = vrot.lane.b32.xlu1 %v9514_v13, %s10016_s27 }
 0xa79   :  { %9540 = vrot.lane.b32.xlu0 %v9499_v3, %s10016_s27 }
 0xa7c   :  { %9555 = vrot.lane.b32.xlu1 %v9514_v13, %s10019_s11 }
 0xa7d   :  { %9550 = vrot.lane.b32.xlu0 %v9499_v3, %s10019_s11 }
 0xa80   :  { %3465 = vrot.lane.b32.xlu1 %v2061_v22, %s10019_s11 }
 0xa81   :  { %3383 = vrot.lane.b32.xlu0 %v2056_v26, %s10019_s11 }
 0xa84   :  { %9565 = vrot.lane.b32.xlu1 %v9514_v13, %s10018_s13 }
 0xa85   :  { %9560 = vrot.lane.b32.xlu0 %v9499_v3, %s10018_s13 }
 0xada   :  { %v2577_v39 = vpop.permute.xlu1 %2576 }
 0xadb   :  { %v2495_v28 = vpop.permute.xlu0 %2494 }
 0xadc   :  { %8725 = vmatmul.mubr.msk.f32.vlgmr.msra.gmra.mrb[18].mxu0 %vm361_vm2, %v2495_v28 }
 0xadd   :  { %8738 = vmatprep.mubr.msk.f32.mxu0 %vm10009_vm1, %v10008_v8 }
 0xade   :  { %v9526_v43 = vpop.permute.xlu1 %9525 }
 0xadf   :  { %v9521_v7 = vpop.permute.xlu0 %9520  ;;  %v9528_v45 = vunpack.i.h.bf16 %v9526_v43  ;;  %v9527_v46 = vunpack.i.l.bf16 %v9526_v43 }
 0xae0   :  { %v9523_v5 = vunpack.i.h.bf16 %v9521_v7  ;;  %v9522_v29 = vunpack.i.l.bf16 %v9521_v7 }
 0xae1   :  { %v9245_v47 = vpack.c.bf16 %v9528_v45, %v9527_v46 }
 0xae2   :  { %v9242_v30 = vpack.c.bf16 %v9523_v5, %v9522_v29  ;;  %v9536_v11 = vpop.permute.xlu1 %9535 }
 0xae3   :  { %v9531_v55 = vpop.permute.xlu0 %9530  ;;  %v9538_v16 = vunpack.i.h.bf16 %v9536_v11  ;;  %v9537_v17 = vunpack.i.l.bf16 %v9536_v11 }
 0xae4   :  { %9243 = vmatpush3.bf16.msra.mxu0 %v9242_v30  ;;  %v9533_v57 = vunpack.i.h.bf16 %v9531_v55  ;;  %v9532_v59 = vunpack.i.l.bf16 %v9531_v55 }
 0xae5   :  { %8748 = vmatprep.subr.mxu0 %v2173_v50  ;;  %v9252_v20 = vpack.c.bf16 %v9538_v16, %v9537_v17  ;;  %v3842_v16 = vld [vmem:[#allocation17] sm:$0xff]  ;;  %v3843_v17 = vld [vmem:[#allocation17 + $0x8] sm:$0xff] }
 0xae6   :  { %v9248_v61 = vpack.c.bf16 %v9533_v57, %v9532_v59  ;;  %v3061_v12 = vpop.permute.xlu1 %3060  ;;  %v8107_v57 = vld [vmem:[#allocation13] ss:$0 sm:$0xff] }
 0xae7   :  { %v2979_v56 = vpop.permute.xlu0 %2978 }
 0xaea   :  { %v9546_v14 = vpop.permute.xlu1 %9545 }
 0xaeb   :  { %v9541_v63 = vpop.permute.xlu0 %9540  ;;  %v9548_v18 = vunpack.i.h.bf16 %v9546_v14  ;;  %v9547_v19 = vunpack.i.l.bf16 %v9546_v14 }
 0xaec   :  { %v9543_v1 = vunpack.i.h.bf16 %v9541_v63  ;;  %v9542_v3 = vunpack.i.l.bf16 %v9541_v63 }
 0xaed   :  { %v9259_v21 = vpack.c.bf16 %v9548_v18, %v9547_v19  ;;  %v9275_v18 = vpack.c.bf16 %v3843_v17, %v3842_v16  ;;  %v3844_v19 = vld [vmem:[#allocation17 + $0x10] sm:$0xff] }
 0xaee   :  { %v9256_v4 = vpack.c.bf16 %v9543_v1, %v9542_v3 }
 0xaef   :  { %v9551_v25 = vpop.permute.xlu0 %9550 }
 0xaf0   :  { %v9553_v7 = vunpack.i.h.bf16 %v9551_v25  ;;  %v9552_v5 = vunpack.i.l.bf16 %v9551_v25 }
 0xaf2   :  { %v9262_v29 = vpack.c.bf16 %v9553_v7, %v9552_v5  ;;  %v3941_v7 = vld [vmem:[%s11135_s18 + $0x28] sm:$0xff] }
 0xaf3   :  { %v3384_v28 = vpop.permute.xlu0 %3383 }
 0xaf7   :  { %v9561_v31 = vpop.permute.xlu0 %9560 }
 0xaf8   :  { %v9563_v33 = vunpack.i.h.bf16 %v9561_v31 }
 0xb3b   :  { %v2331_v34 = vpop.f32.mrb[16].mxu0 }
 0xb3c   :  { %v2252_v36 = vpop.f32.mrb[26].mxu1  ;;  %v8705_v37 = vpop.f32.mrb[17].mxu0 }
 0xb3d   :  { %v8698_v38 = vpop.f32.mrb[27].mxu1  ;;  %8711 = vmatmul.mubr.msk.f32.vlgmr.msra.gmra.mrb[28].mxu1 %vm2341_vm4, %v2252_v36  ;;  %v9556_v36 = vpop.permute.xlu1 %9555 }
 0xb3e   :  { %9232 = vmatpush3.bf16.msra.mxu1 %v9231_v35  ;;  %8717 = vmatprep.mubr.msk.f32.mxu1 %vm10009_vm1, %v10008_v8  ;;  %v9558_v38 = vunpack.i.h.bf16 %v9556_v36 }
 0xb3f   :  { %9237 = vmatprep.subr.bf16.mxu1 %v10021_v44 }
 0xb41   :  { %8718 = vmatmul.mubr.msk.f32.vlgmr.msra.gmra.mrb[30].mxu1 %vm2341_vm4, %v2331_v34  ;;  %v9562_v34 = vunpack.i.l.bf16 %v9561_v31  ;;  %v3466_v37 = vpop.permute.xlu1 %3465 }
 0xb42   :  { %8731 = vmatprep.mubr.msk.f32.mxu1 %vm10009_vm1, %v10008_v8 }
 0xb43   :  { %v9270_v35 = vpack.c.bf16 %v9563_v33, %v9562_v34  ;;  %v3945_v33 = vld [vmem:[%s11135_s18 + $0x48] sm:$0xff] }
 0xb47   :  { %9240 = vmatpush3.bf16.xpose.msk.msra.mxu1 %vm10533_vm3, %v9238_v42  ;;  %v9566_v42 = vpop.permute.xlu1 %9565 }
 0xb48   :  { %9244 = vmatprep.subr.bf16.mxu1 %v10021_v44  ;;  %v9568_v45 = vunpack.i.h.bf16 %v9566_v42  ;;  %v9567_v46 = vunpack.i.l.bf16 %v9566_v42 }
 0xb4e   :  { %8732 = vmatmul.mubr.msk.f32.vlgmr.msra.gmra.mrb[32].mxu1 %vm361_vm2, %v2577_v39  ;;  %v9557_v39 = vunpack.i.l.bf16 %v9556_v36  ;;  %v3947_v36 = vld [vmem:[%s11135_s18 + $0x58] sm:$0xff] }
 0xb4f   :  { %9246 = vmatpush3.bf16.msra.mxu1 %v9245_v47  ;;  %8745 = vmatprep.mubr.msk.f32.mxu1 %vm10009_vm1, %v10008_v8  ;;  %v9273_v47 = vpack.c.bf16 %v9568_v45, %v9567_v46 }
 0xb50   :  { %9247 = vmatprep.subr.bf16.mxu1 %v10021_v44  ;;  %v9266_v40 = vpack.c.bf16 %v9558_v38, %v9557_v39  ;;  %v3948_v38 = vld [vmem:[%s11135_s18 + $0x60] sm:$0xff]  ;;  %v3949_v39 = vld [vmem:[%s11135_s18 + $0x68] sm:$0xff] }
 0xbaf   :  { %v2572_v48 = vpop.f32.mrb[18].mxu0 }
 0xbb0   :  { %v8726_v49 = vpop.f32.mrb[19].mxu0  ;;  %8739 = vmatmul.mubr.msk.f32.vlgmr.msra.gmra.mrb[20].mxu0 %vm2341_vm4, %v2572_v48 }
 0xbb1   :  { %8749 = vmatpush3.msra.mxu0 %v2173_v50  ;;  %v2175_v50 = vld [vmem:[%s11129_s12 + $0x18] sm:$0xff] }
 0xbb2   :  { %8753 = vmatprep.subr.mxu0 %v2172_v6 }
 0xc10   :  { %v2411_v51 = vpop.f32.mrb[28].mxu1 }
 0xc11   :  { %v8712_v52 = vpop.f32.mrb[29].mxu1 }
 0xc14   :  { %v2490_v53 = vpop.f32.mrb[30].mxu1 }
 0xc15   :  { %v8719_v54 = vpop.f32.mrb[31].mxu1 }
 0xc21   :  { %v2654_v62 = vpop.f32.mrb[32].mxu1 }
 0xc22   :  { %v8733_v0 = vpop.f32.mrb[33].mxu1  ;;  %8746 = vmatmul.mubr.msk.f32.vlgmr.msra.gmra.mrb[34].mxu1 %vm2341_vm4, %v2654_v62 }
 0xc23   :  { %9250 = vmatpush3.bf16.xpose.msk.msra.mxu1 %vm10533_vm3, %v9248_v61  ;;  %8762 = vmatprep.mubr.msk.f32.mxu1 %vm10009_vm1, %v10008_v8 }
 0xc24   :  { %9255 = vmatprep.subr.bf16.mxu1 %v10021_v44 }
 0xc2a   :  { %8763 = vmatmul.mubr.msk.f32.vlgmr.msra.gmra.mrb[36].mxu1 %vm361_vm2, %v2979_v56 }
 0xc2b   :  { %9257 = vmatpush3.bf16.msra.mxu1 %v9256_v4  ;;  %8776 = vmatprep.mubr.msk.f32.mxu1 %vm10009_vm1, %v10008_v8 }
 0xc2c   :  { %9258 = vmatprep.subr.bf16.mxu1 %v10021_v44 }
 0xc83   :  { %v2733_v9 = vpop.f32.mrb[20].mxu0 }
 0xc84   :  { %v8740_v10 = vpop.f32.mrb[21].mxu0  ;;  %8750 = vmatprep.mubr.msk.f32.mxu0 %vm361_vm2, %v2733_v9 }
 0xcf5   :  { %v2812_v13 = vpop.f32.mrb[34].mxu1 }
 0xcf6   :  { %v8747_v15 = vpop.f32.mrb[35].mxu1  ;;  %8751 = vmatmul.mubr.msk.f32.vlgmr.msra.gmra.mrb[22].mxu0 %vm361_vm2, %v2812_v13 }
 0xcf7   :  { %8754 = vmatpush3.msra.mxu0 %v2172_v6  ;;  %8755 = vmatprep.mubr.msk.f32.mxu0 %vm361_vm2, %v2411_v51 }
 0xcf8   :  { %9251 = vmatprep.subr.bf16.mxu0 %v10021_v44 }
 0xcfd   :  { %v3056_v22 = vpop.f32.mrb[36].mxu1 }
 0xcfe   :  { %v8764_v23 = vpop.f32.mrb[37].mxu1  ;;  %8777 = vmatmul.mubr.msk.f32.vlgmr.msra.gmra.mrb[38].mxu1 %vm2341_vm4, %v3056_v22  ;;  %8756 = vmatmul.mubr.msk.f32.vlgmr.msra.gmra.mrb[22].mxu0 %vm361_vm2, %v2490_v53  ;;  %v3936_v22 = vld [vmem:[%s11135_s18] sm:$0xff] }
 0xcff   :  { %9260 = vmatpush3.bf16.msra.mxu1 %v9259_v21  ;;  %9254 = vmatpush3.bf16.xpose.msk.msra.mxu0 %vm10533_vm3, %v9252_v20  ;;  %v3845_v20 = vld [vmem:[#allocation17 + $0x18] sm:$0xff]  ;;  %v3937_v23 = vld [vmem:[%s11135_s18 + $0x8] sm:$0xff] }
 0xd00   :  { %8769 = vmatprep.mubr.msk.f32.mxu0 %vm10009_vm1, %v10008_v8  ;;  %8783 = vmatprep.mubr.msk.f32.mxu1 %vm10009_vm1, %v10008_v8  ;;  %v9279_v21 = vpack.c.bf16 %v3845_v20, %v3844_v19  ;;  %v9283_v25 = vpack.c.bf16 %v3937_v23, %v3936_v22 }
 0xd01   :  { %9261 = vmatprep.subr.bf16.mxu1 %v10021_v44  ;;  %8786 = vmatprep.subr.mxu0 %v2174_v24 }
 0xd06   :  { %8770 = vmatmul.mubr.msk.f32.vlgmr.msra.gmra.mrb[24].mxu0 %vm361_vm2, %v3061_v12 }
 0xd07   :  { %8787 = vmatpush3.msra.mxu0 %v2174_v24  ;;  %v3938_v24 = vld [vmem:[%s11135_s18 + $0x10] sm:$0xff] }
 0xd08   :  { %9265 = vmatprep.subr.bf16.mxu0 %v10021_v44 }
 0xdd1   :  { %v3217_v26 = vpop.f32.mrb[38].mxu1 }
 0xdd2   :  { %v8778_v27 = vpop.f32.mrb[39].mxu1  ;;  %8788 = vmatprep.mubr.msk.f32.mxu0 %vm361_vm2, %v3217_v26  ;;  %v3939_v26 = vld [vmem:[%s11135_s18 + $0x18] sm:$0xff] }
 0xdd3   :  { %v9287_v27 = vpack.c.bf16 %v3939_v26, %v3938_v24 }
 0xdd9   :  { %v3138_v30 = vpop.f32.mrb[24].mxu0 }
 0xdda   :  { %v8771_v32 = vpop.f32.mrb[25].mxu0  ;;  %8784 = vmatmul.mubr.msk.f32.vlgmr.msra.gmra.mrb[40].mxu1 %vm2341_vm4, %v3138_v30  ;;  %v3943_v30 = vld [vmem:[%s11135_s18 + $0x38] sm:$0xff] }
 0xddb   :  { %9264 = vmatpush3.bf16.xpose.msk.msra.mxu1 %vm10533_vm3, %v9262_v29  ;;  %8795 = vmatprep.mubr.msk.f32.mxu1 %vm10009_vm1, %v10008_v8  ;;  %v3942_v29 = vld [vmem:[%s11135_s18 + $0x30] sm:$0xff]  ;;  %v3944_v32 = vld [vmem:[%s11135_s18 + $0x40] sm:$0xff] }
 0xddc   :  { %9269 = vmatprep.subr.bf16.mxu1 %v10021_v44  ;;  %v9295_v31 = vpack.c.bf16 %v3943_v30, %v3942_v29  ;;  %v9299_v34 = vpack.c.bf16 %v3945_v33, %v3944_v32  ;;  %v8119_v29 = vld [vmem:[%s11170_s1 + $0x38] sm:$0xff] }
 0xde2   :  { %8796 = vmatmul.mubr.msk.f32.vlgmr.msra.gmra.mrb[42].mxu1 %vm361_vm2, %v3384_v28  ;;  %v3940_v28 = vld [vmem:[%s11135_s18 + $0x20] sm:$0xff] }
 0xde3   :  { %9271 = vmatpush3.bf16.msra.mxu1 %v9270_v35  ;;  %8809 = vmatprep.mubr.msk.f32.mxu1 %vm10009_vm1, %v10008_v8  ;;  %v9291_v5 = vpack.c.bf16 %v3941_v7, %v3940_v28  ;;  %v3946_v35 = vld [vmem:[%s11135_s18 + $0x50] sm:$0xff]  ;;  %v8117_v28 = vld [vmem:[%s11170_s1 + $0x28] sm:$0xff] }
 0xde4   :  { %9276 = vmatprep.subr.bf16.mxu1 %v9275_v18 }
 0xead   :  { %v3296_v41 = vpop.f32.mrb[40].mxu1 }
 0xeae   :  { %v8785_v43 = vpop.f32.mrb[41].mxu1  ;;  %8789 = vmatmul.mubr.msk.f32.vlgmr.msra.gmra.mrb[22].mxu0 %vm361_vm2, %v3296_v41 }
 0xeaf   :  { %9268 = vmatpush3.bf16.xpose.msk.msra.mxu0 %vm10533_vm3, %v9266_v40  ;;  %8802 = vmatprep.mubr.msk.f32.mxu0 %vm10009_vm1, %v10008_v8  ;;  %v9307_v40 = vpack.c.bf16 %v3949_v39, %v3948_v38  ;;  %v8114_v38 = vld [vmem:[%s11137_s20] ss:$0 sm:$0xff] }
 0xeb0   :  { %9272 = vmatprep.subr.bf16.mxu0 %v10021_v44 }
 0xeb5   :  { %v3461_v48 = vpop.f32.mrb[42].mxu1 }
 0xeb6   :  { %v8797_v49 = vpop.f32.mrb[43].mxu1  ;;  %8803 = vmatmul.mubr.msk.f32.vlgmr.msra.gmra.mrb[26].mxu0 %vm361_vm2, %v3466_v37  ;;  %8810 = vmatmul.mubr.msk.f32.vlgmr.msra.gmra.mrb[44].mxu1 %vm2341_vm4, %v3461_v48  ;;  %v9303_v37 = vpack.c.bf16 %v3947_v36, %v3946_v35 }
 0xeb7   :  { %9274 = vmatpush3.bf16.msra.mxu0 %v9273_v47  ;;  %8816 = vmatprep.mubr.msk.f32.mxu0 %vm10009_vm1, %v10008_v8  ;;  %v8108_v49 = vld [vmem:[#allocation14] ss:$0 sm:$0xff] }
 0xeb8   :  { %8819 = vmatprep.subr.mxu0 %v2175_v50  ;;  %9278 = vmatpush3.bf16.msra.mxu1 %v9275_v18 }
 0xeb9   :  { %9280 = vmatprep.subr.bf16.mxu1 %v9279_v21 }
 0xebc   :  { %9282 = vmatpush3.bf16.msra.mxu1 %v9279_v21 }
 0xf89   :  { %v3543_v51 = vpop.f32.mrb[26].mxu0  ;;  %v3622_v52 = vpop.f32.mrb[44].mxu1 }
 0xf8a   :  { %v8804_v53 = vpop.f32.mrb[27].mxu0  ;;  %v8811_v54 = vpop.f32.mrb[45].mxu1  ;;  %8817 = vmatmul.mubr.msk.f32.vlgmr.msra.gmra.mrb[28].mxu0 %vm2341_vm4, %v3543_v51  ;;  %v8109_v51 = vld [vmem:[#allocation16] ss:$0 sm:$0xff] }
 0xf8b   :  { %8821 = vmatprep.mubr.msk.f32.mxu0 %vm361_vm2, %v3622_v52  ;;  %8820 = vmatpush3.msra.mxu0 %v2175_v50 }
 0xf8c   :  { %9284 = vmatprep.subr.bf16.mxu0 %v9283_v25 }
0x105d   :  { %v3701_v55 = vpop.f32.mrb[28].mxu0 }
0x105e   :  { %v8818_v56 = vpop.f32.mrb[29].mxu0  ;;  %8822 = vmatmul.mubr.msk.f32.vlgmr.msra.gmra.mrb[22].mxu0 %vm361_vm2, %v3701_v55 }
0x105f   :  { %9286 = vmatpush3.bf16.msra.mxu0 %v9283_v25 }
0x1060   :  { %9288 = vmatprep.subr.bf16.mxu0 %v9287_v27 }
0x1063   :  { %9290 = vmatpush3.bf16.msra.mxu0 %v9287_v27  ;;  %v8116_v27 = vld [vmem:[%s11170_s1 + $0x20] sm:$0xff] }
0x1064   :  { %9292 = vmatprep.subr.bf16.mxu0 %v9291_v5  ;;  %v9315_v7 = vpack.c.bf16 %v8117_v28, %v8116_v27 }
0x1066   :  { %9316 = vmatprep.subr.bf16.mxu1 %v9315_v7 }
0x1067   :  { %9294 = vmatpush3.bf16.msra.mxu0 %v9291_v5  ;;  %v8118_v5 = vld [vmem:[%s11170_s1 + $0x30] sm:$0xff] }
0x1068   :  { %9296 = vmatprep.subr.bf16.mxu0 %v9295_v31  ;;  %v9319_v30 = vpack.c.bf16 %v8119_v29, %v8118_v5 }
0x106b   :  { %9298 = vmatpush3.bf16.msra.mxu0 %v9295_v31 }
0x106c   :  { %9300 = vmatprep.subr.bf16.mxu0 %v9299_v34 }
0x106f   :  { %9302 = vmatpush3.bf16.msra.mxu0 %v9299_v34 }
0x1070   :  { %9304 = vmatprep.subr.bf16.mxu0 %v9303_v37 }
0x1073   :  { %9306 = vmatpush3.bf16.msra.mxu0 %v9303_v37 }
0x1074   :  { %9308 = vmatprep.subr.bf16.mxu0 %v9307_v40 }
0x1077   :  { %9310 = vmatpush3.bf16.msra.mxu0 %v9307_v40 }
0x1131   :  { %v8823_v59 = vpop.f32.mrb[22].mxu0 }
0x1132   :  { %v3795_v61 = vadd.f32 %v8823_v59, %v8107_v57  ;;  %v3777_v62 = vpop.f32.mrb[23].mxu0  ;;  %v3950_v59 = vld [vmem:[%s11135_s18 + $0x70] sm:$0xff] }
0x1133   :  { %v3794_v63 = vadd.f32 %v8107_v57, %v3777_v62 }
0x1134   :  { %v3797_v0 = vadd.f32 %v3795_v61, %v10525_v60  ;;  %v3951_v61 = vld [vmem:[%s11135_s18 + $0x78] sm:$0xff] }
0x1135   :  { %v3796_v1 = vadd.f32 %v3794_v63, %v10521_v58  ;;  %v9311_v62 = vpack.c.bf16 %v3951_v61, %v3950_v59  ;;  %v8110_v63 = vld [vmem:[#allocation19] ss:$0 sm:$0xff] }
0x1136   :  { %v3803_v3 = vsel %vm271_vm0, %v3797_v0, 0.0 }
0x1137   :  { %3804 = vadd.xlane.f32.xlu1 %v3803_v3  ;;  %v3800_v4 = vsel %vm271_vm0, %v3796_v1, 0.0  ;;  %9312 = vmatprep.subr.bf16.mxu0 %v9311_v62 }
0x1138   :  { %3801 = vadd.xlane.f32.xlu0 %v3800_v4  ;;  %9314 = vmatpush3.bf16.msra.mxu0 %v9311_v62 }
0x1139   :  { %8911 = vmatprep.subr.mxu0 %v10008_v8 }
0x11c4   :  { %v3805_v6 = vpop.xlane.xlu1 %3804 }
0x11c5   :  { %v3807_v9 = vmul.f32 0.03125, %v3805_v6  ;;  %v3802_v10 = vpop.xlane.xlu0 %3801 }
0x11c6   :  { %v3806_v11 = vmul.f32 0.03125, %v3802_v10  ;;  %v8113_v10 = vld [vmem:[#allocation20] ss:$0 sm:$0xff] }
0x11c7   :  { %v10655_v12 = vsub.f32 %v3797_v0, %v3807_v9 }
0x11c8   :  { %v3808_v13 = vsub.f32 %v3796_v1, %v3806_v11 }
0x11c9   :  { %v3811_v60 = vmul.f32 %v10655_v12, %v10655_v12 }
0x11ca   :  { %v3810_v14 = vmul.f32 %v3808_v13, %v3808_v13 }
0x11cb   :  { %v3815_v58 = vsel %vm271_vm0, %v3811_v60, 0.0 }
0x11cc   :  { %v3812_v15 = vsel %vm271_vm0, %v3810_v14, 0.0 }
0x11cd   :  { %3813 = vadd.xlane.f32.xlu0 %v3812_v15 }
0x11d1   :  { %3816 = vadd.xlane.f32.xlu0 %v3815_v58 }
0x125a   :  { %v3814_v41 = vpop.xlane.xlu0 %3813 }
0x125b   :  { %v3818_v42 = vmul.f32 0.03125, %v3814_v41 }
0x125d   :  { %v3820_v43 = vadd.f32 1e-05, %v3818_v42  ;;  %v8115_v42 = vld [vmem:[%s11177_s28] ss:$0 sm:$0xff] }
0x125e   :  { %v3817_v45 = vpop.xlane.xlu0 %3816 }
0x125f   :  { %9643 = vrsqrt.f32 %v3820_v43  ;;  %v3819_v46 = vmul.f32 0.03125, %v3817_v45 }
0x1261   :  { %v3821_v47 = vadd.f32 1e-05, %v3819_v46 }
0x1263   :  { %9645 = vrsqrt.f32 %v3821_v47 }
0x1269   :  { %v9644_v48 = vpop.eup %9643 }
0x126a   :  { %v3824_v50 = vmul.f32 %v9644_v48, %v3808_v13  ;;  %v8121_v48 = vld [vmem:[%s11171_s29 + $0x1] ss:$0 sm:$0xff]  ;;  %s11178_s29 = sld [smem:[#allocation42_spill]] }
0x126c   :  { %v3832_v52 = vmul.f32 %v8108_v49, %v3824_v50 }
0x126d   :  { %v9646_v53 = vpop.eup %9645 }
0x126e   :  { %v3825_v54 = vmul.f32 %v9646_v53, %v10655_v12  ;;  %v3840_v55 = vadd.f32 %v8109_v51, %v3832_v52 }
0x1270   :  { %v3833_v56 = vmul.f32 %v8108_v49, %v3825_v54  ;;  %8832 = vmatprep.mubr.msk.f32.mxu1 %vm271_vm0, %v3840_v55 }
0x1272   :  { %v3841_v57 = vadd.f32 %v8109_v51, %v3833_v56 }
0x1274   :  { %8833 = vmatmul.mubr.msk.f32.vlgmr.msra.gmra.mrb[46].mxu1 %vm271_vm0, %v3841_v57 }
0x1275   :  { %9318 = vmatpush3.bf16.msra.mxu1 %v9315_v7 }
0x1276   :  { %9320 = vmatprep.subr.bf16.mxu1 %v9319_v30 }
0x1279   :  { %9322 = vmatpush3.bf16.msra.mxu1 %v9319_v30 }
0x127a   :  { %8881 = vmatprep.subr.mxu1 %v10008_v8 }
0x1347   :  { %v8834_v0 = vpop.f32.mrb[46].mxu1 }
0x1348   :  { %v3931_v1 = vadd.f32 %v8834_v0, %v8110_v63  ;;  %v3925_v3 = vpop.f32.mrb[47].mxu1 }
0x1349   :  { %v3926_v4 = vadd.f32 %v8110_v63, %v3925_v3 }
0x134a   :  { %v3935_v9 = vmax.f32 %v3931_v1, 0.0 }
0x134b   :  { %v3934_v6 = vmax.f32 %v3926_v4, 0.0 }
0x134d   :  { %8867 = vmatprep.mubr.f32.mxu0 %v3934_v6 }
0x134e   :  { %8868 = vmatmul.mubr.f32.vlgmr.msra.gmra.mrb[30].mxu0 %v3935_v9 }
0x134f   :  { %8913 = vmatprep.mubr.msk.f32.mxu0 %vm10009_vm1, %v10008_v8 }
0x1421   :  { %v8869_v11 = vpop.f32.mrb[30].mxu0 }
0x1422   :  { %v4031_v12 = vadd.f32 %v8869_v11, %v8113_v10  ;;  %v4025_v13 = vpop.f32.mrb[31].mxu0 }
0x1423   :  { %v4026_v14 = vadd.f32 %v8113_v10, %v4025_v13 }
0x1424   :  { %v4035_v15 = vadd.f32 %v4031_v12, %v3841_v57 }
0x1425   :  { %v4034_v60 = vadd.f32 %v4026_v14, %v3840_v55 }
0x1426   :  { %v4041_v58 = vsel %vm271_vm0, %v4035_v15, 0.0 }
0x1427   :  { %4042 = vadd.xlane.f32.xlu0 %v4041_v58  ;;  %v4038_v16 = vsel %vm271_vm0, %v4034_v60, 0.0 }
0x1428   :  { %4039 = vadd.xlane.f32.xlu1 %v4038_v16 }
0x14b4   :  { %v4043_v17 = vpop.xlane.xlu0 %4042 }
0x14b5   :  { %v4045_v18 = vmul.f32 0.03125, %v4043_v17  ;;  %v4040_v19 = vpop.xlane.xlu1 %4039 }
0x14b6   :  { %v4044_v20 = vmul.f32 0.03125, %v4040_v19 }
0x14b7   :  { %v4047_v21 = vsub.f32 %v4035_v15, %v4045_v18 }
0x14b8   :  { %v4046_v22 = vsub.f32 %v4034_v60, %v4044_v20  ;;  %v8125_v20 = vld [vmem:[%s11172_s4 + $0x28] sm:$0xff] }
0x14b9   :  { %v4049_v23 = vmul.f32 %v4047_v21, %v4047_v21 }
0x14ba   :  { %v4048_v24 = vmul.f32 %v4046_v22, %v4046_v22 }
0x14bb   :  { %v4053_v25 = vsel %vm271_vm0, %v4049_v23, 0.0 }
0x14bc   :  { %4054 = vadd.xlane.f32.xlu0 %v4053_v25  ;;  %v4050_v26 = vsel %vm271_vm0, %v4048_v24, 0.0 }
0x14bd   :  { %4051 = vadd.xlane.f32.xlu1 %v4050_v26 }
0x1549   :  { %v4055_v31 = vpop.xlane.xlu0 %4054 }
0x154a   :  { %v4057_v32 = vmul.f32 0.03125, %v4055_v31  ;;  %v4052_v33 = vpop.xlane.xlu1 %4051  ;;  %v8126_v31 = vld [vmem:[%s11172_s4 + $0x30] sm:$0xff] }
0x154b   :  { %v4056_v34 = vmul.f32 0.03125, %v4052_v33 }
0x154c   :  { %v4059_v35 = vadd.f32 1e-05, %v4057_v32 }
0x154d   :  { %v4058_v36 = vadd.f32 1e-05, %v4056_v34 }
0x154e   :  { %9647 = vrsqrt.f32 %v4059_v35 }
0x154f   :  { %9649 = vrsqrt.f32 %v4058_v36 }
0x1558   :  { %v9648_v37 = vpop.eup %9647 }
0x1559   :  { %v9650_v39 = vpop.eup %9649  ;;  %v4063_v40 = vmul.f32 %v9648_v37, %v4047_v21  ;;  %v8124_v21 = vld [vmem:[%s11172_s4 + $0x20] sm:$0xff] }
0x155a   :  { %v4062_v41 = vmul.f32 %v9650_v39, %v4046_v22 }
0x155b   :  { %v4071_v43 = vmul.f32 %v8114_v38, %v4063_v40 }
0x155c   :  { %v4070_v45 = vmul.f32 %v8114_v38, %v4062_v41 }
0x155d   :  { %v10740_v47 = vadd.f32 %v8115_v42, %v4071_v43 }
0x155e   :  { %v10738_v46 = vadd.f32 %v8115_v42, %v4070_v45  ;;  %v8127_v42 = vld [vmem:[%s11172_s4 + $0x38] sm:$0xff] }
0x1560   :  { %8878 = vmatprep.mubr.msk.f32.mxu1 %vm271_vm0, %v10738_v46 }
0x1561   :  { %8879 = vmatmul.mubr.msk.f32.vlgmr.msra.gmra.mrb[48].mxu1 %vm271_vm0, %v10740_v47 }
0x1562   :  { %8883 = vmatprep.mubr.msk.f32.mxu1 %vm10009_vm1, %v10008_v8 }
0x1634   :  { %v8880_v49 = vpop.f32.mrb[48].mxu1 }
0x1635   :  { %v4171_v50 = vadd.f32 %v8880_v49, %v8121_v48  ;;  %v4165_v51 = vpop.f32.mrb[49].mxu1 }
0x1636   :  { %v4166_v52 = vadd.f32 %v8121_v48, %v4165_v51 }
0x1637   :  { %4259 = vrot.lane.b32.xlu0 %v4171_v50, %s10011_s7 }
0x1638   :  { %4182 = vrot.lane.b32.xlu1 %v4166_v52, %s10011_s7 }
0x163b   :  { %4489 = vrot.lane.b32.xlu0 %v4166_v52, %s10012_s14 }
0x163c   :  { %4335 = vrot.lane.b32.xlu1 %v4166_v52, %s10010_s15 }
0x163f   :  { %4567 = vrot.lane.b32.xlu0 %v4171_v50, %s10012_s14 }
0x1640   :  { %4411 = vrot.lane.b32.xlu1 %v4171_v50, %s10010_s15 }
0x1643   :  { %4643 = vrot.lane.b32.xlu0 %v4166_v52, %s10014_s0 }
0x1644   :  { %4487 = vrot.lane.b32.xlu1 %v4166_v52, %s10013_s5 }
0x1647   :  { %4959 = vrot.lane.b32.xlu0 %v4166_v52, %s10016_s27 }
0x1648   :  { %4565 = vrot.lane.b32.xlu1 %v4171_v50, %s10013_s5 }
0x164b   :  { %5037 = vrot.lane.b32.xlu0 %v4171_v50, %s10016_s27 }
0x164c   :  { %4719 = vrot.lane.b32.xlu1 %v4171_v50, %s10014_s0 }
0x164f   :  { %5113 = vrot.lane.b32.xlu0 %v4166_v52, %s10017_s2 }
0x1650   :  { %4957 = vrot.lane.b32.xlu1 %v4166_v52, %s10015_s30 }
0x1653   :  { %5350 = vrot.lane.b32.xlu0 %v4166_v52, %s10018_s13 }
0x1654   :  { %5035 = vrot.lane.b32.xlu1 %v4171_v50, %s10015_s30 }
0x1657   :  { %5348 = vrot.lane.b32.xlu0 %v4166_v52, %s10019_s11 }
0x1658   :  { %5189 = vrot.lane.b32.xlu1 %v4171_v50, %s10017_s2 }
0x165b   :  { %5504 = vrot.lane.b32.xlu0 %v4166_v52, %s10020_s24 }
0x165c   :  { %5428 = vrot.lane.b32.xlu1 %v4171_v50, %s10018_s13 }
0x1660   :  { %5426 = vrot.lane.b32.xlu1 %v4171_v50, %s10019_s11 }
0x1664   :  { %5580 = vrot.lane.b32.xlu1 %v4171_v50, %s10020_s24 }
0x16a9   :  { %v4260_v53 = vpop.permute.xlu0 %4259 }
0x16aa   :  { %v4183_v54 = vpop.permute.xlu1 %4182 }
0x16ab   :  { %8882 = vmatpush3.xpose.msk.msra.mxu1 %vm361_vm2, %v4183_v54 }
0x16ac   :  { %8886 = vmatprep.subr.mxu1 %v10008_v8 }
0x16ad   :  { %v4490_v55 = vpop.permute.xlu0 %4489 }
0x16ae   :  { %8884 = vmatmul.mubr.msk.f32.vlgmr.msra.gmra.mrb[50].mxu1 %vm361_vm2, %v4166_v52  ;;  %v4336_v57 = vpop.permute.xlu1 %4335  ;;  %v9663_v52 = vld [vmem:[#allocation5] sm:$0xff] }
0x16af   :  { %8887 = vmatpush3.xpose.msk.msra.mxu1 %vm361_vm2, %v4260_v53  ;;  %8888 = vmatprep.mubr.msk.f32.mxu1 %vm10009_vm1, %v10008_v8  ;;  %v8161_v53 = vld [vmem:[%s11173_s21 + $0x1] ss:$0 sm:$0xff] }
0x16b0   :  { %8891 = vmatprep.subr.mxu1 %v10008_v8 }
0x16b1   :  { %v4568_v56 = vpop.permute.xlu0 %4567 }
0x16b2   :  { %8889 = vmatmul.mubr.msk.f32.vlgmr.msra.gmra.mrb[52].mxu1 %vm361_vm2, %v4171_v50  ;;  %v4412_v61 = vpop.permute.xlu1 %4411 }
0x16b3   :  { %8892 = vmatpush3.msra.mxu1 %v4336_v57  ;;  %8893 = vmatprep.mubr.msk.f32.mxu1 %vm10009_vm1, %v10008_v8 }
0x16b4   :  { %8896 = vmatprep.subr.mxu1 %v10008_v8 }
0x16b5   :  { %v4644_v59 = vpop.permute.xlu0 %4643 }
0x16b6   :  { %8912 = vmatpush3.msra.mxu0 %v4644_v59  ;;  %v4488_v0 = vpop.permute.xlu1 %4487 }
0x16b7   :  { %8921 = vmatprep.subr.mxu0 %v8125_v20 }
0x16b9   :  { %v4960_v60 = vpop.permute.xlu0 %4959 }
0x16ba   :  { %v4566_v4 = vpop.permute.xlu1 %4565 }
0x16bd   :  { %v5038_v18 = vpop.permute.xlu0 %5037 }
0x16be   :  { %v4720_v6 = vpop.permute.xlu1 %4719 }
0x16c1   :  { %v5114_v22 = vpop.permute.xlu0 %5113 }
0x16c2   :  { %v4958_v14 = vpop.permute.xlu1 %4957 }
0x16c5   :  { %v5351_v26 = vpop.permute.xlu0 %5350 }
0x16c6   :  { %v5036_v17 = vpop.permute.xlu1 %5035 }
0x16c9   :  { %v5349_v5 = vpop.permute.xlu0 %5348 }
0x16ca   :  { %v5190_v19 = vpop.permute.xlu1 %5189 }
0x16cd   :  { %v5505_v32 = vpop.permute.xlu0 %5504 }
0x16ce   :  { %v5429_v33 = vpop.permute.xlu1 %5428 }
0x16d2   :  { %v5427_v36 = vpop.permute.xlu1 %5426 }
0x16d6   :  { %v5581_v41 = vpop.permute.xlu1 %5580 }
0x1781   :  { %v4254_v62 = vpop.f32.mrb[50].mxu1 }
0x1782   :  { %v8885_v63 = vpop.f32.mrb[51].mxu1  ;;  %8894 = vmatmul.mubr.msk.f32.vlgmr.msra.gmra.mrb[54].mxu1 %vm361_vm2, %v4254_v62 }
0x1783   :  { %8897 = vmatpush3.msra.mxu1 %v4412_v61  ;;  %8898 = vmatprep.mubr.msk.f32.mxu1 %vm10009_vm1, %v10008_v8 }
0x1784   :  { %8901 = vmatprep.subr.mxu1 %v10008_v8 }
0x1785   :  { %v4331_v1 = vpop.f32.mrb[52].mxu1 }
0x1786   :  { %v8890_v3 = vpop.f32.mrb[53].mxu1  ;;  %8899 = vmatmul.mubr.msk.f32.vlgmr.msra.gmra.mrb[56].mxu1 %vm361_vm2, %v4331_v1 }
0x1787   :  { %8903 = vmatprep.mubr.msk.f32.mxu1 %vm10009_vm1, %v10008_v8 }
0x178a   :  { %8902 = vmatpush3.xpose.msk.msra.mxu1 %vm361_vm2, %v4490_v55 }
0x178b   :  { %8906 = vmatprep.subr.mxu1 %v10008_v8 }
0x178d   :  { %8904 = vmatmul.mubr.msk.f32.vlgmr.msra.gmra.mrb[58].mxu1 %vm361_vm2, %v4488_v0 }
0x178e   :  { %8907 = vmatpush3.xpose.msk.msra.mxu1 %vm361_vm2, %v4568_v56  ;;  %8908 = vmatprep.mubr.msk.f32.mxu1 %vm10009_vm1, %v10008_v8 }
0x178f   :  { %8916 = vmatprep.subr.mxu1 %v10008_v8 }
0x1791   :  { %8909 = vmatmul.mubr.msk.f32.vlgmr.msra.gmra.mrb[60].mxu1 %vm361_vm2, %v4566_v4 }
0x1792   :  { %8917 = vmatpush3.msra.mxu1 %v4720_v6  ;;  %8918 = vmatprep.mubr.msk.f32.mxu1 %vm10009_vm1, %v10008_v8 }
0x1793   :  { %8931 = vmatprep.subr.mxu1 %v10008_v8 }
0x1855   :  { %v4407_v9 = vpop.f32.mrb[54].mxu1 }
0x1856   :  { %v8895_v10 = vpop.f32.mrb[55].mxu1 }
0x1859   :  { %v4483_v11 = vpop.f32.mrb[56].mxu1 }
0x185a   :  { %v8900_v12 = vpop.f32.mrb[57].mxu1 }
0x1860   :  { %v4561_v13 = vpop.f32.mrb[58].mxu1 }
0x1861   :  { %v8905_v15 = vpop.f32.mrb[59].mxu1  ;;  %8914 = vmatmul.mubr.msk.f32.vlgmr.msra.gmra.mrb[32].mxu0 %vm361_vm2, %v4561_v13  ;;  %v8172_v13 = vld [vmem:[%s11127_s10 + $0x28] sm:$0xff] }
0x1862   :  { %8922 = vmatpush3.msra.mxu0 %v8125_v20  ;;  %v8173_v15 = vld [vmem:[%s11127_s10 + $0x30] sm:$0xff]  ;;  %v8165_v20 = vld [vmem:[%s11174_s17 + $0x28] sm:$0xff] }
0x1863   :  { %8926 = vmatprep.subr.mxu0 %v8124_v21 }
0x1864   :  { %v4639_v58 = vpop.f32.mrb[60].mxu1 }
0x1865   :  { %v8910_v16 = vpop.f32.mrb[61].mxu1  ;;  %8919 = vmatmul.mubr.msk.f32.vlgmr.msra.gmra.mrb[62].mxu1 %vm361_vm2, %v4639_v58 }
0x1866   :  { %8932 = vmatpush3.xpose.msk.msra.mxu1 %vm361_vm2, %v4960_v60  ;;  %8933 = vmatprep.mubr.msk.f32.mxu1 %vm10009_vm1, %v10008_v8  ;;  %v8174_v60 = vld [vmem:[%s11127_s10 + $0x38] sm:$0xff] }
0x1867   :  { %8936 = vmatprep.subr.mxu1 %v10008_v8  ;;  %v9335_v58 = vpack.c.bf16 %v8174_v60, %v8173_v15  ;;  %v9664_v16 = vld [vmem:[#allocation5 + $0x8] sm:$0xff] }
0x1869   :  { %8934 = vmatmul.mubr.msk.f32.vlgmr.msra.gmra.mrb[64].mxu1 %vm361_vm2, %v4958_v14 }
0x186a   :  { %8937 = vmatpush3.xpose.msk.msra.mxu1 %vm361_vm2, %v5038_v18  ;;  %8938 = vmatprep.mubr.msk.f32.mxu1 %vm10009_vm1, %v10008_v8  ;;  %v9666_v18 = vld [vmem:[#allocation5 + $0x18] sm:$0xff] }
0x186b   :  { %8946 = vmatprep.subr.mxu1 %v10008_v8 }
0x186d   :  { %8939 = vmatmul.mubr.msk.f32.vlgmr.msra.gmra.mrb[66].mxu1 %vm361_vm2, %v5036_v17  ;;  %v9665_v17 = vld [vmem:[#allocation5 + $0x10] sm:$0xff] }
0x186e   :  { %8947 = vmatpush3.msra.mxu1 %v5190_v19  ;;  %8948 = vmatprep.mubr.msk.f32.mxu1 %vm10009_vm1, %v10008_v8  ;;  %v8164_v19 = vld [vmem:[%s11174_s17 + $0x20] sm:$0xff] }
0x186f   :  { %8956 = vmatprep.subr.mxu1 %v10008_v8 }
0x1934   :  { %v4715_v23 = vpop.f32.mrb[32].mxu0 }
0x1935   :  { %v8915_v24 = vpop.f32.mrb[33].mxu0  ;;  %8923 = vmatprep.mubr.msk.f32.mxu0 %vm361_vm2, %v4715_v23  ;;  %v8167_v23 = vld [vmem:[%s11174_s17 + $0x38] sm:$0xff] }
0x1938   :  { %v4791_v25 = vpop.f32.mrb[62].mxu1 }
0x1939   :  { %v8920_v27 = vpop.f32.mrb[63].mxu1  ;;  %8924 = vmatmul.mubr.msk.f32.vlgmr.msra.gmra.mrb[34].mxu0 %vm361_vm2, %v4791_v25 }
0x193a   :  { %8927 = vmatpush3.msra.mxu0 %v8124_v21  ;;  %8928 = vmatprep.mubr.msk.f32.mxu0 %vm361_vm2, %v4407_v9  ;;  %v9323_v21 = vpack.c.bf16 %v8165_v20, %v8164_v19 }
0x193b   :  { %8941 = vmatprep.subr.mxu0 %v10008_v8 }
0x193c   :  { %v5031_v28 = vpop.f32.mrb[64].mxu1 }
0x193d   :  { %v8935_v7 = vpop.f32.mrb[65].mxu1 }
0x1940   :  { %v5109_v29 = vpop.f32.mrb[66].mxu1 }
0x1941   :  { %8929 = vmatmul.mubr.msk.f32.vlgmr.msra.gmra.mrb[34].mxu0 %vm361_vm2, %v4483_v11  ;;  %v8940_v30 = vpop.f32.mrb[67].mxu1  ;;  %8949 = vmatmul.mubr.msk.f32.vlgmr.msra.gmra.mrb[68].mxu1 %vm361_vm2, %v5109_v29 }
0x1942   :  { %8942 = vmatpush3.msra.mxu0 %v5114_v22  ;;  %8957 = vmatpush3.xpose.msk.msra.mxu1 %vm361_vm2, %v5351_v26  ;;  %v8166_v22 = vld [vmem:[%s11174_s17 + $0x30] sm:$0xff] }
0x1943   :  { %8943 = vmatprep.mubr.msk.f32.mxu0 %vm10009_vm1, %v10008_v8  ;;  %8958 = vmatprep.mubr.msk.f32.mxu1 %vm10009_vm1, %v10008_v8  ;;  %v9327_v24 = vpack.c.bf16 %v8167_v23, %v8166_v22  ;;  %v8162_v30 = vld [vmem:[#allocation7 + $0x1] ss:$0 sm:$0xff] }
0x1944   :  { %8966 = vmatprep.subr.mxu1 %v10008_v8  ;;  %8951 = vmatprep.subr.mxu0 %v8126_v31 }
0x1945   :  { %8944 = vmatmul.mubr.msk.f32.vlgmr.msra.gmra.mrb[36].mxu0 %vm361_vm2, %v5031_v28  ;;  %8959 = vmatmul.mubr.msk.f32.vlgmr.msra.gmra.mrb[70].mxu1 %vm361_vm2, %v5349_v5 }
0x1946   :  { %8967 = vmatpush3.msra.mxu1 %v5505_v32  ;;  %8952 = vmatpush3.msra.mxu0 %v8126_v31  ;;  %v8163_v32 = vld [vmem:[#allocation8 + $0x1] ss:$0 sm:$0xff] }
0x1947   :  { %8968 = vmatprep.mubr.msk.f32.mxu1 %vm10009_vm1, %v10008_v8  ;;  %8961 = vmatprep.subr.mxu0 %v10008_v8 }
0x1948   :  { %9324 = vmatprep.subr.bf16.mxu1 %v9323_v21 }
0x1a14   :  { %v5261_v34 = vpop.f32.mrb[68].mxu1 }
0x1a15   :  { %v8950_v35 = vpop.f32.mrb[69].mxu1 }
0x1a18   :  { %v5185_v37 = vpop.f32.mrb[36].mxu0  ;;  %v5422_v38 = vpop.f32.mrb[70].mxu1 }
0x1a19   :  { %v8945_v39 = vpop.f32.mrb[37].mxu0  ;;  %8953 = vmatprep.mubr.msk.f32.mxu0 %vm361_vm2, %v5185_v37  ;;  %v8960_v40 = vpop.f32.mrb[71].mxu1  ;;  %8969 = vmatmul.mubr.msk.f32.vlgmr.msra.gmra.mrb[72].mxu1 %vm361_vm2, %v5422_v38 }
0x1a1a   :  { %8954 = vmatmul.mubr.msk.f32.vlgmr.msra.gmra.mrb[34].mxu0 %vm361_vm2, %v5261_v34  ;;  %9326 = vmatpush3.bf16.msra.mxu1 %v9323_v21  ;;  %v8175_v39 = vld [vmem:[#allocation11 + $0x1] ss:$0 sm:$0xff] }
0x1a1b   :  { %8962 = vmatpush3.xpose.msk.msra.mxu0 %vm361_vm2, %v5429_v33  ;;  %8963 = vmatprep.mubr.msk.f32.mxu0 %vm10009_vm1, %v10008_v8 }
0x1a1c   :  { %8971 = vmatprep.subr.mxu0 %v10008_v8  ;;  %9328 = vmatprep.subr.bf16.mxu1 %v9327_v24 }
0x1a1e   :  { %8964 = vmatmul.mubr.msk.f32.vlgmr.msra.gmra.mrb[38].mxu0 %vm361_vm2, %v5427_v36  ;;  %9330 = vmatpush3.bf16.msra.mxu1 %v9327_v24 }
0x1a1f   :  { %8972 = vmatpush3.msra.mxu0 %v5581_v41  ;;  %8973 = vmatprep.mubr.msk.f32.mxu0 %vm10009_vm1, %v10008_v8 }
0x1a20   :  { %8976 = vmatprep.subr.mxu0 %v8127_v42  ;;  %9339 = vmatprep.subr.bf16.mxu1 %v10021_v44 }
0x1aec   :  { %v5576_v43 = vpop.f32.mrb[72].mxu1 }
0x1aed   :  { %v8970_v45 = vpop.f32.mrb[73].mxu1 }
0x1af1   :  { %v5500_v48 = vpop.f32.mrb[38].mxu0 }
0x1af2   :  { %v8965_v49 = vpop.f32.mrb[39].mxu0  ;;  %8974 = vmatmul.mubr.msk.f32.vlgmr.msra.gmra.mrb[40].mxu0 %vm361_vm2, %v5500_v48 }
0x1af3   :  { %8978 = vmatprep.mubr.msk.f32.mxu0 %vm361_vm2, %v5576_v43  ;;  %8977 = vmatpush3.msra.mxu0 %v8127_v42 }
0x1bc5   :  { %v5652_v50 = vpop.f32.mrb[40].mxu0 }
0x1bc6   :  { %v8975_v51 = vpop.f32.mrb[41].mxu0  ;;  %8979 = vmatmul.mubr.msk.f32.vlgmr.msra.gmra.mrb[34].mxu0 %vm361_vm2, %v5652_v50 }
0x1bc7   :  { %9000 = vmatprep.mubr.msk.f32.mxu0 %vm271_vm0, %v9663_v52 }
0x1c99   :  { %v8980_v54 = vpop.f32.mrb[34].mxu0 }
0x1c9a   :  { %v5746_v55 = vadd.f32 %v8980_v54, %v8161_v53  ;;  %v5728_v56 = vpop.f32.mrb[35].mxu0 }
0x1c9b   :  { %v5745_v57 = vadd.f32 %v8161_v53, %v5728_v56 }
0x1c9c   :  { %v5748_v59 = vadd.f32 %v5746_v55, %v10740_v47 }
0x1c9d   :  { %v5747_v61 = vadd.f32 %v5745_v57, %v10738_v46  ;;  %v8171_v46 = vld [vmem:[%s11127_s10 + $0x20] sm:$0xff] }
0x1c9e   :  { %v5756_v62 = vsel %vm271_vm0, %v5748_v59, 0.0  ;;  %v9331_v14 = vpack.c.bf16 %v8172_v13, %v8171_v46 }
0x1c9f   :  { %5757 = vadd.xlane.f32.xlu1 %v5756_v62  ;;  %v5753_v63 = vsel %vm271_vm0, %v5747_v61, 0.0 }
0x1ca0   :  { %5754 = vadd.xlane.f32.xlu0 %v5753_v63  ;;  %9332 = vmatprep.subr.bf16.mxu0 %v9331_v14  ;;  %v8168_v63 = vld [vmem:[#allocation10 + $0x1] ss:$0 sm:$0xff] }
0x1ca1   :  { %9334 = vmatpush3.bf16.msra.mxu0 %v9331_v14 }
0x1ca2   :  { %9336 = vmatprep.subr.bf16.mxu0 %v9335_v58 }
0x1ca5   :  { %9338 = vmatpush3.bf16.msra.mxu0 %v9335_v58 }
0x1ca6   :  { %9343 = vmatprep.subr.bf16.mxu0 %v10021_v44 }
0x1ca8   :  { %9001 = vmatmul.mubr.msk.f32.vlgmr.msra.gmra.mrb[42].mxu0 %vm271_vm0, %v9664_v16 }
0x1ca9   :  { %9003 = vmatprep.mubr.msk.f32.mxu0 %vm271_vm0, %v9665_v17 }
0x1cac   :  { %9004 = vmatmul.mubr.msk.f32.gmra.mrb[44].mxu0 %vm271_vm0, %v9666_v18 }
0x1cad   :  { %9017 = vmatprep.mubr.msk.f32.mxu0 %vm10009_vm1, %v10008_v8 }
0x1d2c   :  { %v5758_v0 = vpop.xlane.xlu1 %5757 }
0x1d2d   :  { %v5760_v1 = vmul.f32 0.03125, %v5758_v0  ;;  %v5755_v3 = vpop.xlane.xlu0 %5754 }
0x1d2e   :  { %v5759_v4 = vmul.f32 0.03125, %v5755_v3 }
0x1d2f   :  { %v5762_v6 = vsub.f32 %v5748_v59, %v5760_v1 }
0x1d30   :  { %v5761_v9 = vsub.f32 %v5747_v61, %v5759_v4 }
0x1d31   :  { %v5764_v12 = vmul.f32 %v5762_v6, %v5762_v6 }
0x1d32   :  { %v5763_v10 = vmul.f32 %v5761_v9, %v5761_v9 }
0x1d33   :  { %v5768_v47 = vsel %vm271_vm0, %v5764_v12, 0.0 }
0x1d34   :  { %v5765_v11 = vsel %vm271_vm0, %v5763_v10, 0.0 }
0x1d35   :  { %5766 = vadd.xlane.f32.xlu0 %v5765_v11 }
0x1d39   :  { %5769 = vadd.xlane.f32.xlu0 %v5768_v47 }
0x1d7b   :  { %v9002_v40 = vpop.f32.mrb[42].mxu0 }
0x1d7c   :  { %v5974_v41 = vadd.f32 %v9002_v40, %v8175_v39  ;;  %v5968_v42 = vpop.f32.mrb[43].mxu0 }
0x1d7d   :  { %v5969_v43 = vadd.f32 %v8175_v39, %v5968_v42 }
0x1d7f   :  { %v9569_v45 = vpack.i.bf16 %v5974_v41, %v5969_v43  ;;  %v9005_v48 = vpop.f32.mrb[44].mxu0  ;;  %v9340_v49 = vpack.c.bf16 %v5974_v41, %v5969_v43 }
0x1d80   :  { %v5984_v50 = vadd.f32 %v9005_v48, %v8175_v39  ;;  %v5978_v51 = vpop.f32.mrb[45].mxu0 }
0x1d81   :  { %9570 = vrot.lane.b32.xlu1 %v9569_v45, %s10011_s7  ;;  %v5979_v52 = vadd.f32 %v8175_v39, %v5978_v51 }
0x1d83   :  { %v9344_v53 = vpack.c.bf16 %v5984_v50, %v5979_v52  ;;  %v9584_v54 = vpack.i.bf16 %v5984_v50, %v5979_v52 }
0x1d85   :  { %9580 = vrot.lane.b32.xlu1 %v9569_v45, %s10013_s5  ;;  %9346 = vmatpush3.bf16.xpose.msk.msra.mxu0 %vm10533_vm3, %v9344_v53 }
0x1d86   :  { %9575 = vrot.lane.b32.xlu0 %v9584_v54, %s10011_s7  ;;  %9353 = vmatprep.subr.bf16.mxu0 %v10021_v44 }
0x1d89   :  { %9585 = vrot.lane.b32.xlu1 %v9584_v54, %s10013_s5 }
0x1dc2   :  { %v5767_v25 = vpop.xlane.xlu0 %5766 }
0x1dc3   :  { %v5771_v26 = vmul.f32 0.03125, %v5767_v25 }
0x1dc5   :  { %v5773_v27 = vadd.f32 1e-05, %v5771_v26 }
0x1dc6   :  { %v5770_v28 = vpop.xlane.xlu0 %5769 }
0x1dc7   :  { %9651 = vrsqrt.f32 %v5773_v27  ;;  %v5772_v7 = vmul.f32 0.03125, %v5770_v28 }
0x1dc9   :  { %v5774_v5 = vadd.f32 1e-05, %v5772_v7 }
0x1dcb   :  { %9653 = vrsqrt.f32 %v5774_v5  ;;  %v8181_v5 = vld [vmem:[%s11129_s12 + $0x28] sm:$0xff] }
0x1dd1   :  { %v9652_v29 = vpop.eup %9651 }
0x1dd2   :  { %v5777_v31 = vmul.f32 %v9652_v29, %v5761_v9 }
0x1dd4   :  { %v5785_v33 = vmul.f32 %v8162_v30, %v5777_v31 }
0x1dd5   :  { %v9654_v34 = vpop.eup %9653 }
0x1dd6   :  { %v5778_v35 = vmul.f32 %v9654_v34, %v5762_v6  ;;  %v10900_v36 = vadd.f32 %v8163_v32, %v5785_v33 }
0x1dd8   :  { %v5786_v37 = vmul.f32 %v8162_v30, %v5778_v35  ;;  %8989 = vmatprep.mubr.msk.f32.mxu1 %vm271_vm0, %v10900_v36 }
0x1dda   :  { %v10904_v38 = vadd.f32 %v8163_v32, %v5786_v37 }
0x1ddc   :  { %8990 = vmatmul.mubr.msk.f32.vlgmr.msra.gmra.mrb[74].mxu1 %vm271_vm0, %v10904_v38 }
0x1ddd   :  { %9010 = vmatprep.mubr.msk.f32.mxu1 %vm10009_vm1, %v10008_v8  ;;  %9342 = vmatpush3.bf16.xpose.msk.msra.mxu1 %vm10533_vm3, %v9340_v49  ;;  %v8180_v49 = vld [vmem:[%s11129_s12 + $0x20] sm:$0xff] }
0x1dde   :  { %9347 = vmatprep.subr.bf16.mxu1 %v10021_v44 }
0x1df3   :  { %v9571_v55 = vpop.permute.xlu1 %9570 }
0x1df4   :  { %v9573_v57 = vunpack.i.h.bf16 %v9571_v55  ;;  %v9572_v59 = vunpack.i.l.bf16 %v9571_v55 }
0x1df6   :  { %v9348_v4 = vpack.c.bf16 %v9573_v57, %v9572_v59 }
0x1df7   :  { %v9581_v56 = vpop.permute.xlu1 %9580 }
0x1df8   :  { %v9583_v61 = vunpack.i.h.bf16 %v9581_v56  ;;  %v9582_v62 = vunpack.i.l.bf16 %v9581_v56  ;;  %v9576_v10 = vpop.permute.xlu0 %9575 }
0x1df9   :  { %v9578_v14 = vunpack.i.h.bf16 %v9576_v10  ;;  %v9577_v15 = vunpack.i.l.bf16 %v9576_v10 }
0x1dfa   :  { %v9354_v6 = vpack.c.bf16 %v9583_v61, %v9582_v62 }
0x1dfb   :  { %v9586_v60 = vpop.permute.xlu1 %9585  ;;  %v9351_v16 = vpack.c.bf16 %v9578_v14, %v9577_v15 }
0x1dfc   :  { %v9588_v21 = vunpack.i.h.bf16 %v9586_v60  ;;  %v9587_v22 = vunpack.i.l.bf16 %v9586_v60 }
0x1dfe   :  { %v9358_v23 = vpack.c.bf16 %v9588_v21, %v9587_v22 }
0x1eaf   :  { %v8991_v0 = vpop.f32.mrb[74].mxu1 }
0x1eb0   :  { %v5886_v1 = vadd.f32 %v8991_v0, %v8168_v63  ;;  %v5880_v3 = vpop.f32.mrb[75].mxu1 }
0x1eb1   :  { %v5881_v9 = vadd.f32 %v8168_v63, %v5880_v3 }
0x1eb2   :  { %6392 = vrot.lane.b32.xlu1 %v5886_v1, %s10013_s5  ;;  %9018 = vmatmul.mubr.msk.f32.vlgmr.msra.gmra.mrb[46].mxu0 %vm361_vm2, %v5886_v1 }
0x1eb3   :  { %6310 = vrot.lane.b32.xlu0 %v5881_v9, %s10013_s5  ;;  %9011 = vmatmul.mubr.msk.f32.vlgmr.msra.gmra.mrb[76].mxu1 %vm361_vm2, %v5881_v9 }
0x1eb4   :  { %9356 = vmatpush3.bf16.xpose.msk.msra.mxu0 %vm10533_vm3, %v9354_v6  ;;  %9349 = vmatpush3.bf16.msra.mxu1 %v9348_v4  ;;  %v8182_v4 = vld [vmem:[%s11129_s12 + $0x30] sm:$0xff] }
0x1eb5   :  { %9038 = vmatprep.mubr.msk.f32.mxu0 %vm10009_vm1, %v10008_v8  ;;  %9361 = vmatprep.subr.bf16.mxu0 %v10021_v44 }
0x1eb6   :  { %9595 = vrot.lane.b32.xlu1 %v9584_v54, %s10012_s14  ;;  %9024 = vmatprep.mubr.msk.f32.mxu1 %vm10009_vm1, %v10008_v8 }
0x1eb7   :  { %9590 = vrot.lane.b32.xlu0 %v9569_v45, %s10012_s14  ;;  %9350 = vmatprep.subr.bf16.mxu1 %v10021_v44 }
0x1eba   :  { %9605 = vrot.lane.b32.xlu1 %v9584_v54, %s10015_s30 }
0x1ebb   :  { %9600 = vrot.lane.b32.xlu0 %v9569_v45, %s10015_s30 }
0x1ebe   :  { %6876 = vrot.lane.b32.xlu1 %v5886_v1, %s10015_s30 }
0x1ebf   :  { %6794 = vrot.lane.b32.xlu0 %v5881_v9, %s10015_s30 }
0x1ec2   :  { %9615 = vrot.lane.b32.xlu1 %v9584_v54, %s10016_s27 }
0x1ec3   :  { %9610 = vrot.lane.b32.xlu0 %v9569_v45, %s10016_s27 }
0x1ec6   :  { %9625 = vrot.lane.b32.xlu1 %v9584_v54, %s10019_s11 }
0x1ec7   :  { %9620 = vrot.lane.b32.xlu0 %v9569_v45, %s10019_s11 }
0x1eca   :  { %7281 = vrot.lane.b32.xlu1 %v5886_v1, %s10019_s11 }
0x1ecb   :  { %7199 = vrot.lane.b32.xlu0 %v5881_v9, %s10019_s11 }
0x1ece   :  { %9635 = vrot.lane.b32.xlu1 %v9584_v54, %s10018_s13 }
0x1ecf   :  { %9630 = vrot.lane.b32.xlu0 %v9569_v45, %s10018_s13 }
0x1f24   :  { %v6393_v20 = vpop.permute.xlu1 %6392 }
0x1f25   :  { %v6311_v11 = vpop.permute.xlu0 %6310 }
0x1f26   :  { %9039 = vmatmul.mubr.msk.f32.vlgmr.msra.gmra.mrb[48].mxu0 %vm361_vm2, %v6311_v11 }
0x1f27   :  { %9052 = vmatprep.mubr.msk.f32.mxu0 %vm10009_vm1, %v10008_v8 }
0x1f28   :  { %v9596_v24 = vpop.permute.xlu1 %9595 }
0x1f29   :  { %v9591_v12 = vpop.permute.xlu0 %9590  ;;  %v9598_v25 = vunpack.i.h.bf16 %v9596_v24  ;;  %v9597_v26 = vunpack.i.l.bf16 %v9596_v24 }
0x1f2a   :  { %v9593_v47 = vunpack.i.h.bf16 %v9591_v12  ;;  %v9592_v46 = vunpack.i.l.bf16 %v9591_v12 }
0x1f2b   :  { %v9365_v27 = vpack.c.bf16 %v9598_v25, %v9597_v26 }
0x1f2c   :  { %v9362_v13 = vpack.c.bf16 %v9593_v47, %v9592_v46  ;;  %v9606_v52 = vpop.permute.xlu1 %9605 }
0x1f2d   :  { %v9601_v33 = vpop.permute.xlu0 %9600  ;;  %v9608_v57 = vunpack.i.h.bf16 %v9606_v52  ;;  %v9607_v59 = vunpack.i.l.bf16 %v9606_v52 }
0x1f2e   :  { %9363 = vmatpush3.bf16.msra.mxu0 %v9362_v13  ;;  %v9603_v35 = vunpack.i.h.bf16 %v9601_v33  ;;  %v9602_v37 = vunpack.i.l.bf16 %v9601_v33  ;;  %v8224_v33 = vld [vmem:[#allocation13 + $0x1] ss:$0 sm:$0xff] }
0x1f2f   :  { %9062 = vmatprep.subr.mxu0 %v8181_v5  ;;  %v9372_v63 = vpack.c.bf16 %v9608_v57, %v9607_v59  ;;  %v7663_v57 = vld [vmem:[#allocation17 + $0x30] sm:$0xff]  ;;  %v7664_v59 = vld [vmem:[#allocation17 + $0x38] sm:$0xff] }
0x1f30   :  { %v9368_v39 = vpack.c.bf16 %v9603_v35, %v9602_v37  ;;  %v6877_v53 = vpop.permute.xlu1 %6876 }
0x1f31   :  { %v6795_v34 = vpop.permute.xlu0 %6794 }
0x1f34   :  { %v9616_v55 = vpop.permute.xlu1 %9615 }
0x1f35   :  { %v9611_v41 = vpop.permute.xlu0 %9610  ;;  %v9618_v61 = vunpack.i.h.bf16 %v9616_v55  ;;  %v9617_v62 = vunpack.i.l.bf16 %v9616_v55  ;;  %v7662_v55 = vld [vmem:[#allocation17 + $0x28] sm:$0xff] }
0x1f36   :  { %v9613_v43 = vunpack.i.h.bf16 %v9611_v41  ;;  %v9612_v45 = vunpack.i.l.bf16 %v9611_v41 }
0x1f37   :  { %v9379_v0 = vpack.c.bf16 %v9618_v61, %v9617_v62  ;;  %v9399_v61 = vpack.c.bf16 %v7664_v59, %v7663_v57  ;;  %v8230_v62 = vld [vmem:[%s11135_s18 + $0x80] sm:$0xff] }
0x1f38   :  { %v9376_v48 = vpack.c.bf16 %v9613_v43, %v9612_v45 }
0x1f39   :  { %v9621_v6 = vpop.permute.xlu0 %9620 }
0x1f3a   :  { %v9623_v12 = vunpack.i.h.bf16 %v9621_v6  ;;  %v9622_v47 = vunpack.i.l.bf16 %v9621_v6  ;;  %v8234_v6 = vld [vmem:[%s11135_s18 + $0xa0] sm:$0xff] }
0x1f3c   :  { %v9382_v46 = vpack.c.bf16 %v9623_v12, %v9622_v47  ;;  %v8237_v12 = vld [vmem:[%s11135_s18 + $0xb8] sm:$0xff] }
0x1f3d   :  { %v7200_v11 = vpop.permute.xlu0 %7199 }
0x1f41   :  { %v9631_v14 = vpop.permute.xlu0 %9630 }
0x1f42   :  { %v9633_v60 = vunpack.i.h.bf16 %v9631_v14 }
0x1f85   :  { %v6148_v58 = vpop.f32.mrb[46].mxu0 }
0x1f86   :  { %v6069_v17 = vpop.f32.mrb[76].mxu1  ;;  %v9019_v18 = vpop.f32.mrb[47].mxu0 }
0x1f87   :  { %v9012_v19 = vpop.f32.mrb[77].mxu1  ;;  %9025 = vmatmul.mubr.msk.f32.vlgmr.msra.gmra.mrb[78].mxu1 %vm2341_vm4, %v6069_v17  ;;  %v9626_v17 = vpop.permute.xlu1 %9625 }
0x1f88   :  { %9352 = vmatpush3.bf16.msra.mxu1 %v9351_v16  ;;  %9031 = vmatprep.mubr.msk.f32.mxu1 %vm10009_vm1, %v10008_v8  ;;  %v9628_v19 = vunpack.i.h.bf16 %v9626_v17 }
0x1f89   :  { %9357 = vmatprep.subr.bf16.mxu1 %v10021_v44 }
0x1f8b   :  { %9032 = vmatmul.mubr.msk.f32.vlgmr.msra.gmra.mrb[80].mxu1 %vm2341_vm4, %v6148_v58  ;;  %v9632_v58 = vunpack.i.l.bf16 %v9631_v14  ;;  %v7282_v18 = vpop.permute.xlu1 %7281 }
0x1f8c   :  { %9045 = vmatprep.mubr.msk.f32.mxu1 %vm10009_vm1, %v10008_v8 }
0x1f8d   :  { %v9390_v16 = vpack.c.bf16 %v9633_v60, %v9632_v58  ;;  %v8241_v60 = vld [vmem:[%s11135_s18 + $0xd8] sm:$0xff] }
0x1f91   :  { %9360 = vmatpush3.bf16.xpose.msk.msra.mxu1 %vm10533_vm3, %v9358_v23  ;;  %v9636_v23 = vpop.permute.xlu1 %9635 }
0x1f92   :  { %9364 = vmatprep.subr.bf16.mxu1 %v10021_v44  ;;  %v9638_v25 = vunpack.i.h.bf16 %v9636_v23  ;;  %v9637_v26 = vunpack.i.l.bf16 %v9636_v23 }
0x1f98   :  { %9046 = vmatmul.mubr.msk.f32.vlgmr.msra.gmra.mrb[82].mxu1 %vm361_vm2, %v6393_v20  ;;  %v9627_v20 = vunpack.i.l.bf16 %v9626_v17  ;;  %v8243_v17 = vld [vmem:[%s11135_s18 + $0xe8] sm:$0xff] }
0x1f99   :  { %9366 = vmatpush3.bf16.msra.mxu1 %v9365_v27  ;;  %9059 = vmatprep.mubr.msk.f32.mxu1 %vm10009_vm1, %v10008_v8  ;;  %v9393_v27 = vpack.c.bf16 %v9638_v25, %v9637_v26  ;;  %v8225_v26 = vld [vmem:[#allocation14 + $0x1] ss:$0 sm:$0xff] }
0x1f9a   :  { %9367 = vmatprep.subr.bf16.mxu1 %v10021_v44  ;;  %v9386_v21 = vpack.c.bf16 %v9628_v19, %v9627_v20 }
0x1ff9   :  { %v6388_v28 = vpop.f32.mrb[48].mxu0 }
0x1ffa   :  { %v9040_v7 = vpop.f32.mrb[49].mxu0  ;;  %9053 = vmatmul.mubr.msk.f32.vlgmr.msra.gmra.mrb[50].mxu0 %vm2341_vm4, %v6388_v28 }
0x1ffb   :  { %9063 = vmatpush3.msra.mxu0 %v8181_v5 }
0x1ffc   :  { %9067 = vmatprep.subr.mxu0 %v8180_v49 }
0x205a   :  { %v6227_v29 = vpop.f32.mrb[78].mxu1 }
0x205b   :  { %v9026_v30 = vpop.f32.mrb[79].mxu1 }
0x205e   :  { %v6306_v31 = vpop.f32.mrb[80].mxu1 }
0x205f   :  { %v9033_v32 = vpop.f32.mrb[81].mxu1 }
0x206b   :  { %v6470_v40 = vpop.f32.mrb[82].mxu1 }
0x206c   :  { %v9047_v42 = vpop.f32.mrb[83].mxu1  ;;  %9060 = vmatmul.mubr.msk.f32.vlgmr.msra.gmra.mrb[84].mxu1 %vm2341_vm4, %v6470_v40 }
0x206d   :  { %9370 = vmatpush3.bf16.xpose.msk.msra.mxu1 %vm10533_vm3, %v9368_v39  ;;  %9076 = vmatprep.mubr.msk.f32.mxu1 %vm10009_vm1, %v10008_v8 }
0x206e   :  { %9375 = vmatprep.subr.bf16.mxu1 %v10021_v44 }
0x2074   :  { %9077 = vmatmul.mubr.msk.f32.vlgmr.msra.gmra.mrb[86].mxu1 %vm361_vm2, %v6795_v34 }
0x2075   :  { %9377 = vmatpush3.bf16.msra.mxu1 %v9376_v48  ;;  %9090 = vmatprep.mubr.msk.f32.mxu1 %vm10009_vm1, %v10008_v8 }
0x2076   :  { %9378 = vmatprep.subr.bf16.mxu1 %v10021_v44 }
0x20cd   :  { %v6549_v50 = vpop.f32.mrb[50].mxu0 }
0x20ce   :  { %v9054_v51 = vpop.f32.mrb[51].mxu0  ;;  %9064 = vmatprep.mubr.msk.f32.mxu0 %vm361_vm2, %v6549_v50 }
0x213f   :  { %v6628_v54 = vpop.f32.mrb[84].mxu1 }
0x2140   :  { %v9061_v56 = vpop.f32.mrb[85].mxu1  ;;  %9065 = vmatmul.mubr.msk.f32.vlgmr.msra.gmra.mrb[52].mxu0 %vm361_vm2, %v6628_v54  ;;  %v7661_v54 = vld [vmem:[#allocation17 + $0x20] sm:$0xff] }
0x2141   :  { %9068 = vmatpush3.msra.mxu0 %v8180_v49  ;;  %9069 = vmatprep.mubr.msk.f32.mxu0 %vm361_vm2, %v6227_v29  ;;  %v9395_v56 = vpack.c.bf16 %v7662_v55, %v7661_v54 }
0x2142   :  { %9371 = vmatprep.subr.bf16.mxu0 %v10021_v44 }
0x2147   :  { %v6872_v1 = vpop.f32.mrb[86].mxu1 }
0x2148   :  { %v9078_v3 = vpop.f32.mrb[87].mxu1  ;;  %9091 = vmatmul.mubr.msk.f32.vlgmr.msra.gmra.mrb[88].mxu1 %vm2341_vm4, %v6872_v1  ;;  %9070 = vmatmul.mubr.msk.f32.vlgmr.msra.gmra.mrb[52].mxu0 %vm361_vm2, %v6306_v31 }
0x2149   :  { %9380 = vmatpush3.bf16.msra.mxu1 %v9379_v0  ;;  %9374 = vmatpush3.bf16.xpose.msk.msra.mxu0 %vm10533_vm3, %v9372_v63  ;;  %v8231_v63 = vld [vmem:[%s11135_s18 + $0x88] sm:$0xff]  ;;  %v8232_v0 = vld [vmem:[%s11135_s18 + $0x90] sm:$0xff]  ;;  %v8233_v3 = vld [vmem:[%s11135_s18 + $0x98] sm:$0xff] }
0x214a   :  { %9083 = vmatprep.mubr.msk.f32.mxu0 %vm10009_vm1, %v10008_v8  ;;  %9097 = vmatprep.mubr.msk.f32.mxu1 %vm10009_vm1, %v10008_v8  ;;  %v9403_v1 = vpack.c.bf16 %v8231_v63, %v8230_v62 }
0x214b   :  { %9381 = vmatprep.subr.bf16.mxu1 %v10021_v44  ;;  %9100 = vmatprep.subr.mxu0 %v8182_v4 }
0x2150   :  { %9084 = vmatmul.mubr.msk.f32.vlgmr.msra.gmra.mrb[54].mxu0 %vm361_vm2, %v6877_v53 }
0x2151   :  { %9101 = vmatpush3.msra.mxu0 %v8182_v4  ;;  %v9407_v4 = vpack.c.bf16 %v8233_v3, %v8232_v0  ;;  %v7904_v0 = vld [vmem:[#allocation22] sm:$0xff] }
0x2152   :  { %9385 = vmatprep.subr.bf16.mxu0 %v10021_v44 }
0x221b   :  { %v7033_v9 = vpop.f32.mrb[88].mxu1 }
0x221c   :  { %v9092_v10 = vpop.f32.mrb[89].mxu1  ;;  %9102 = vmatprep.mubr.msk.f32.mxu0 %vm361_vm2, %v7033_v9  ;;  %v8235_v9 = vld [vmem:[%s11135_s18 + $0xa8] sm:$0xff] }
0x221d   :  { %v9411_v10 = vpack.c.bf16 %v8235_v9, %v8234_v6  ;;  %v7907_v6 = vld [vmem:[#allocation22 + $0x18] sm:$0xff] }
0x2223   :  { %v6954_v13 = vpop.f32.mrb[54].mxu0 }
0x2224   :  { %v9085_v15 = vpop.f32.mrb[55].mxu0  ;;  %9098 = vmatmul.mubr.msk.f32.vlgmr.msra.gmra.mrb[90].mxu1 %vm2341_vm4, %v6954_v13  ;;  %v8239_v13 = vld [vmem:[%s11135_s18 + $0xc8] sm:$0xff] }
0x2225   :  { %9384 = vmatpush3.bf16.xpose.msk.msra.mxu1 %vm10533_vm3, %v9382_v46  ;;  %9109 = vmatprep.mubr.msk.f32.mxu1 %vm10009_vm1, %v10008_v8  ;;  %v8238_v46 = vld [vmem:[%s11135_s18 + $0xc0] sm:$0xff]  ;;  %v8240_v15 = vld [vmem:[%s11135_s18 + $0xd0] sm:$0xff] }
0x2226   :  { %9389 = vmatprep.subr.bf16.mxu1 %v10021_v44  ;;  %v9419_v14 = vpack.c.bf16 %v8239_v13, %v8238_v46  ;;  %v9423_v58 = vpack.c.bf16 %v8241_v60, %v8240_v15  ;;  %v8249_v15 = vld [vmem:[%s11137_s20 + $0x1] ss:$0 sm:$0xff]  ;;  %s10022_s20 = smov [#allocation23]  }
0x2227   :  { %s8003_s15 = sshll.u32 %s10022_s20, 4  ;;  %s8004_s15 = int_to_ptr.vmem [resolvable:$true] %s8003_s15 }
0x2228   :  { %p9958_p7 = scmp.lt.s32.totalorder %s8004_s15, %s8004_s15 }
0x222c   :  { %9110 = vmatmul.mubr.msk.f32.vlgmr.msra.gmra.mrb[92].mxu1 %vm361_vm2, %v7200_v11  ;;  %v8236_v11 = vld [vmem:[%s11135_s18 + $0xb0] sm:$0xff] }
0x222d   :  { %9391 = vmatpush3.bf16.msra.mxu1 %v9390_v16  ;;  %9123 = vmatprep.mubr.msk.f32.mxu1 %vm10009_vm1, %v10008_v8  ;;  %v9415_v47 = vpack.c.bf16 %v8237_v12, %v8236_v11  ;;  %v8242_v16 = vld [vmem:[%s11135_s18 + $0xe0] sm:$0xff] }
0x222e   :  { %9396 = vmatprep.subr.bf16.mxu1 %v9395_v56 }
0x22f7   :  { %v7112_v22 = vpop.f32.mrb[90].mxu1 }
0x22f8   :  { %v9099_v24 = vpop.f32.mrb[91].mxu1  ;;  %9103 = vmatmul.mubr.msk.f32.vlgmr.msra.gmra.mrb[52].mxu0 %vm361_vm2, %v7112_v22 }
0x22f9   :  { %9388 = vmatpush3.bf16.xpose.msk.msra.mxu0 %vm10533_vm3, %v9386_v21  ;;  %9116 = vmatprep.mubr.msk.f32.mxu0 %vm10009_vm1, %v10008_v8 }
0x22fa   :  { %9392 = vmatprep.subr.bf16.mxu0 %v10021_v44 }
0x22ff   :  { %v7277_v28 = vpop.f32.mrb[92].mxu1 }
0x2300   :  { %v9111_v7 = vpop.f32.mrb[93].mxu1  ;;  %9117 = vmatmul.mubr.msk.f32.vlgmr.msra.gmra.mrb[56].mxu0 %vm361_vm2, %v7282_v18  ;;  %9124 = vmatmul.mubr.msk.f32.vlgmr.msra.gmra.mrb[94].mxu1 %vm2341_vm4, %v7277_v28  ;;  %v9427_v18 = vpack.c.bf16 %v8243_v17, %v8242_v16  ;;  %v8226_v28 = vld [vmem:[#allocation16 + $0x1] ss:$0 sm:$0xff]  ;;  %v8250_v17 = vld [vmem:[%s11177_s28 + $0x1] ss:$0 sm:$0xff]  ;;  %s9953_s28 = scalar_lea.vmem %s8004_s15, 256 }
0x2301   :  { %9394 = vmatpush3.bf16.msra.mxu0 %v9393_v27  ;;  %9130 = vmatprep.mubr.msk.f32.mxu0 %vm10009_vm1, %v10008_v8  ;;  %p9954_p6 = scmp.ne.s32.totalorder %s8004_s15, %s9953_s28  ;;  %p9959_p8 = scmp.lt.s32.totalorder %s9953_s28, %s9953_s28 }
0x2302   :  { %9133 = vmatprep.subr.mxu0 %v8183_v2  ;;  %9398 = vmatpush3.bf16.msra.mxu1 %v9395_v56 }
0x2303   :  { %9400 = vmatprep.subr.bf16.mxu1 %v9399_v61  ;;  %p9960_p9 = por %p9959_p8, %p9958_p7 }
0x2305   :  { %p9961_p10 = pnand %p9960_p9, %p9954_p6 }
0x2306   :  { %9402 = vmatpush3.bf16.msra.mxu1 %v9399_v61 }
0x23d3   :  { %v7359_v5 = vpop.f32.mrb[56].mxu0  ;;  %v7438_v44 = vpop.f32.mrb[94].mxu1 }
0x23d4   :  { %v9118_v29 = vpop.f32.mrb[57].mxu0  ;;  %v9125_v30 = vpop.f32.mrb[95].mxu1  ;;  %9131 = vmatmul.mubr.msk.f32.vlgmr.msra.gmra.mrb[58].mxu0 %vm2341_vm4, %v7359_v5 }
0x23d5   :  { %9135 = vmatprep.mubr.msk.f32.mxu0 %vm361_vm2, %v7438_v44  ;;  %9134 = vmatpush3.msra.mxu0 %v8183_v2 }
0x23d6   :  { %9404 = vmatprep.subr.bf16.mxu0 %v9403_v1 }
0x24a7   :  { %v7517_v31 = vpop.f32.mrb[58].mxu0 }
0x24a8   :  { %v9132_v32 = vpop.f32.mrb[59].mxu0  ;;  %9136 = vmatmul.mubr.msk.f32.vlgmr.msra.gmra.mrb[52].mxu0 %vm361_vm2, %v7517_v31  ;;  %v8244_v31 = vld [vmem:[%s11135_s18 + $0xf0] sm:$0xff] }
0x24a9   :  { %9406 = vmatpush3.bf16.msra.mxu0 %v9403_v1  ;;  %v8245_v32 = vld [vmem:[%s11135_s18 + $0xf8] sm:$0xff]  ;;  %v7905_v1 = vld [vmem:[#allocation22 + $0x8] sm:$0xff] }
0x24aa   :  { %9408 = vmatprep.subr.bf16.mxu0 %v9407_v4  ;;  %v9435_v3 = vpack.c.bf16 %v7905_v1, %v7904_v0 }
0x24ac   :  { %9436 = vmatprep.subr.bf16.mxu1 %v9435_v3 }
0x24ad   :  { %9410 = vmatpush3.bf16.msra.mxu0 %v9407_v4  ;;  %v7906_v4 = vld [vmem:[#allocation22 + $0x10] sm:$0xff] }
0x24ae   :  { %9412 = vmatprep.subr.bf16.mxu0 %v9411_v10  ;;  %v9439_v9 = vpack.c.bf16 %v7907_v6, %v7906_v4 }
0x24b1   :  { %9414 = vmatpush3.bf16.msra.mxu0 %v9411_v10 }
0x24b2   :  { %9416 = vmatprep.subr.bf16.mxu0 %v9415_v47 }
0x24b5   :  { %9418 = vmatpush3.bf16.msra.mxu0 %v9415_v47 }
0x24b6   :  { %9420 = vmatprep.subr.bf16.mxu0 %v9419_v14 }
0x24b9   :  { %9422 = vmatpush3.bf16.msra.mxu0 %v9419_v14 }
0x24ba   :  { %9424 = vmatprep.subr.bf16.mxu0 %v9423_v58 }
0x24bd   :  { %9426 = vmatpush3.bf16.msra.mxu0 %v9423_v58 }
0x24be   :  { %9428 = vmatprep.subr.bf16.mxu0 %v9427_v18 }
0x24c1   :  { %9430 = vmatpush3.bf16.msra.mxu0 %v9427_v18 }
0x257b   :  { %v9137_v8 = vpop.f32.mrb[52].mxu0 }
0x257c   :  { %v7611_v34 = vadd.f32 %v9137_v8, %v8224_v33  ;;  %v7593_v35 = vpop.f32.mrb[53].mxu0  ;;  %v8227_v8 = vld [vmem:[#allocation19 + $0x1] ss:$0 sm:$0xff] }
0x257d   :  { %v7610_v37 = vadd.f32 %v8224_v33, %v7593_v35  ;;  %v9431_v33 = vpack.c.bf16 %v8245_v32, %v8244_v31 }
0x257e   :  { %v7613_v39 = vadd.f32 %v7611_v34, %v10904_v38 }
0x257f   :  { %v7612_v40 = vadd.f32 %v7610_v37, %v10900_v36  ;;  %9432 = vmatprep.subr.bf16.mxu0 %v9431_v33 }
0x2580   :  { %v7621_v41 = vsel %vm271_vm0, %v7613_v39, 0.0  ;;  %9434 = vmatpush3.bf16.msra.mxu0 %v9431_v33 }
0x2581   :  { %7622 = vadd.xlane.f32.xlu1 %v7621_v41  ;;  %v7618_v42 = vsel %vm271_vm0, %v7612_v40, 0.0 }
0x2582   :  { %7619 = vadd.xlane.f32.xlu0 %v7618_v42  ;;  %v8246_v42 = vld [vmem:[#allocation20 + $0x1] ss:$0 sm:$0xff] }
0x260e   :  { %v7623_v43 = vpop.xlane.xlu1 %7622 }
0x260f   :  { %v7625_v45 = vmul.f32 0.03125, %v7623_v43  ;;  %v7620_v48 = vpop.xlane.xlu0 %7619 }
0x2610   :  { %v7624_v49 = vmul.f32 0.03125, %v7620_v48 }
0x2611   :  { %v11028_v50 = vsub.f32 %v7613_v39, %v7625_v45 }
0x2612   :  { %v7626_v51 = vsub.f32 %v7612_v40, %v7624_v49 }
0x2613   :  { %v7629_v38 = vmul.f32 %v11028_v50, %v11028_v50 }
0x2614   :  { %v7628_v52 = vmul.f32 %v7626_v51, %v7626_v51 }
0x2615   :  { %v7633_v36 = vsel %vm271_vm0, %v7629_v38, 0.0 }
0x2616   :  { %v7630_v53 = vsel %vm271_vm0, %v7628_v52, 0.0 }
0x2617   :  { %7631 = vadd.xlane.f32.xlu0 %v7630_v53 }
0x261b   :  { %7634 = vadd.xlane.f32.xlu0 %v7633_v36 }
0x26a4   :  { %v7632_v19 = vpop.xlane.xlu0 %7631 }
0x26a5   :  { %v7636_v20 = vmul.f32 0.03125, %v7632_v19 }
0x26a7   :  { %v7638_v21 = vadd.f32 1e-05, %v7636_v20 }
0x26a8   :  { %v7635_v22 = vpop.xlane.xlu0 %7634 }
0x26a9   :  { %9655 = vrsqrt.f32 %v7638_v21  ;;  %v7637_v23 = vmul.f32 0.03125, %v7635_v22  ;;  %v8251_v22 = vld [vmem:[%s11178_s29] ss:$0 sm:$0xff] }
0x26ab   :  { %v7639_v24 = vadd.f32 1e-05, %v7637_v23 }
0x26ad   :  { %9657 = vrsqrt.f32 %v7639_v24 }
0x26b3   :  { %v9656_v25 = vpop.eup %9655 }
0x26b4   :  { %v7642_v27 = vmul.f32 %v9656_v25, %v7626_v51 }
0x26b6   :  { %v7650_v7 = vmul.f32 %v8225_v26, %v7642_v27 }
0x26b7   :  { %v9658_v2 = vpop.eup %9657 }
0x26b8   :  { %v7643_v5 = vmul.f32 %v9658_v2, %v11028_v50  ;;  %v7658_v44 = vadd.f32 %v8226_v28, %v7650_v7 }
0x26ba   :  { %v7651_v29 = vmul.f32 %v8225_v26, %v7643_v5  ;;  %9146 = vmatprep.mubr.msk.f32.mxu1 %vm271_vm0, %v7658_v44 }
0x26bc   :  { %v7659_v30 = vadd.f32 %v8226_v28, %v7651_v29 }
0x26be   :  { %9147 = vmatmul.mubr.msk.f32.vlgmr.msra.gmra.mrb[96].mxu1 %vm271_vm0, %v7659_v30 }
0x26bf   :  { %9438 = vmatpush3.bf16.msra.mxu1 %v9435_v3 }
0x26c0   :  { %9440 = vmatprep.subr.bf16.mxu1 %v9439_v9 }
0x26c3   :  { %9442 = vmatpush3.bf16.msra.mxu1 %v9439_v9 }
0x2791   :  { %v9148_v34 = vpop.f32.mrb[96].mxu1 }
0x2792   :  { %v7751_v35 = vadd.f32 %v9148_v34, %v8227_v8  ;;  %v7745_v37 = vpop.f32.mrb[97].mxu1 }
0x2793   :  { %v7746_v39 = vadd.f32 %v8227_v8, %v7745_v37 }
0x2794   :  { %v7755_v41 = vmax.f32 %v7751_v35, 0.0 }
0x2795   :  { %v7754_v40 = vmax.f32 %v7746_v39, 0.0 }
0x2797   :  { %9181 = vmatprep.mubr.f32.mxu0 %v7754_v40 }
0x2798   :  { %9182 = vmatmul.mubr.f32.vlgmr.msra.gmra.mrb[60].mxu0 %v7755_v41 }
0x286b   :  { %v9183_v43 = vpop.f32.mrb[60].mxu0 }
0x286c   :  { %v7853_v45 = vadd.f32 %v9183_v43, %v8246_v42  ;;  %v7847_v48 = vpop.f32.mrb[61].mxu0 }
0x286d   :  { %v7848_v49 = vadd.f32 %v8246_v42, %v7847_v48 }
0x286e   :  { %v7857_v50 = vadd.f32 %v7853_v45, %v7659_v30 }
0x286f   :  { %v7856_v51 = vadd.f32 %v7848_v49, %v7658_v44 }
0x2870   :  { %v7865_v52 = vsel %vm271_vm0, %v7857_v50, 0.0 }
0x2871   :  { %7866 = vadd.xlane.f32.xlu0 %v7865_v52  ;;  %v7862_v53 = vsel %vm271_vm0, %v7856_v51, 0.0 }
0x2872   :  { %7863 = vadd.xlane.f32.xlu1 %v7862_v53 }
0x28fe   :  { %v7867_v38 = vpop.xlane.xlu0 %7866 }
0x28ff   :  { %v7869_v36 = vmul.f32 0.03125, %v7867_v38  ;;  %v7864_v54 = vpop.xlane.xlu1 %7863 }
0x2900   :  { %v7868_v55 = vmul.f32 0.03125, %v7864_v54 }
0x2901   :  { %v7871_v56 = vsub.f32 %v7857_v50, %v7869_v36 }
0x2902   :  { %v7870_v57 = vsub.f32 %v7856_v51, %v7868_v55 }
0x2903   :  { %v7873_v59 = vmul.f32 %v7871_v56, %v7871_v56 }
0x2904   :  { %v7872_v61 = vmul.f32 %v7870_v57, %v7870_v57 }
0x2905   :  { %v7877_v62 = vsel %vm271_vm0, %v7873_v59, 0.0 }
0x2906   :  { %7878 = vadd.xlane.f32.xlu0 %v7877_v62  ;;  %v7874_v63 = vsel %vm271_vm0, %v7872_v61, 0.0 }
0x2907   :  { %7875 = vadd.xlane.f32.xlu1 %v7874_v63 }
0x2993   :  { %v7879_v10 = vpop.xlane.xlu0 %7878 }
0x2994   :  { %v7881_v11 = vmul.f32 0.03125, %v7879_v10  ;;  %v7876_v12 = vpop.xlane.xlu1 %7875 }
0x2995   :  { %v7880_v47 = vmul.f32 0.03125, %v7876_v12 }
0x2996   :  { %v7883_v46 = vadd.f32 1e-05, %v7881_v11 }
0x2997   :  { %v7882_v13 = vadd.f32 1e-05, %v7880_v47 }
0x2998   :  { %9659 = vrsqrt.f32 %v7883_v46 }
0x2999   :  { %9661 = vrsqrt.f32 %v7882_v13 }
0x29a2   :  { %v9660_v14 = vpop.eup %9659 }
0x29a3   :  { %v9662_v60 = vpop.eup %9661  ;;  %v7887_v58 = vmul.f32 %v9660_v14, %v7871_v56 }
0x29a4   :  { %v7886_v16 = vmul.f32 %v9662_v60, %v7870_v57 }
0x29a5   :  { %v7895_v18 = vmul.f32 %v8249_v15, %v7887_v58 }
0x29a6   :  { %v7894_v19 = vmul.f32 %v8249_v15, %v7886_v16 }
0x29a7   :  { %v7903_v21 = vadd.f32 %v8250_v17, %v7895_v18 }
0x29a8   :  { %v7902_v20 = vadd.f32 %v8250_v17, %v7894_v19 }
0x29aa   :  { %9192 = vmatprep.mubr.msk.f32.mxu1 %vm271_vm0, %v7902_v20 }
0x29ab   :  { %9193 = vmatmul.mubr.msk.f32.vlgmr.msra.gmra.mrb[98].mxu1 %vm271_vm0, %v7903_v21 }
0x2a7e   :  { %v9194_v23 = vpop.f32.mrb[98].mxu1 }
0x2a7f   :  { %v7993_v24 = vadd.f32 %v9194_v23, %v8251_v22  ;;  %v7987_v25 = vpop.f32.mrb[99].mxu1 }
0x2a80   :  { %v7988_v26 = vadd.f32 %v8251_v22, %v7987_v25 }
0x2a81   :  { %7997 = vst.msk [vmem:[#allocation23 + $0x8] sm:$0xff] %vm271_vm0, %v7993_v24 }
0x2a82   :  { %7996 = vst.msk [vmem:[#allocation23] sm:$0xff] %vm271_vm0, %v7988_v26 }
0x2a83   :  { %9964 = shalt.err (!%p9961_p10)
}
0x2a84   :  { %s11179_s2 = sld [smem:[#allocation43_spill]] }
0x2a8a   :  { %s9965_s24 = scalar_lea.hbm %s11179_s2, 256 }
0x2a8b   :  { %p9966_p11 = scmp.ne.s32.totalorder %s11179_s2, %s9965_s24  ;;  %p9969_p12 = scmp.lt.u32.totalorder %s9965_s24, %s11179_s2 }
0x2a8d   :  { %p9971_p13 = pnand %p9969_p12, %p9966_p11 }
0x2a8f   :  { %9974 = shalt.err (!%p9971_p13)
}
0x2a90   :  { %s11180_s14 = smov 128  }
0x2a91   :  { %8009 = dma.vmem_to_hbm [thread:$0]  %s8004_s15, 256, %s11179_s2, [#allocation4], %s11180_s14, %s11180_s14, %s9993_s8  }
0x2a92   :  { %9989 = dma.done.wait [#allocation4], 256  }
0x2a93   :  { %9990 = vsyncadd [#allocation4], 4294967040 }
0x2a94   :  { %8013 = vsyncpa [#allocation3], 1 }
0x2a95   :  { %8014 = vsyncpa [#allocation6], 1 }
0x2a96   :  { %8015 = vsyncpa [#allocation9], 1 }
0x2a97   :  { %8016 = vsyncpa [#allocation12], 1 }
0x2a98   :  { %8017 = vsyncpa [#allocation15], 1 }
0x2a99   :  { %8018 = vsyncpa [#allocation18], 1 }
0x2a9a   :  { %8019 = vsyncpa [#allocation21], 1 }
0x2a9b   :  { %8020 = vsyncpa [#allocation4], 1 }

</bundles_post_ra>
